<compile_context>
chip_gen: v6e
topology: v6e:2x2x1
jax: 0.10.0
libtpu: 0.0.40
codegen_flags: <defaults>
</compile_context>

<pallas_src>
import functools

import jax
import jax.numpy as jnp
from jax.experimental import pallas as pl
from jax.experimental.pallas import tpu as pltpu


# ----------------------------------------------------------------------------
# In-kernel helpers
# ----------------------------------------------------------------------------
def _lstm_cell(gates, c, hidden):
    """Pointwise LSTM cell. gates: (B, 4H) pre-activation, PyTorch order [i|f|g|o]."""
    H = hidden
    i_g = jax.nn.sigmoid(gates[:, 0 * H:1 * H])
    f_g = jax.nn.sigmoid(gates[:, 1 * H:2 * H])
    g_g = jnp.tanh(gates[:, 2 * H:3 * H])
    o_g = jax.nn.sigmoid(gates[:, 3 * H:4 * H])
    c_new = f_g * c + i_g * g_g
    h_new = o_g * jnp.tanh(c_new)
    return h_new, c_new


def _run_direction(xw, whh, out_ref, reverse, seq_len, batch, hidden):
    """Serial LSTM recurrence over an already-projected input.

    xw:      (T*B, 4H) value = x @ W_ih^T + (b_ih + b_hh), time-major rows.
    whh:     (H, 4H) value = W_hh^T.
    out_ref: optional (T*B, H) VMEM ref; h_t stored at rows [t*B, (t+1)*B).
    reverse: process timesteps T-1 .. 0 (state stored at its own time index,
             so no flips are ever needed).
    Returns the final hidden state (B, H).
    """
    T, B, H = seq_len, batch, hidden
    h = jnp.zeros((B, H), jnp.float32)
    c = jnp.zeros((B, H), jnp.float32)
    for s in range(T):                      # fully unrolled: T static and small
        t = T - 1 - s if reverse else s
        gates = xw[t * B:(t + 1) * B, :] + jnp.dot(
            h, whh, preferred_element_type=jnp.float32)
        h, c = _lstm_cell(gates, c, H)
        if out_ref is not None:
            out_ref[pl.ds(t * B, B), :] = h
    return h


# ----------------------------------------------------------------------------
# Fused Pallas kernel
# ----------------------------------------------------------------------------
def _bilstm_fused_kernel(
    x_ref,                                    # (T*B, D_in), time-major rows
    wih0f_ref, whh0f_ref, b0f_ref,            # layer 0, forward
    wih0b_ref, whh0b_ref, b0b_ref,            # layer 0, backward
    wih1f_ref, whh1f_ref, b1f_ref,            # layer 1, forward
    wih1b_ref, whh1b_ref, b1b_ref,            # layer 1, backward
    wout_ref, bout_ref,                       # Linear head
    logits_ref,                               # (B, C) output
    l0f_ref, l0b_ref,                         # (T*B, H) VMEM scratch
    *, seq_len, batch, hidden,
):
    T, B, H = seq_len, batch, hidden
    x = x_ref[...]                            # (T*B, D_in)

    # ---------------- Layer 0 (input -> 2H features) ----------------
    # Hoisted, time-parallel input projections (one big matmul per direction).
    xw0f = jnp.dot(x, wih0f_ref[...], preferred_element_type=jnp.float32) + b0f_ref[...]
    xw0b = jnp.dot(x, wih0b_ref[...], preferred_element_type=jnp.float32) + b0b_ref[...]
    _run_direction(xw0f, whh0f_ref[...], l0f_ref, False, T, B, H)
    _run_direction(xw0b, whh0b_ref[...], l0b_ref, True, T, B, H)

    # ---------------- Layer 1 (2H -> 2H features) --------------------
    l0f = l0f_ref[...]                        # (T*B, H) forward hidden states
    l0b = l0b_ref[...]                        # (T*B, H) backward hidden states
    wih1f = wih1f_ref[...]                    # (2H, 4H): rows [:H] fwd input, [H:] bwd input
    wih1b = wih1b_ref[...]

    xw1f = (jnp.dot(l0f, wih1f[:H, :], preferred_element_type=jnp.float32)
            + jnp.dot(l0b, wih1f[H:, :], preferred_element_type=jnp.float32)
            + b1f_ref[...])
    h1f = _run_direction(xw1f, whh1f_ref[...], None, False, T, B, H)

    # Layer-1 backward: the head only consumes the bidirectional output at
    # t = T-1, where the reverse LSTM has processed exactly one input (x_{T-1})
    # from the zero state -> single cell step (h0 @ W_hh^T == 0 drops out).
    xf_last = l0f[(T - 1) * B:T * B, :]
    xb_last = l0b[(T - 1) * B:T * B, :]
    g1b = (jnp.dot(xf_last, wih1b[:H, :], preferred_element_type=jnp.float32)
           + jnp.dot(xb_last, wih1b[H:, :], preferred_element_type=jnp.float32)
           + b1b_ref[...])
    h1b, _ = _lstm_cell(g1b, jnp.zeros((B, H), jnp.float32), H)

    # ---------------- Linear head on the last timestep ---------------
    wout = wout_ref[...]                      # (2H, C)
    logits_ref[...] = (
        jnp.dot(h1f, wout[:H, :], preferred_element_type=jnp.float32)
        + jnp.dot(h1b, wout[H:, :], preferred_element_type=jnp.float32)
        + bout_ref[...])


_VMEM_SPEC = pl.BlockSpec(memory_space=pltpu.MemorySpace.VMEM)


# ----------------------------------------------------------------------------
# Forward pass (mirrors BiLSTM.forward) — one jit, one pallas_call
# ----------------------------------------------------------------------------
@jax.jit
def bilstm_forward(x, params):
    """x: (B, T, input_size) float32 -> (B, nb_classes) float32."""
    B, T, D = x.shape
    (l0f, l0b), (l1f, l1b) = params["lstm"]   # exactly 2 layers (module default)
    H = l0f["w_hh_t"].shape[0]
    C = params["out_w_t"].shape[1]

    # Time-major, row-flattened so timestep t is rows [t*B, (t+1)*B) and the
    # per-layer input projection is a single matmul.
    x_flat = jnp.transpose(x, (1, 0, 2)).reshape(T * B, D)

    kernel = functools.partial(_bilstm_fused_kernel, seq_len=T, batch=B, hidden=H)
    return pl.pallas_call(
        kernel,
        out_shape=jax.ShapeDtypeStruct((B, C), jnp.float32),
        in_specs=[_VMEM_SPEC] * 15,
        out_specs=_VMEM_SPEC,
        scratch_shapes=[
            pltpu.VMEM((T * B, H), jnp.float32),   # layer-0 forward hidden states
            pltpu.VMEM((T * B, H), jnp.float32),   # layer-0 backward hidden states
        ],
    )(
        x_flat,
        l0f["w_ih_t"], l0f["w_hh_t"], l0f["bias"],
        l0b["w_ih_t"], l0b["w_hh_t"], l0b["bias"],
        l1f["w_ih_t"], l1f["w_hh_t"], l1f["bias"],
        l1b["w_ih_t"], l1b["w_hh_t"], l1b["bias"],
        params["out_w_t"], params["out_b"],
    )


# ----------------------------------------------------------------------------
# Parameter construction (matches nn.LSTM / nn.Linear shapes & init ranges)
# ----------------------------------------------------------------------------
def init_bilstm_params(key, input_size, hidden_size, nb_classes, num_layers):
    H = hidden_size
    k_lstm = 1.0 / jnp.sqrt(H)
    params = {"lstm": []}
    for layer in range(num_layers):
        d_in = input_size if layer == 0 else 2 * H
        layer_p = []
        for _direction in range(2):
            key, k1, k2, k3, k4 = jax.random.split(key, 5)
            w_ih = jax.random.uniform(k1, (4 * H, d_in), jnp.float32, -k_lstm, k_lstm)
            w_hh = jax.random.uniform(k2, (4 * H, H), jnp.float32, -k_lstm, k_lstm)
            b_ih = jax.random.uniform(k3, (4 * H,), jnp.float32, -k_lstm, k_lstm)
            b_hh = jax.random.uniform(k4, (4 * H,), jnp.float32, -k_lstm, k_lstm)
            layer_p.append(
                {
                    "w_ih_t": w_ih.T,                   # (d_in, 4H)
                    "w_hh_t": w_hh.T,                   # (H, 4H)
                    "bias": (b_ih + b_hh)[None, :],     # (1, 4H)
                }
            )
        params["lstm"].append(layer_p)

    k_out = 1.0 / jnp.sqrt(2 * H)
    key, k1, k2 = jax.random.split(key, 3)
    w_out = jax.random.uniform(k1, (nb_classes, 2 * H), jnp.float32, -k_out, k_out)
    b_out = jax.random.uniform(k2, (nb_classes,), jnp.float32, -k_out, k_out)
    params["out_w_t"] = w_out.T            # (2H, C)
    params["out_b"] = b_out[None, :]       # (1, C)
    return params


# ----------------------------------------------------------------------------
# Main
# ----------------------------------------------------------------------------
if __name__ == "__main__":
    B, T = 2, 8
    INPUT_SIZE = 16
    HIDDEN_SIZE = 32
    NB_CLASS = 4
    NUM_LAYERS = 2

    key = jax.random.PRNGKey(0)
    key, kx, kp = jax.random.split(key, 3)
    x = jax.random.normal(kx, (B, T, INPUT_SIZE), dtype=jnp.float32)
    params = init_bilstm_params(kp, INPUT_SIZE, HIDDEN_SIZE, NB_CLASS, NUM_LAYERS)

    logits = bilstm_forward(x, params)
    jax.block_until_ready(logits)

    assert logits.shape == (B, NB_CLASS), logits.shape
    assert logits.dtype == jnp.float32
    assert bool(jnp.all(jnp.isfinite(logits)))
    print("KERNEL_OK")
</pallas_src>

<mosaic_0001>
module attributes {stable_mosaic.version = 11 : i64} {
  func.func @_bilstm_fused_kernel(%arg0: memref<16x16xf32, #tpu.memory_space<vmem>>, %arg1: memref<16x128xf32, #tpu.memory_space<vmem>>, %arg2: memref<32x128xf32, #tpu.memory_space<vmem>>, %arg3: memref<1x128xf32, #tpu.memory_space<vmem>>, %arg4: memref<16x128xf32, #tpu.memory_space<vmem>>, %arg5: memref<32x128xf32, #tpu.memory_space<vmem>>, %arg6: memref<1x128xf32, #tpu.memory_space<vmem>>, %arg7: memref<64x128xf32, #tpu.memory_space<vmem>>, %arg8: memref<32x128xf32, #tpu.memory_space<vmem>>, %arg9: memref<1x128xf32, #tpu.memory_space<vmem>>, %arg10: memref<64x128xf32, #tpu.memory_space<vmem>>, %arg11: memref<32x128xf32, #tpu.memory_space<vmem>>, %arg12: memref<1x128xf32, #tpu.memory_space<vmem>>, %arg13: memref<64x4xf32, #tpu.memory_space<vmem>>, %arg14: memref<1x4xf32, #tpu.memory_space<vmem>>, %arg15: memref<2x4xf32, #tpu.memory_space<vmem>>, %arg16: memref<16x32xf32, #tpu.memory_space<vmem>>, %arg17: memref<16x32xf32, #tpu.memory_space<vmem>>) attributes {dimension_semantics = [], scalar_prefetch = 0 : i64, scratch_operands = 2 : i64, tpu.core_type = #tpu.core_type<tc>} {
    %c0 = arith.constant 0 : index
    %c0_0 = arith.constant 0 : index
    %0 = vector.load %arg0[%c0, %c0_0] : memref<16x16xf32, #tpu.memory_space<vmem>>, vector<16x16xf32>
    %c0_1 = arith.constant 0 : index
    %c0_2 = arith.constant 0 : index
    %1 = vector.load %arg1[%c0_1, %c0_2] : memref<16x128xf32, #tpu.memory_space<vmem>>, vector<16x128xf32>
    %cst = arith.constant dense<0.000000e+00> : vector<16x128xf32>
    %2 = tpu.matmul %0, %1, %cst {dimension_numbers = #tpu.dot_dimension_numbers<[1], [0], [0], [1], [0, 0, 1, 1], [], []>} : vector<16x16xf32>, vector<16x128xf32>, vector<16x128xf32> -> vector<16x128xf32>
    %c0_3 = arith.constant 0 : index
    %c0_4 = arith.constant 0 : index
    %3 = vector.load %arg3[%c0_3, %c0_4] : memref<1x128xf32, #tpu.memory_space<vmem>>, vector<1x128xf32>
    %4 = vector.broadcast %3 : vector<1x128xf32> to vector<16x128xf32>
    %5 = arith.addf %2, %4 : vector<16x128xf32>
    %c0_5 = arith.constant 0 : index
    %c0_6 = arith.constant 0 : index
    %6 = vector.load %arg4[%c0_5, %c0_6] : memref<16x128xf32, #tpu.memory_space<vmem>>, vector<16x128xf32>
    %cst_7 = arith.constant dense<0.000000e+00> : vector<16x128xf32>
    %7 = tpu.matmul %0, %6, %cst_7 {dimension_numbers = #tpu.dot_dimension_numbers<[1], [0], [0], [1], [0, 0, 1, 1], [], []>} : vector<16x16xf32>, vector<16x128xf32>, vector<16x128xf32> -> vector<16x128xf32>
    %c0_8 = arith.constant 0 : index
    %c0_9 = arith.constant 0 : index
    %8 = vector.load %arg6[%c0_8, %c0_9] : memref<1x128xf32, #tpu.memory_space<vmem>>, vector<1x128xf32>
    %9 = vector.broadcast %8 : vector<1x128xf32> to vector<16x128xf32>
    %10 = arith.addf %7, %9 : vector<16x128xf32>
    %c0_10 = arith.constant 0 : index
    %c0_11 = arith.constant 0 : index
    %11 = vector.load %arg2[%c0_10, %c0_11] : memref<32x128xf32, #tpu.memory_space<vmem>>, vector<32x128xf32>
    %cst_12 = arith.constant 0.000000e+00 : f32
    %12 = vector.broadcast %cst_12 : f32 to vector<2x32xf32>
    %cst_13 = arith.constant 0.000000e+00 : f32
    %13 = vector.broadcast %cst_13 : f32 to vector<2x32xf32>
    %14 = vector.extract_strided_slice %5 {offsets = [0, 0], sizes = [2, 128], strides = [1, 1]} : vector<16x128xf32> to vector<2x128xf32>
    %cst_14 = arith.constant dense<0.000000e+00> : vector<2x128xf32>
    %15 = tpu.matmul %12, %11, %cst_14 {dimension_numbers = #tpu.dot_dimension_numbers<[1], [0], [0], [1], [0, 0, 1, 1], [], []>} : vector<2x32xf32>, vector<32x128xf32>, vector<2x128xf32> -> vector<2x128xf32>
    %16 = arith.addf %14, %15 : vector<2x128xf32>
    %17 = vector.extract_strided_slice %16 {offsets = [0, 0], sizes = [2, 32], strides = [1, 1]} : vector<2x128xf32> to vector<2x32xf32>
    %18 = arith.negf %17 : vector<2x32xf32>
    %19 = math.exp %18 : vector<2x32xf32>
    %cst_15 = arith.constant 1.000000e+00 : f32
    %20 = vector.broadcast %cst_15 : f32 to vector<2x32xf32>
    %21 = arith.addf %20, %19 : vector<2x32xf32>
    %22 = arith.divf %20, %21 : vector<2x32xf32>
    %23 = vector.extract_strided_slice %16 {offsets = [0, 32], sizes = [2, 32], strides = [1, 1]} : vector<2x128xf32> to vector<2x32xf32>
    %24 = arith.negf %23 : vector<2x32xf32>
    %25 = math.exp %24 : vector<2x32xf32>
    %cst_16 = arith.constant 1.000000e+00 : f32
    %26 = vector.broadcast %cst_16 : f32 to vector<2x32xf32>
    %27 = arith.addf %26, %25 : vector<2x32xf32>
    %28 = arith.divf %26, %27 : vector<2x32xf32>
    %29 = vector.extract_strided_slice %16 {offsets = [0, 64], sizes = [2, 32], strides = [1, 1]} : vector<2x128xf32> to vector<2x32xf32>
    %30 = math.tanh %29 : vector<2x32xf32>
    %31 = vector.extract_strided_slice %16 {offsets = [0, 96], sizes = [2, 32], strides = [1, 1]} : vector<2x128xf32> to vector<2x32xf32>
    %32 = arith.negf %31 : vector<2x32xf32>
    %33 = math.exp %32 : vector<2x32xf32>
    %cst_17 = arith.constant 1.000000e+00 : f32
    %34 = vector.broadcast %cst_17 : f32 to vector<2x32xf32>
    %35 = arith.addf %34, %33 : vector<2x32xf32>
    %36 = arith.divf %34, %35 : vector<2x32xf32>
    %37 = arith.mulf %28, %13 : vector<2x32xf32>
    %38 = arith.mulf %22, %30 : vector<2x32xf32>
    %39 = arith.addf %37, %38 : vector<2x32xf32>
    %40 = math.tanh %39 : vector<2x32xf32>
    %41 = arith.mulf %36, %40 : vector<2x32xf32>
    %c0_18 = arith.constant 0 : index
    %c0_19 = arith.constant 0 : index
    %42 = vector.load %arg16[%c0_18, %c0_19] : memref<16x32xf32, #tpu.memory_space<vmem>>, vector<2x32xf32>
    tpu.vector_store %arg16[%c0_18, %c0_19], %41 {strides = array<i32>} : memref<16x32xf32, #tpu.memory_space<vmem>>, vector<2x32xf32>,
    %43 = vector.extract_strided_slice %5 {offsets = [2, 0], sizes = [2, 128], strides = [1, 1]} : vector<16x128xf32> to vector<2x128xf32>
    %cst_20 = arith.constant dense<0.000000e+00> : vector<2x128xf32>
    %44 = tpu.matmul %41, %11, %cst_20 {dimension_numbers = #tpu.dot_dimension_numbers<[1], [0], [0], [1], [0, 0, 1, 1], [], []>} : vector<2x32xf32>, vector<32x128xf32>, vector<2x128xf32> -> vector<2x128xf32>
    %45 = arith.addf %43, %44 : vector<2x128xf32>
    %46 = vector.extract_strided_slice %45 {offsets = [0, 0], sizes = [2, 32], strides = [1, 1]} : vector<2x128xf32> to vector<2x32xf32>
    %47 = arith.negf %46 : vector<2x32xf32>
    %48 = math.exp %47 : vector<2x32xf32>
    %cst_21 = arith.constant 1.000000e+00 : f32
    %49 = vector.broadcast %cst_21 : f32 to vector<2x32xf32>
    %50 = arith.addf %49, %48 : vector<2x32xf32>
    %51 = arith.divf %49, %50 : vector<2x32xf32>
    %52 = vector.extract_strided_slice %45 {offsets = [0, 32], sizes = [2, 32], strides = [1, 1]} : vector<2x128xf32> to vector<2x32xf32>
    %53 = arith.negf %52 : vector<2x32xf32>
    %54 = math.exp %53 : vector<2x32xf32>
    %cst_22 = arith.constant 1.000000e+00 : f32
    %55 = vector.broadcast %cst_22 : f32 to vector<2x32xf32>
    %56 = arith.addf %55, %54 : vector<2x32xf32>
    %57 = arith.divf %55, %56 : vector<2x32xf32>
    %58 = vector.extract_strided_slice %45 {offsets = [0, 64], sizes = [2, 32], strides = [1, 1]} : vector<2x128xf32> to vector<2x32xf32>
    %59 = math.tanh %58 : vector<2x32xf32>
    %60 = vector.extract_strided_slice %45 {offsets = [0, 96], sizes = [2, 32], strides = [1, 1]} : vector<2x128xf32> to vector<2x32xf32>
    %61 = arith.negf %60 : vector<2x32xf32>
    %62 = math.exp %61 : vector<2x32xf32>
    %cst_23 = arith.constant 1.000000e+00 : f32
    %63 = vector.broadcast %cst_23 : f32 to vector<2x32xf32>
    %64 = arith.addf %63, %62 : vector<2x32xf32>
    %65 = arith.divf %63, %64 : vector<2x32xf32>
    %66 = arith.mulf %57, %39 : vector<2x32xf32>
    %67 = arith.mulf %51, %59 : vector<2x32xf32>
    %68 = arith.addf %66, %67 : vector<2x32xf32>
    %69 = math.tanh %68 : vector<2x32xf32>
    %70 = arith.mulf %65, %69 : vector<2x32xf32>
    %c2 = arith.constant 2 : index
    %c0_24 = arith.constant 0 : index
    %71 = vector.load %arg16[%c2, %c0_24] : memref<16x32xf32, #tpu.memory_space<vmem>>, vector<2x32xf32>
    tpu.vector_store %arg16[%c2, %c0_24], %70 {strides = array<i32>} : memref<16x32xf32, #tpu.memory_space<vmem>>, vector<2x32xf32>,
    %72 = vector.extract_strided_slice %5 {offsets = [4, 0], sizes = [2, 128], strides = [1, 1]} : vector<16x128xf32> to vector<2x128xf32>
    %cst_25 = arith.constant dense<0.000000e+00> : vector<2x128xf32>
    %73 = tpu.matmul %70, %11, %cst_25 {dimension_numbers = #tpu.dot_dimension_numbers<[1], [0], [0], [1], [0, 0, 1, 1], [], []>} : vector<2x32xf32>, vector<32x128xf32>, vector<2x128xf32> -> vector<2x128xf32>
    %74 = arith.addf %72, %73 : vector<2x128xf32>
    %75 = vector.extract_strided_slice %74 {offsets = [0, 0], sizes = [2, 32], strides = [1, 1]} : vector<2x128xf32> to vector<2x32xf32>
    %76 = arith.negf %75 : vector<2x32xf32>
    %77 = math.exp %76 : vector<2x32xf32>
    %cst_26 = arith.constant 1.000000e+00 : f32
    %78 = vector.broadcast %cst_26 : f32 to vector<2x32xf32>
    %79 = arith.addf %78, %77 : vector<2x32xf32>
    %80 = arith.divf %78, %79 : vector<2x32xf32>
    %81 = vector.extract_strided_slice %74 {offsets = [0, 32], sizes = [2, 32], strides = [1, 1]} : vector<2x128xf32> to vector<2x32xf32>
    %82 = arith.negf %81 : vector<2x32xf32>
    %83 = math.exp %82 : vector<2x32xf32>
    %cst_27 = arith.constant 1.000000e+00 : f32
    %84 = vector.broadcast %cst_27 : f32 to vector<2x32xf32>
    %85 = arith.addf %84, %83 : vector<2x32xf32>
    %86 = arith.divf %84, %85 : vector<2x32xf32>
    %87 = vector.extract_strided_slice %74 {offsets = [0, 64], sizes = [2, 32], strides = [1, 1]} : vector<2x128xf32> to vector<2x32xf32>
    %88 = math.tanh %87 : vector<2x32xf32>
    %89 = vector.extract_strided_slice %74 {offsets = [0, 96], sizes = [2, 32], strides = [1, 1]} : vector<2x128xf32> to vector<2x32xf32>
    %90 = arith.negf %89 : vector<2x32xf32>
    %91 = math.exp %90 : vector<2x32xf32>
    %cst_28 = arith.constant 1.000000e+00 : f32
    %92 = vector.broadcast %cst_28 : f32 to vector<2x32xf32>
    %93 = arith.addf %92, %91 : vector<2x32xf32>
    %94 = arith.divf %92, %93 : vector<2x32xf32>
    %95 = arith.mulf %86, %68 : vector<2x32xf32>
    %96 = arith.mulf %80, %88 : vector<2x32xf32>
    %97 = arith.addf %95, %96 : vector<2x32xf32>
    %98 = math.tanh %97 : vector<2x32xf32>
    %99 = arith.mulf %94, %98 : vector<2x32xf32>
    %c4 = arith.constant 4 : index
    %c0_29 = arith.constant 0 : index
    %100 = vector.load %arg16[%c4, %c0_29] : memref<16x32xf32, #tpu.memory_space<vmem>>, vector<2x32xf32>
    tpu.vector_store %arg16[%c4, %c0_29], %99 {strides = array<i32>} : memref<16x32xf32, #tpu.memory_space<vmem>>, vector<2x32xf32>,
    %101 = vector.extract_strided_slice %5 {offsets = [6, 0], sizes = [2, 128], strides = [1, 1]} : vector<16x128xf32> to vector<2x128xf32>
    %cst_30 = arith.constant dense<0.000000e+00> : vector<2x128xf32>
    %102 = tpu.matmul %99, %11, %cst_30 {dimension_numbers = #tpu.dot_dimension_numbers<[1], [0], [0], [1], [0, 0, 1, 1], [], []>} : vector<2x32xf32>, vector<32x128xf32>, vector<2x128xf32> -> vector<2x128xf32>
    %103 = arith.addf %101, %102 : vector<2x128xf32>
    %104 = vector.extract_strided_slice %103 {offsets = [0, 0], sizes = [2, 32], strides = [1, 1]} : vector<2x128xf32> to vector<2x32xf32>
    %105 = arith.negf %104 : vector<2x32xf32>
    %106 = math.exp %105 : vector<2x32xf32>
    %cst_31 = arith.constant 1.000000e+00 : f32
    %107 = vector.broadcast %cst_31 : f32 to vector<2x32xf32>
    %108 = arith.addf %107, %106 : vector<2x32xf32>
    %109 = arith.divf %107, %108 : vector<2x32xf32>
    %110 = vector.extract_strided_slice %103 {offsets = [0, 32], sizes = [2, 32], strides = [1, 1]} : vector<2x128xf32> to vector<2x32xf32>
    %111 = arith.negf %110 : vector<2x32xf32>
    %112 = math.exp %111 : vector<2x32xf32>
    %cst_32 = arith.constant 1.000000e+00 : f32
    %113 = vector.broadcast %cst_32 : f32 to vector<2x32xf32>
    %114 = arith.addf %113, %112 : vector<2x32xf32>
    %115 = arith.divf %113, %114 : vector<2x32xf32>
    %116 = vector.extract_strided_slice %103 {offsets = [0, 64], sizes = [2, 32], strides = [1, 1]} : vector<2x128xf32> to vector<2x32xf32>
    %117 = math.tanh %116 : vector<2x32xf32>
    %118 = vector.extract_strided_slice %103 {offsets = [0, 96], sizes = [2, 32], strides = [1, 1]} : vector<2x128xf32> to vector<2x32xf32>
    %119 = arith.negf %118 : vector<2x32xf32>
    %120 = math.exp %119 : vector<2x32xf32>
    %cst_33 = arith.constant 1.000000e+00 : f32
    %121 = vector.broadcast %cst_33 : f32 to vector<2x32xf32>
    %122 = arith.addf %121, %120 : vector<2x32xf32>
    %123 = arith.divf %121, %122 : vector<2x32xf32>
    %124 = arith.mulf %115, %97 : vector<2x32xf32>
    %125 = arith.mulf %109, %117 : vector<2x32xf32>
    %126 = arith.addf %124, %125 : vector<2x32xf32>
    %127 = math.tanh %126 : vector<2x32xf32>
    %128 = arith.mulf %123, %127 : vector<2x32xf32>
    %c6 = arith.constant 6 : index
    %c0_34 = arith.constant 0 : index
    %129 = vector.load %arg16[%c6, %c0_34] : memref<16x32xf32, #tpu.memory_space<vmem>>, vector<2x32xf32>
    tpu.vector_store %arg16[%c6, %c0_34], %128 {strides = array<i32>} : memref<16x32xf32, #tpu.memory_space<vmem>>, vector<2x32xf32>,
    %130 = vector.extract_strided_slice %5 {offsets = [8, 0], sizes = [2, 128], strides = [1, 1]} : vector<16x128xf32> to vector<2x128xf32>
    %cst_35 = arith.constant dense<0.000000e+00> : vector<2x128xf32>
    %131 = tpu.matmul %128, %11, %cst_35 {dimension_numbers = #tpu.dot_dimension_numbers<[1], [0], [0], [1], [0, 0, 1, 1], [], []>} : vector<2x32xf32>, vector<32x128xf32>, vector<2x128xf32> -> vector<2x128xf32>
    %132 = arith.addf %130, %131 : vector<2x128xf32>
    %133 = vector.extract_strided_slice %132 {offsets = [0, 0], sizes = [2, 32], strides = [1, 1]} : vector<2x128xf32> to vector<2x32xf32>
    %134 = arith.negf %133 : vector<2x32xf32>
    %135 = math.exp %134 : vector<2x32xf32>
    %cst_36 = arith.constant 1.000000e+00 : f32
    %136 = vector.broadcast %cst_36 : f32 to vector<2x32xf32>
    %137 = arith.addf %136, %135 : vector<2x32xf32>
    %138 = arith.divf %136, %137 : vector<2x32xf32>
    %139 = vector.extract_strided_slice %132 {offsets = [0, 32], sizes = [2, 32], strides = [1, 1]} : vector<2x128xf32> to vector<2x32xf32>
    %140 = arith.negf %139 : vector<2x32xf32>
    %141 = math.exp %140 : vector<2x32xf32>
    %cst_37 = arith.constant 1.000000e+00 : f32
    %142 = vector.broadcast %cst_37 : f32 to vector<2x32xf32>
    %143 = arith.addf %142, %141 : vector<2x32xf32>
    %144 = arith.divf %142, %143 : vector<2x32xf32>
    %145 = vector.extract_strided_slice %132 {offsets = [0, 64], sizes = [2, 32], strides = [1, 1]} : vector<2x128xf32> to vector<2x32xf32>
    %146 = math.tanh %145 : vector<2x32xf32>
    %147 = vector.extract_strided_slice %132 {offsets = [0, 96], sizes = [2, 32], strides = [1, 1]} : vector<2x128xf32> to vector<2x32xf32>
    %148 = arith.negf %147 : vector<2x32xf32>
    %149 = math.exp %148 : vector<2x32xf32>
    %cst_38 = arith.constant 1.000000e+00 : f32
    %150 = vector.broadcast %cst_38 : f32 to vector<2x32xf32>
    %151 = arith.addf %150, %149 : vector<2x32xf32>
    %152 = arith.divf %150, %151 : vector<2x32xf32>
    %153 = arith.mulf %144, %126 : vector<2x32xf32>
    %154 = arith.mulf %138, %146 : vector<2x32xf32>
    %155 = arith.addf %153, %154 : vector<2x32xf32>
    %156 = math.tanh %155 : vector<2x32xf32>
    %157 = arith.mulf %152, %156 : vector<2x32xf32>
    %c8 = arith.constant 8 : index
    %c0_39 = arith.constant 0 : index
    %158 = vector.load %arg16[%c8, %c0_39] : memref<16x32xf32, #tpu.memory_space<vmem>>, vector<2x32xf32>
    tpu.vector_store %arg16[%c8, %c0_39], %157 {strides = array<i32>} : memref<16x32xf32, #tpu.memory_space<vmem>>, vector<2x32xf32>,
    %159 = vector.extract_strided_slice %5 {offsets = [10, 0], sizes = [2, 128], strides = [1, 1]} : vector<16x128xf32> to vector<2x128xf32>
    %cst_40 = arith.constant dense<0.000000e+00> : vector<2x128xf32>
    %160 = tpu.matmul %157, %11, %cst_40 {dimension_numbers = #tpu.dot_dimension_numbers<[1], [0], [0], [1], [0, 0, 1, 1], [], []>} : vector<2x32xf32>, vector<32x128xf32>, vector<2x128xf32> -> vector<2x128xf32>
    %161 = arith.addf %159, %160 : vector<2x128xf32>
    %162 = vector.extract_strided_slice %161 {offsets = [0, 0], sizes = [2, 32], strides = [1, 1]} : vector<2x128xf32> to vector<2x32xf32>
    %163 = arith.negf %162 : vector<2x32xf32>
    %164 = math.exp %163 : vector<2x32xf32>
    %cst_41 = arith.constant 1.000000e+00 : f32
    %165 = vector.broadcast %cst_41 : f32 to vector<2x32xf32>
    %166 = arith.addf %165, %164 : vector<2x32xf32>
    %167 = arith.divf %165, %166 : vector<2x32xf32>
    %168 = vector.extract_strided_slice %161 {offsets = [0, 32], sizes = [2, 32], strides = [1, 1]} : vector<2x128xf32> to vector<2x32xf32>
    %169 = arith.negf %168 : vector<2x32xf32>
    %170 = math.exp %169 : vector<2x32xf32>
    %cst_42 = arith.constant 1.000000e+00 : f32
    %171 = vector.broadcast %cst_42 : f32 to vector<2x32xf32>
    %172 = arith.addf %171, %170 : vector<2x32xf32>
    %173 = arith.divf %171, %172 : vector<2x32xf32>
    %174 = vector.extract_strided_slice %161 {offsets = [0, 64], sizes = [2, 32], strides = [1, 1]} : vector<2x128xf32> to vector<2x32xf32>
    %175 = math.tanh %174 : vector<2x32xf32>
    %176 = vector.extract_strided_slice %161 {offsets = [0, 96], sizes = [2, 32], strides = [1, 1]} : vector<2x128xf32> to vector<2x32xf32>
    %177 = arith.negf %176 : vector<2x32xf32>
    %178 = math.exp %177 : vector<2x32xf32>
    %cst_43 = arith.constant 1.000000e+00 : f32
    %179 = vector.broadcast %cst_43 : f32 to vector<2x32xf32>
    %180 = arith.addf %179, %178 : vector<2x32xf32>
    %181 = arith.divf %179, %180 : vector<2x32xf32>
    %182 = arith.mulf %173, %155 : vector<2x32xf32>
    %183 = arith.mulf %167, %175 : vector<2x32xf32>
    %184 = arith.addf %182, %183 : vector<2x32xf32>
    %185 = math.tanh %184 : vector<2x32xf32>
    %186 = arith.mulf %181, %185 : vector<2x32xf32>
    %c10 = arith.constant 10 : index
    %c0_44 = arith.constant 0 : index
    %187 = vector.load %arg16[%c10, %c0_44] : memref<16x32xf32, #tpu.memory_space<vmem>>, vector<2x32xf32>
    tpu.vector_store %arg16[%c10, %c0_44], %186 {strides = array<i32>} : memref<16x32xf32, #tpu.memory_space<vmem>>, vector<2x32xf32>,
    %188 = vector.extract_strided_slice %5 {offsets = [12, 0], sizes = [2, 128], strides = [1, 1]} : vector<16x128xf32> to vector<2x128xf32>
    %cst_45 = arith.constant dense<0.000000e+00> : vector<2x128xf32>
    %189 = tpu.matmul %186, %11, %cst_45 {dimension_numbers = #tpu.dot_dimension_numbers<[1], [0], [0], [1], [0, 0, 1, 1], [], []>} : vector<2x32xf32>, vector<32x128xf32>, vector<2x128xf32> -> vector<2x128xf32>
    %190 = arith.addf %188, %189 : vector<2x128xf32>
    %191 = vector.extract_strided_slice %190 {offsets = [0, 0], sizes = [2, 32], strides = [1, 1]} : vector<2x128xf32> to vector<2x32xf32>
    %192 = arith.negf %191 : vector<2x32xf32>
    %193 = math.exp %192 : vector<2x32xf32>
    %cst_46 = arith.constant 1.000000e+00 : f32
    %194 = vector.broadcast %cst_46 : f32 to vector<2x32xf32>
    %195 = arith.addf %194, %193 : vector<2x32xf32>
    %196 = arith.divf %194, %195 : vector<2x32xf32>
    %197 = vector.extract_strided_slice %190 {offsets = [0, 32], sizes = [2, 32], strides = [1, 1]} : vector<2x128xf32> to vector<2x32xf32>
    %198 = arith.negf %197 : vector<2x32xf32>
    %199 = math.exp %198 : vector<2x32xf32>
    %cst_47 = arith.constant 1.000000e+00 : f32
    %200 = vector.broadcast %cst_47 : f32 to vector<2x32xf32>
    %201 = arith.addf %200, %199 : vector<2x32xf32>
    %202 = arith.divf %200, %201 : vector<2x32xf32>
    %203 = vector.extract_strided_slice %190 {offsets = [0, 64], sizes = [2, 32], strides = [1, 1]} : vector<2x128xf32> to vector<2x32xf32>
    %204 = math.tanh %203 : vector<2x32xf32>
    %205 = vector.extract_strided_slice %190 {offsets = [0, 96], sizes = [2, 32], strides = [1, 1]} : vector<2x128xf32> to vector<2x32xf32>
    %206 = arith.negf %205 : vector<2x32xf32>
    %207 = math.exp %206 : vector<2x32xf32>
    %cst_48 = arith.constant 1.000000e+00 : f32
    %208 = vector.broadcast %cst_48 : f32 to vector<2x32xf32>
    %209 = arith.addf %208, %207 : vector<2x32xf32>
    %210 = arith.divf %208, %209 : vector<2x32xf32>
    %211 = arith.mulf %202, %184 : vector<2x32xf32>
    %212 = arith.mulf %196, %204 : vector<2x32xf32>
    %213 = arith.addf %211, %212 : vector<2x32xf32>
    %214 = math.tanh %213 : vector<2x32xf32>
    %215 = arith.mulf %210, %214 : vector<2x32xf32>
    %c12 = arith.constant 12 : index
    %c0_49 = arith.constant 0 : index
    %216 = vector.load %arg16[%c12, %c0_49] : memref<16x32xf32, #tpu.memory_space<vmem>>, vector<2x32xf32>
    tpu.vector_store %arg16[%c12, %c0_49], %215 {strides = array<i32>} : memref<16x32xf32, #tpu.memory_space<vmem>>, vector<2x32xf32>,
    %217 = vector.extract_strided_slice %5 {offsets = [14, 0], sizes = [2, 128], strides = [1, 1]} : vector<16x128xf32> to vector<2x128xf32>
    %cst_50 = arith.constant dense<0.000000e+00> : vector<2x128xf32>
    %218 = tpu.matmul %215, %11, %cst_50 {dimension_numbers = #tpu.dot_dimension_numbers<[1], [0], [0], [1], [0, 0, 1, 1], [], []>} : vector<2x32xf32>, vector<32x128xf32>, vector<2x128xf32> -> vector<2x128xf32>
    %219 = arith.addf %217, %218 : vector<2x128xf32>
    %220 = vector.extract_strided_slice %219 {offsets = [0, 0], sizes = [2, 32], strides = [1, 1]} : vector<2x128xf32> to vector<2x32xf32>
    %221 = arith.negf %220 : vector<2x32xf32>
    %222 = math.exp %221 : vector<2x32xf32>
    %cst_51 = arith.constant 1.000000e+00 : f32
    %223 = vector.broadcast %cst_51 : f32 to vector<2x32xf32>
    %224 = arith.addf %223, %222 : vector<2x32xf32>
    %225 = arith.divf %223, %224 : vector<2x32xf32>
    %226 = vector.extract_strided_slice %219 {offsets = [0, 32], sizes = [2, 32], strides = [1, 1]} : vector<2x128xf32> to vector<2x32xf32>
    %227 = arith.negf %226 : vector<2x32xf32>
    %228 = math.exp %227 : vector<2x32xf32>
    %cst_52 = arith.constant 1.000000e+00 : f32
    %229 = vector.broadcast %cst_52 : f32 to vector<2x32xf32>
    %230 = arith.addf %229, %228 : vector<2x32xf32>
    %231 = arith.divf %229, %230 : vector<2x32xf32>
    %232 = vector.extract_strided_slice %219 {offsets = [0, 64], sizes = [2, 32], strides = [1, 1]} : vector<2x128xf32> to vector<2x32xf32>
    %233 = math.tanh %232 : vector<2x32xf32>
    %234 = vector.extract_strided_slice %219 {offsets = [0, 96], sizes = [2, 32], strides = [1, 1]} : vector<2x128xf32> to vector<2x32xf32>
    %235 = arith.negf %234 : vector<2x32xf32>
    %236 = math.exp %235 : vector<2x32xf32>
    %cst_53 = arith.constant 1.000000e+00 : f32
    %237 = vector.broadcast %cst_53 : f32 to vector<2x32xf32>
    %238 = arith.addf %237, %236 : vector<2x32xf32>
    %239 = arith.divf %237, %238 : vector<2x32xf32>
    %240 = arith.mulf %231, %213 : vector<2x32xf32>
    %241 = arith.mulf %225, %233 : vector<2x32xf32>
    %242 = arith.addf %240, %241 : vector<2x32xf32>
    %243 = math.tanh %242 : vector<2x32xf32>
    %244 = arith.mulf %239, %243 : vector<2x32xf32>
    %c14 = arith.constant 14 : index
    %c0_54 = arith.constant 0 : index
    %245 = vector.load %arg16[%c14, %c0_54] : memref<16x32xf32, #tpu.memory_space<vmem>>, vector<2x32xf32>
    tpu.vector_store %arg16[%c14, %c0_54], %244 {strides = array<i32>} : memref<16x32xf32, #tpu.memory_space<vmem>>, vector<2x32xf32>,
    %c0_55 = arith.constant 0 : index
    %c0_56 = arith.constant 0 : index
    %246 = vector.load %arg5[%c0_55, %c0_56] : memref<32x128xf32, #tpu.memory_space<vmem>>, vector<32x128xf32>
    %cst_57 = arith.constant 0.000000e+00 : f32
    %247 = vector.broadcast %cst_57 : f32 to vector<2x32xf32>
    %cst_58 = arith.constant 0.000000e+00 : f32
    %248 = vector.broadcast %cst_58 : f32 to vector<2x32xf32>
    %249 = vector.extract_strided_slice %10 {offsets = [14, 0], sizes = [2, 128], strides = [1, 1]} : vector<16x128xf32> to vector<2x128xf32>
    %cst_59 = arith.constant dense<0.000000e+00> : vector<2x128xf32>
    %250 = tpu.matmul %247, %246, %cst_59 {dimension_numbers = #tpu.dot_dimension_numbers<[1], [0], [0], [1], [0, 0, 1, 1], [], []>} : vector<2x32xf32>, vector<32x128xf32>, vector<2x128xf32> -> vector<2x128xf32>
    %251 = arith.addf %249, %250 : vector<2x128xf32>
    %252 = vector.extract_strided_slice %251 {offsets = [0, 0], sizes = [2, 32], strides = [1, 1]} : vector<2x128xf32> to vector<2x32xf32>
    %253 = arith.negf %252 : vector<2x32xf32>
    %254 = math.exp %253 : vector<2x32xf32>
    %cst_60 = arith.constant 1.000000e+00 : f32
    %255 = vector.broadcast %cst_60 : f32 to vector<2x32xf32>
    %256 = arith.addf %255, %254 : vector<2x32xf32>
    %257 = arith.divf %255, %256 : vector<2x32xf32>
    %258 = vector.extract_strided_slice %251 {offsets = [0, 32], sizes = [2, 32], strides = [1, 1]} : vector<2x128xf32> to vector<2x32xf32>
    %259 = arith.negf %258 : vector<2x32xf32>
    %260 = math.exp %259 : vector<2x32xf32>
    %cst_61 = arith.constant 1.000000e+00 : f32
    %261 = vector.broadcast %cst_61 : f32 to vector<2x32xf32>
    %262 = arith.addf %261, %260 : vector<2x32xf32>
    %263 = arith.divf %261, %262 : vector<2x32xf32>
    %264 = vector.extract_strided_slice %251 {offsets = [0, 64], sizes = [2, 32], strides = [1, 1]} : vector<2x128xf32> to vector<2x32xf32>
    %265 = math.tanh %264 : vector<2x32xf32>
    %266 = vector.extract_strided_slice %251 {offsets = [0, 96], sizes = [2, 32], strides = [1, 1]} : vector<2x128xf32> to vector<2x32xf32>
    %267 = arith.negf %266 : vector<2x32xf32>
    %268 = math.exp %267 : vector<2x32xf32>
    %cst_62 = arith.constant 1.000000e+00 : f32
    %269 = vector.broadcast %cst_62 : f32 to vector<2x32xf32>
    %270 = arith.addf %269, %268 : vector<2x32xf32>
    %271 = arith.divf %269, %270 : vector<2x32xf32>
    %272 = arith.mulf %263, %248 : vector<2x32xf32>
    %273 = arith.mulf %257, %265 : vector<2x32xf32>
    %274 = arith.addf %272, %273 : vector<2x32xf32>
    %275 = math.tanh %274 : vector<2x32xf32>
    %276 = arith.mulf %271, %275 : vector<2x32xf32>
    %c14_63 = arith.constant 14 : index
    %c0_64 = arith.constant 0 : index
    %277 = vector.load %arg17[%c14_63, %c0_64] : memref<16x32xf32, #tpu.memory_space<vmem>>, vector<2x32xf32>
    tpu.vector_store %arg17[%c14_63, %c0_64], %276 {strides = array<i32>} : memref<16x32xf32, #tpu.memory_space<vmem>>, vector<2x32xf32>,
    %278 = vector.extract_strided_slice %10 {offsets = [12, 0], sizes = [2, 128], strides = [1, 1]} : vector<16x128xf32> to vector<2x128xf32>
    %cst_65 = arith.constant dense<0.000000e+00> : vector<2x128xf32>
    %279 = tpu.matmul %276, %246, %cst_65 {dimension_numbers = #tpu.dot_dimension_numbers<[1], [0], [0], [1], [0, 0, 1, 1], [], []>} : vector<2x32xf32>, vector<32x128xf32>, vector<2x128xf32> -> vector<2x128xf32>
    %280 = arith.addf %278, %279 : vector<2x128xf32>
    %281 = vector.extract_strided_slice %280 {offsets = [0, 0], sizes = [2, 32], strides = [1, 1]} : vector<2x128xf32> to vector<2x32xf32>
    %282 = arith.negf %281 : vector<2x32xf32>
    %283 = math.exp %282 : vector<2x32xf32>
    %cst_66 = arith.constant 1.000000e+00 : f32
    %284 = vector.broadcast %cst_66 : f32 to vector<2x32xf32>
    %285 = arith.addf %284, %283 : vector<2x32xf32>
    %286 = arith.divf %284, %285 : vector<2x32xf32>
    %287 = vector.extract_strided_slice %280 {offsets = [0, 32], sizes = [2, 32], strides = [1, 1]} : vector<2x128xf32> to vector<2x32xf32>
    %288 = arith.negf %287 : vector<2x32xf32>
    %289 = math.exp %288 : vector<2x32xf32>
    %cst_67 = arith.constant 1.000000e+00 : f32
    %290 = vector.broadcast %cst_67 : f32 to vector<2x32xf32>
    %291 = arith.addf %290, %289 : vector<2x32xf32>
    %292 = arith.divf %290, %291 : vector<2x32xf32>
    %293 = vector.extract_strided_slice %280 {offsets = [0, 64], sizes = [2, 32], strides = [1, 1]} : vector<2x128xf32> to vector<2x32xf32>
    %294 = math.tanh %293 : vector<2x32xf32>
    %295 = vector.extract_strided_slice %280 {offsets = [0, 96], sizes = [2, 32], strides = [1, 1]} : vector<2x128xf32> to vector<2x32xf32>
    %296 = arith.negf %295 : vector<2x32xf32>
    %297 = math.exp %296 : vector<2x32xf32>
    %cst_68 = arith.constant 1.000000e+00 : f32
    %298 = vector.broadcast %cst_68 : f32 to vector<2x32xf32>
    %299 = arith.addf %298, %297 : vector<2x32xf32>
    %300 = arith.divf %298, %299 : vector<2x32xf32>
    %301 = arith.mulf %292, %274 : vector<2x32xf32>
    %302 = arith.mulf %286, %294 : vector<2x32xf32>
    %303 = arith.addf %301, %302 : vector<2x32xf32>
    %304 = math.tanh %303 : vector<2x32xf32>
    %305 = arith.mulf %300, %304 : vector<2x32xf32>
    %c12_69 = arith.constant 12 : index
    %c0_70 = arith.constant 0 : index
    %306 = vector.load %arg17[%c12_69, %c0_70] : memref<16x32xf32, #tpu.memory_space<vmem>>, vector<2x32xf32>
    tpu.vector_store %arg17[%c12_69, %c0_70], %305 {strides = array<i32>} : memref<16x32xf32, #tpu.memory_space<vmem>>, vector<2x32xf32>,
    %307 = vector.extract_strided_slice %10 {offsets = [10, 0], sizes = [2, 128], strides = [1, 1]} : vector<16x128xf32> to vector<2x128xf32>
    %cst_71 = arith.constant dense<0.000000e+00> : vector<2x128xf32>
    %308 = tpu.matmul %305, %246, %cst_71 {dimension_numbers = #tpu.dot_dimension_numbers<[1], [0], [0], [1], [0, 0, 1, 1], [], []>} : vector<2x32xf32>, vector<32x128xf32>, vector<2x128xf32> -> vector<2x128xf32>
    %309 = arith.addf %307, %308 : vector<2x128xf32>
    %310 = vector.extract_strided_slice %309 {offsets = [0, 0], sizes = [2, 32], strides = [1, 1]} : vector<2x128xf32> to vector<2x32xf32>
    %311 = arith.negf %310 : vector<2x32xf32>
    %312 = math.exp %311 : vector<2x32xf32>
    %cst_72 = arith.constant 1.000000e+00 : f32
    %313 = vector.broadcast %cst_72 : f32 to vector<2x32xf32>
    %314 = arith.addf %313, %312 : vector<2x32xf32>
    %315 = arith.divf %313, %314 : vector<2x32xf32>
    %316 = vector.extract_strided_slice %309 {offsets = [0, 32], sizes = [2, 32], strides = [1, 1]} : vector<2x128xf32> to vector<2x32xf32>
    %317 = arith.negf %316 : vector<2x32xf32>
    %318 = math.exp %317 : vector<2x32xf32>
    %cst_73 = arith.constant 1.000000e+00 : f32
    %319 = vector.broadcast %cst_73 : f32 to vector<2x32xf32>
    %320 = arith.addf %319, %318 : vector<2x32xf32>
    %321 = arith.divf %319, %320 : vector<2x32xf32>
    %322 = vector.extract_strided_slice %309 {offsets = [0, 64], sizes = [2, 32], strides = [1, 1]} : vector<2x128xf32> to vector<2x32xf32>
    %323 = math.tanh %322 : vector<2x32xf32>
    %324 = vector.extract_strided_slice %309 {offsets = [0, 96], sizes = [2, 32], strides = [1, 1]} : vector<2x128xf32> to vector<2x32xf32>
    %325 = arith.negf %324 : vector<2x32xf32>
    %326 = math.exp %325 : vector<2x32xf32>
    %cst_74 = arith.constant 1.000000e+00 : f32
    %327 = vector.broadcast %cst_74 : f32 to vector<2x32xf32>
    %328 = arith.addf %327, %326 : vector<2x32xf32>
    %329 = arith.divf %327, %328 : vector<2x32xf32>
    %330 = arith.mulf %321, %303 : vector<2x32xf32>
    %331 = arith.mulf %315, %323 : vector<2x32xf32>
    %332 = arith.addf %330, %331 : vector<2x32xf32>
    %333 = math.tanh %332 : vector<2x32xf32>
    %334 = arith.mulf %329, %333 : vector<2x32xf32>
    %c10_75 = arith.constant 10 : index
    %c0_76 = arith.constant 0 : index
    %335 = vector.load %arg17[%c10_75, %c0_76] : memref<16x32xf32, #tpu.memory_space<vmem>>, vector<2x32xf32>
    tpu.vector_store %arg17[%c10_75, %c0_76], %334 {strides = array<i32>} : memref<16x32xf32, #tpu.memory_space<vmem>>, vector<2x32xf32>,
    %336 = vector.extract_strided_slice %10 {offsets = [8, 0], sizes = [2, 128], strides = [1, 1]} : vector<16x128xf32> to vector<2x128xf32>
    %cst_77 = arith.constant dense<0.000000e+00> : vector<2x128xf32>
    %337 = tpu.matmul %334, %246, %cst_77 {dimension_numbers = #tpu.dot_dimension_numbers<[1], [0], [0], [1], [0, 0, 1, 1], [], []>} : vector<2x32xf32>, vector<32x128xf32>, vector<2x128xf32> -> vector<2x128xf32>
    %338 = arith.addf %336, %337 : vector<2x128xf32>
    %339 = vector.extract_strided_slice %338 {offsets = [0, 0], sizes = [2, 32], strides = [1, 1]} : vector<2x128xf32> to vector<2x32xf32>
    %340 = arith.negf %339 : vector<2x32xf32>
    %341 = math.exp %340 : vector<2x32xf32>
    %cst_78 = arith.constant 1.000000e+00 : f32
    %342 = vector.broadcast %cst_78 : f32 to vector<2x32xf32>
    %343 = arith.addf %342, %341 : vector<2x32xf32>
    %344 = arith.divf %342, %343 : vector<2x32xf32>
    %345 = vector.extract_strided_slice %338 {offsets = [0, 32], sizes = [2, 32], strides = [1, 1]} : vector<2x128xf32> to vector<2x32xf32>
    %346 = arith.negf %345 : vector<2x32xf32>
    %347 = math.exp %346 : vector<2x32xf32>
    %cst_79 = arith.constant 1.000000e+00 : f32
    %348 = vector.broadcast %cst_79 : f32 to vector<2x32xf32>
    %349 = arith.addf %348, %347 : vector<2x32xf32>
    %350 = arith.divf %348, %349 : vector<2x32xf32>
    %351 = vector.extract_strided_slice %338 {offsets = [0, 64], sizes = [2, 32], strides = [1, 1]} : vector<2x128xf32> to vector<2x32xf32>
    %352 = math.tanh %351 : vector<2x32xf32>
    %353 = vector.extract_strided_slice %338 {offsets = [0, 96], sizes = [2, 32], strides = [1, 1]} : vector<2x128xf32> to vector<2x32xf32>
    %354 = arith.negf %353 : vector<2x32xf32>
    %355 = math.exp %354 : vector<2x32xf32>
    %cst_80 = arith.constant 1.000000e+00 : f32
    %356 = vector.broadcast %cst_80 : f32 to vector<2x32xf32>
    %357 = arith.addf %356, %355 : vector<2x32xf32>
    %358 = arith.divf %356, %357 : vector<2x32xf32>
    %359 = arith.mulf %350, %332 : vector<2x32xf32>
    %360 = arith.mulf %344, %352 : vector<2x32xf32>
    %361 = arith.addf %359, %360 : vector<2x32xf32>
    %362 = math.tanh %361 : vector<2x32xf32>
    %363 = arith.mulf %358, %362 : vector<2x32xf32>
    %c8_81 = arith.constant 8 : index
    %c0_82 = arith.constant 0 : index
    %364 = vector.load %arg17[%c8_81, %c0_82] : memref<16x32xf32, #tpu.memory_space<vmem>>, vector<2x32xf32>
    tpu.vector_store %arg17[%c8_81, %c0_82], %363 {strides = array<i32>} : memref<16x32xf32, #tpu.memory_space<vmem>>, vector<2x32xf32>,
    %365 = vector.extract_strided_slice %10 {offsets = [6, 0], sizes = [2, 128], strides = [1, 1]} : vector<16x128xf32> to vector<2x128xf32>
    %cst_83 = arith.constant dense<0.000000e+00> : vector<2x128xf32>
    %366 = tpu.matmul %363, %246, %cst_83 {dimension_numbers = #tpu.dot_dimension_numbers<[1], [0], [0], [1], [0, 0, 1, 1], [], []>} : vector<2x32xf32>, vector<32x128xf32>, vector<2x128xf32> -> vector<2x128xf32>
    %367 = arith.addf %365, %366 : vector<2x128xf32>
    %368 = vector.extract_strided_slice %367 {offsets = [0, 0], sizes = [2, 32], strides = [1, 1]} : vector<2x128xf32> to vector<2x32xf32>
    %369 = arith.negf %368 : vector<2x32xf32>
    %370 = math.exp %369 : vector<2x32xf32>
    %cst_84 = arith.constant 1.000000e+00 : f32
    %371 = vector.broadcast %cst_84 : f32 to vector<2x32xf32>
    %372 = arith.addf %371, %370 : vector<2x32xf32>
    %373 = arith.divf %371, %372 : vector<2x32xf32>
    %374 = vector.extract_strided_slice %367 {offsets = [0, 32], sizes = [2, 32], strides = [1, 1]} : vector<2x128xf32> to vector<2x32xf32>
    %375 = arith.negf %374 : vector<2x32xf32>
    %376 = math.exp %375 : vector<2x32xf32>
    %cst_85 = arith.constant 1.000000e+00 : f32
    %377 = vector.broadcast %cst_85 : f32 to vector<2x32xf32>
    %378 = arith.addf %377, %376 : vector<2x32xf32>
    %379 = arith.divf %377, %378 : vector<2x32xf32>
    %380 = vector.extract_strided_slice %367 {offsets = [0, 64], sizes = [2, 32], strides = [1, 1]} : vector<2x128xf32> to vector<2x32xf32>
    %381 = math.tanh %380 : vector<2x32xf32>
    %382 = vector.extract_strided_slice %367 {offsets = [0, 96], sizes = [2, 32], strides = [1, 1]} : vector<2x128xf32> to vector<2x32xf32>
    %383 = arith.negf %382 : vector<2x32xf32>
    %384 = math.exp %383 : vector<2x32xf32>
    %cst_86 = arith.constant 1.000000e+00 : f32
    %385 = vector.broadcast %cst_86 : f32 to vector<2x32xf32>
    %386 = arith.addf %385, %384 : vector<2x32xf32>
    %387 = arith.divf %385, %386 : vector<2x32xf32>
    %388 = arith.mulf %379, %361 : vector<2x32xf32>
    %389 = arith.mulf %373, %381 : vector<2x32xf32>
    %390 = arith.addf %388, %389 : vector<2x32xf32>
    %391 = math.tanh %390 : vector<2x32xf32>
    %392 = arith.mulf %387, %391 : vector<2x32xf32>
    %c6_87 = arith.constant 6 : index
    %c0_88 = arith.constant 0 : index
    %393 = vector.load %arg17[%c6_87, %c0_88] : memref<16x32xf32, #tpu.memory_space<vmem>>, vector<2x32xf32>
    tpu.vector_store %arg17[%c6_87, %c0_88], %392 {strides = array<i32>} : memref<16x32xf32, #tpu.memory_space<vmem>>, vector<2x32xf32>,
    %394 = vector.extract_strided_slice %10 {offsets = [4, 0], sizes = [2, 128], strides = [1, 1]} : vector<16x128xf32> to vector<2x128xf32>
    %cst_89 = arith.constant dense<0.000000e+00> : vector<2x128xf32>
    %395 = tpu.matmul %392, %246, %cst_89 {dimension_numbers = #tpu.dot_dimension_numbers<[1], [0], [0], [1], [0, 0, 1, 1], [], []>} : vector<2x32xf32>, vector<32x128xf32>, vector<2x128xf32> -> vector<2x128xf32>
    %396 = arith.addf %394, %395 : vector<2x128xf32>
    %397 = vector.extract_strided_slice %396 {offsets = [0, 0], sizes = [2, 32], strides = [1, 1]} : vector<2x128xf32> to vector<2x32xf32>
    %398 = arith.negf %397 : vector<2x32xf32>
    %399 = math.exp %398 : vector<2x32xf32>
    %cst_90 = arith.constant 1.000000e+00 : f32
    %400 = vector.broadcast %cst_90 : f32 to vector<2x32xf32>
    %401 = arith.addf %400, %399 : vector<2x32xf32>
    %402 = arith.divf %400, %401 : vector<2x32xf32>
    %403 = vector.extract_strided_slice %396 {offsets = [0, 32], sizes = [2, 32], strides = [1, 1]} : vector<2x128xf32> to vector<2x32xf32>
    %404 = arith.negf %403 : vector<2x32xf32>
    %405 = math.exp %404 : vector<2x32xf32>
    %cst_91 = arith.constant 1.000000e+00 : f32
    %406 = vector.broadcast %cst_91 : f32 to vector<2x32xf32>
    %407 = arith.addf %406, %405 : vector<2x32xf32>
    %408 = arith.divf %406, %407 : vector<2x32xf32>
    %409 = vector.extract_strided_slice %396 {offsets = [0, 64], sizes = [2, 32], strides = [1, 1]} : vector<2x128xf32> to vector<2x32xf32>
    %410 = math.tanh %409 : vector<2x32xf32>
    %411 = vector.extract_strided_slice %396 {offsets = [0, 96], sizes = [2, 32], strides = [1, 1]} : vector<2x128xf32> to vector<2x32xf32>
    %412 = arith.negf %411 : vector<2x32xf32>
    %413 = math.exp %412 : vector<2x32xf32>
    %cst_92 = arith.constant 1.000000e+00 : f32
    %414 = vector.broadcast %cst_92 : f32 to vector<2x32xf32>
    %415 = arith.addf %414, %413 : vector<2x32xf32>
    %416 = arith.divf %414, %415 : vector<2x32xf32>
    %417 = arith.mulf %408, %390 : vector<2x32xf32>
    %418 = arith.mulf %402, %410 : vector<2x32xf32>
    %419 = arith.addf %417, %418 : vector<2x32xf32>
    %420 = math.tanh %419 : vector<2x32xf32>
    %421 = arith.mulf %416, %420 : vector<2x32xf32>
    %c4_93 = arith.constant 4 : index
    %c0_94 = arith.constant 0 : index
    %422 = vector.load %arg17[%c4_93, %c0_94] : memref<16x32xf32, #tpu.memory_space<vmem>>, vector<2x32xf32>
    tpu.vector_store %arg17[%c4_93, %c0_94], %421 {strides = array<i32>} : memref<16x32xf32, #tpu.memory_space<vmem>>, vector<2x32xf32>,
    %423 = vector.extract_strided_slice %10 {offsets = [2, 0], sizes = [2, 128], strides = [1, 1]} : vector<16x128xf32> to vector<2x128xf32>
    %cst_95 = arith.constant dense<0.000000e+00> : vector<2x128xf32>
    %424 = tpu.matmul %421, %246, %cst_95 {dimension_numbers = #tpu.dot_dimension_numbers<[1], [0], [0], [1], [0, 0, 1, 1], [], []>} : vector<2x32xf32>, vector<32x128xf32>, vector<2x128xf32> -> vector<2x128xf32>
    %425 = arith.addf %423, %424 : vector<2x128xf32>
    %426 = vector.extract_strided_slice %425 {offsets = [0, 0], sizes = [2, 32], strides = [1, 1]} : vector<2x128xf32> to vector<2x32xf32>
    %427 = arith.negf %426 : vector<2x32xf32>
    %428 = math.exp %427 : vector<2x32xf32>
    %cst_96 = arith.constant 1.000000e+00 : f32
    %429 = vector.broadcast %cst_96 : f32 to vector<2x32xf32>
    %430 = arith.addf %429, %428 : vector<2x32xf32>
    %431 = arith.divf %429, %430 : vector<2x32xf32>
    %432 = vector.extract_strided_slice %425 {offsets = [0, 32], sizes = [2, 32], strides = [1, 1]} : vector<2x128xf32> to vector<2x32xf32>
    %433 = arith.negf %432 : vector<2x32xf32>
    %434 = math.exp %433 : vector<2x32xf32>
    %cst_97 = arith.constant 1.000000e+00 : f32
    %435 = vector.broadcast %cst_97 : f32 to vector<2x32xf32>
    %436 = arith.addf %435, %434 : vector<2x32xf32>
    %437 = arith.divf %435, %436 : vector<2x32xf32>
    %438 = vector.extract_strided_slice %425 {offsets = [0, 64], sizes = [2, 32], strides = [1, 1]} : vector<2x128xf32> to vector<2x32xf32>
    %439 = math.tanh %438 : vector<2x32xf32>
    %440 = vector.extract_strided_slice %425 {offsets = [0, 96], sizes = [2, 32], strides = [1, 1]} : vector<2x128xf32> to vector<2x32xf32>
    %441 = arith.negf %440 : vector<2x32xf32>
    %442 = math.exp %441 : vector<2x32xf32>
    %cst_98 = arith.constant 1.000000e+00 : f32
    %443 = vector.broadcast %cst_98 : f32 to vector<2x32xf32>
    %444 = arith.addf %443, %442 : vector<2x32xf32>
    %445 = arith.divf %443, %444 : vector<2x32xf32>
    %446 = arith.mulf %437, %419 : vector<2x32xf32>
    %447 = arith.mulf %431, %439 : vector<2x32xf32>
    %448 = arith.addf %446, %447 : vector<2x32xf32>
    %449 = math.tanh %448 : vector<2x32xf32>
    %450 = arith.mulf %445, %449 : vector<2x32xf32>
    %c2_99 = arith.constant 2 : index
    %c0_100 = arith.constant 0 : index
    %451 = vector.load %arg17[%c2_99, %c0_100] : memref<16x32xf32, #tpu.memory_space<vmem>>, vector<2x32xf32>
    tpu.vector_store %arg17[%c2_99, %c0_100], %450 {strides = array<i32>} : memref<16x32xf32, #tpu.memory_space<vmem>>, vector<2x32xf32>,
    %452 = vector.extract_strided_slice %10 {offsets = [0, 0], sizes = [2, 128], strides = [1, 1]} : vector<16x128xf32> to vector<2x128xf32>
    %cst_101 = arith.constant dense<0.000000e+00> : vector<2x128xf32>
    %453 = tpu.matmul %450, %246, %cst_101 {dimension_numbers = #tpu.dot_dimension_numbers<[1], [0], [0], [1], [0, 0, 1, 1], [], []>} : vector<2x32xf32>, vector<32x128xf32>, vector<2x128xf32> -> vector<2x128xf32>
    %454 = arith.addf %452, %453 : vector<2x128xf32>
    %455 = vector.extract_strided_slice %454 {offsets = [0, 0], sizes = [2, 32], strides = [1, 1]} : vector<2x128xf32> to vector<2x32xf32>
    %456 = arith.negf %455 : vector<2x32xf32>
    %457 = math.exp %456 : vector<2x32xf32>
    %cst_102 = arith.constant 1.000000e+00 : f32
    %458 = vector.broadcast %cst_102 : f32 to vector<2x32xf32>
    %459 = arith.addf %458, %457 : vector<2x32xf32>
    %460 = arith.divf %458, %459 : vector<2x32xf32>
    %461 = vector.extract_strided_slice %454 {offsets = [0, 32], sizes = [2, 32], strides = [1, 1]} : vector<2x128xf32> to vector<2x32xf32>
    %462 = arith.negf %461 : vector<2x32xf32>
    %463 = math.exp %462 : vector<2x32xf32>
    %cst_103 = arith.constant 1.000000e+00 : f32
    %464 = vector.broadcast %cst_103 : f32 to vector<2x32xf32>
    %465 = arith.addf %464, %463 : vector<2x32xf32>
    %466 = arith.divf %464, %465 : vector<2x32xf32>
    %467 = vector.extract_strided_slice %454 {offsets = [0, 64], sizes = [2, 32], strides = [1, 1]} : vector<2x128xf32> to vector<2x32xf32>
    %468 = math.tanh %467 : vector<2x32xf32>
    %469 = vector.extract_strided_slice %454 {offsets = [0, 96], sizes = [2, 32], strides = [1, 1]} : vector<2x128xf32> to vector<2x32xf32>
    %470 = arith.negf %469 : vector<2x32xf32>
    %471 = math.exp %470 : vector<2x32xf32>
    %cst_104 = arith.constant 1.000000e+00 : f32
    %472 = vector.broadcast %cst_104 : f32 to vector<2x32xf32>
    %473 = arith.addf %472, %471 : vector<2x32xf32>
    %474 = arith.divf %472, %473 : vector<2x32xf32>
    %475 = arith.mulf %466, %448 : vector<2x32xf32>
    %476 = arith.mulf %460, %468 : vector<2x32xf32>
    %477 = arith.addf %475, %476 : vector<2x32xf32>
    %478 = math.tanh %477 : vector<2x32xf32>
    %479 = arith.mulf %474, %478 : vector<2x32xf32>
    %c0_105 = arith.constant 0 : index
    %c0_106 = arith.constant 0 : index
    %480 = vector.load %arg17[%c0_105, %c0_106] : memref<16x32xf32, #tpu.memory_space<vmem>>, vector<2x32xf32>
    tpu.vector_store %arg17[%c0_105, %c0_106], %479 {strides = array<i32>} : memref<16x32xf32, #tpu.memory_space<vmem>>, vector<2x32xf32>,
    %c0_107 = arith.constant 0 : index
    %c0_108 = arith.constant 0 : index
    %481 = vector.load %arg16[%c0_107, %c0_108] : memref<16x32xf32, #tpu.memory_space<vmem>>, vector<16x32xf32>
    %c0_109 = arith.constant 0 : index
    %c0_110 = arith.constant 0 : index
    %482 = vector.load %arg17[%c0_109, %c0_110] : memref<16x32xf32, #tpu.memory_space<vmem>>, vector<16x32xf32>
    %c0_111 = arith.constant 0 : index
    %c0_112 = arith.constant 0 : index
    %483 = vector.load %arg7[%c0_111, %c0_112] : memref<64x128xf32, #tpu.memory_space<vmem>>, vector<64x128xf32>
    %c0_113 = arith.constant 0 : index
    %c0_114 = arith.constant 0 : index
    %484 = vector.load %arg10[%c0_113, %c0_114] : memref<64x128xf32, #tpu.memory_space<vmem>>, vector<64x128xf32>
    %485 = vector.extract_strided_slice %483 {offsets = [0, 0], sizes = [32, 128], strides = [1, 1]} : vector<64x128xf32> to vector<32x128xf32>
    %cst_115 = arith.constant dense<0.000000e+00> : vector<16x128xf32>
    %486 = tpu.matmul %481, %485, %cst_115 {dimension_numbers = #tpu.dot_dimension_numbers<[1], [0], [0], [1], [0, 0, 1, 1], [], []>} : vector<16x32xf32>, vector<32x128xf32>, vector<16x128xf32> -> vector<16x128xf32>
    %487 = vector.extract_strided_slice %483 {offsets = [32, 0], sizes = [32, 128], strides = [1, 1]} : vector<64x128xf32> to vector<32x128xf32>
    %cst_116 = arith.constant dense<0.000000e+00> : vector<16x128xf32>
    %488 = tpu.matmul %482, %487, %cst_116 {dimension_numbers = #tpu.dot_dimension_numbers<[1], [0], [0], [1], [0, 0, 1, 1], [], []>} : vector<16x32xf32>, vector<32x128xf32>, vector<16x128xf32> -> vector<16x128xf32>
    %489 = arith.addf %486, %488 : vector<16x128xf32>
    %c0_117 = arith.constant 0 : index
    %c0_118 = arith.constant 0 : index
    %490 = vector.load %arg9[%c0_117, %c0_118] : memref<1x128xf32, #tpu.memory_space<vmem>>, vector<1x128xf32>
    %491 = vector.broadcast %490 : vector<1x128xf32> to vector<16x128xf32>
    %492 = arith.addf %489, %491 : vector<16x128xf32>
    %c0_119 = arith.constant 0 : index
    %c0_120 = arith.constant 0 : index
    %493 = vector.load %arg8[%c0_119, %c0_120] : memref<32x128xf32, #tpu.memory_space<vmem>>, vector<32x128xf32>
    %cst_121 = arith.constant 0.000000e+00 : f32
    %494 = vector.broadcast %cst_121 : f32 to vector<2x32xf32>
    %cst_122 = arith.constant 0.000000e+00 : f32
    %495 = vector.broadcast %cst_122 : f32 to vector<2x32xf32>
    %496 = vector.extract_strided_slice %492 {offsets = [0, 0], sizes = [2, 128], strides = [1, 1]} : vector<16x128xf32> to vector<2x128xf32>
    %cst_123 = arith.constant dense<0.000000e+00> : vector<2x128xf32>
    %497 = tpu.matmul %494, %493, %cst_123 {dimension_numbers = #tpu.dot_dimension_numbers<[1], [0], [0], [1], [0, 0, 1, 1], [], []>} : vector<2x32xf32>, vector<32x128xf32>, vector<2x128xf32> -> vector<2x128xf32>
    %498 = arith.addf %496, %497 : vector<2x128xf32>
    %499 = vector.extract_strided_slice %498 {offsets = [0, 0], sizes = [2, 32], strides = [1, 1]} : vector<2x128xf32> to vector<2x32xf32>
    %500 = arith.negf %499 : vector<2x32xf32>
    %501 = math.exp %500 : vector<2x32xf32>
    %cst_124 = arith.constant 1.000000e+00 : f32
    %502 = vector.broadcast %cst_124 : f32 to vector<2x32xf32>
    %503 = arith.addf %502, %501 : vector<2x32xf32>
    %504 = arith.divf %502, %503 : vector<2x32xf32>
    %505 = vector.extract_strided_slice %498 {offsets = [0, 32], sizes = [2, 32], strides = [1, 1]} : vector<2x128xf32> to vector<2x32xf32>
    %506 = arith.negf %505 : vector<2x32xf32>
    %507 = math.exp %506 : vector<2x32xf32>
    %cst_125 = arith.constant 1.000000e+00 : f32
    %508 = vector.broadcast %cst_125 : f32 to vector<2x32xf32>
    %509 = arith.addf %508, %507 : vector<2x32xf32>
    %510 = arith.divf %508, %509 : vector<2x32xf32>
    %511 = vector.extract_strided_slice %498 {offsets = [0, 64], sizes = [2, 32], strides = [1, 1]} : vector<2x128xf32> to vector<2x32xf32>
    %512 = math.tanh %511 : vector<2x32xf32>
    %513 = vector.extract_strided_slice %498 {offsets = [0, 96], sizes = [2, 32], strides = [1, 1]} : vector<2x128xf32> to vector<2x32xf32>
    %514 = arith.negf %513 : vector<2x32xf32>
    %515 = math.exp %514 : vector<2x32xf32>
    %cst_126 = arith.constant 1.000000e+00 : f32
    %516 = vector.broadcast %cst_126 : f32 to vector<2x32xf32>
    %517 = arith.addf %516, %515 : vector<2x32xf32>
    %518 = arith.divf %516, %517 : vector<2x32xf32>
    %519 = arith.mulf %510, %495 : vector<2x32xf32>
    %520 = arith.mulf %504, %512 : vector<2x32xf32>
    %521 = arith.addf %519, %520 : vector<2x32xf32>
    %522 = math.tanh %521 : vector<2x32xf32>
    %523 = arith.mulf %518, %522 : vector<2x32xf32>
    %524 = vector.extract_strided_slice %492 {offsets = [2, 0], sizes = [2, 128], strides = [1, 1]} : vector<16x128xf32> to vector<2x128xf32>
    %cst_127 = arith.constant dense<0.000000e+00> : vector<2x128xf32>
    %525 = tpu.matmul %523, %493, %cst_127 {dimension_numbers = #tpu.dot_dimension_numbers<[1], [0], [0], [1], [0, 0, 1, 1], [], []>} : vector<2x32xf32>, vector<32x128xf32>, vector<2x128xf32> -> vector<2x128xf32>
    %526 = arith.addf %524, %525 : vector<2x128xf32>
    %527 = vector.extract_strided_slice %526 {offsets = [0, 0], sizes = [2, 32], strides = [1, 1]} : vector<2x128xf32> to vector<2x32xf32>
    %528 = arith.negf %527 : vector<2x32xf32>
    %529 = math.exp %528 : vector<2x32xf32>
    %cst_128 = arith.constant 1.000000e+00 : f32
    %530 = vector.broadcast %cst_128 : f32 to vector<2x32xf32>
    %531 = arith.addf %530, %529 : vector<2x32xf32>
    %532 = arith.divf %530, %531 : vector<2x32xf32>
    %533 = vector.extract_strided_slice %526 {offsets = [0, 32], sizes = [2, 32], strides = [1, 1]} : vector<2x128xf32> to vector<2x32xf32>
    %534 = arith.negf %533 : vector<2x32xf32>
    %535 = math.exp %534 : vector<2x32xf32>
    %cst_129 = arith.constant 1.000000e+00 : f32
    %536 = vector.broadcast %cst_129 : f32 to vector<2x32xf32>
    %537 = arith.addf %536, %535 : vector<2x32xf32>
    %538 = arith.divf %536, %537 : vector<2x32xf32>
    %539 = vector.extract_strided_slice %526 {offsets = [0, 64], sizes = [2, 32], strides = [1, 1]} : vector<2x128xf32> to vector<2x32xf32>
    %540 = math.tanh %539 : vector<2x32xf32>
    %541 = vector.extract_strided_slice %526 {offsets = [0, 96], sizes = [2, 32], strides = [1, 1]} : vector<2x128xf32> to vector<2x32xf32>
    %542 = arith.negf %541 : vector<2x32xf32>
    %543 = math.exp %542 : vector<2x32xf32>
    %cst_130 = arith.constant 1.000000e+00 : f32
    %544 = vector.broadcast %cst_130 : f32 to vector<2x32xf32>
    %545 = arith.addf %544, %543 : vector<2x32xf32>
    %546 = arith.divf %544, %545 : vector<2x32xf32>
    %547 = arith.mulf %538, %521 : vector<2x32xf32>
    %548 = arith.mulf %532, %540 : vector<2x32xf32>
    %549 = arith.addf %547, %548 : vector<2x32xf32>
    %550 = math.tanh %549 : vector<2x32xf32>
    %551 = arith.mulf %546, %550 : vector<2x32xf32>
    %552 = vector.extract_strided_slice %492 {offsets = [4, 0], sizes = [2, 128], strides = [1, 1]} : vector<16x128xf32> to vector<2x128xf32>
    %cst_131 = arith.constant dense<0.000000e+00> : vector<2x128xf32>
    %553 = tpu.matmul %551, %493, %cst_131 {dimension_numbers = #tpu.dot_dimension_numbers<[1], [0], [0], [1], [0, 0, 1, 1], [], []>} : vector<2x32xf32>, vector<32x128xf32>, vector<2x128xf32> -> vector<2x128xf32>
    %554 = arith.addf %552, %553 : vector<2x128xf32>
    %555 = vector.extract_strided_slice %554 {offsets = [0, 0], sizes = [2, 32], strides = [1, 1]} : vector<2x128xf32> to vector<2x32xf32>
    %556 = arith.negf %555 : vector<2x32xf32>
    %557 = math.exp %556 : vector<2x32xf32>
    %cst_132 = arith.constant 1.000000e+00 : f32
    %558 = vector.broadcast %cst_132 : f32 to vector<2x32xf32>
    %559 = arith.addf %558, %557 : vector<2x32xf32>
    %560 = arith.divf %558, %559 : vector<2x32xf32>
    %561 = vector.extract_strided_slice %554 {offsets = [0, 32], sizes = [2, 32], strides = [1, 1]} : vector<2x128xf32> to vector<2x32xf32>
    %562 = arith.negf %561 : vector<2x32xf32>
    %563 = math.exp %562 : vector<2x32xf32>
    %cst_133 = arith.constant 1.000000e+00 : f32
    %564 = vector.broadcast %cst_133 : f32 to vector<2x32xf32>
    %565 = arith.addf %564, %563 : vector<2x32xf32>
    %566 = arith.divf %564, %565 : vector<2x32xf32>
    %567 = vector.extract_strided_slice %554 {offsets = [0, 64], sizes = [2, 32], strides = [1, 1]} : vector<2x128xf32> to vector<2x32xf32>
    %568 = math.tanh %567 : vector<2x32xf32>
    %569 = vector.extract_strided_slice %554 {offsets = [0, 96], sizes = [2, 32], strides = [1, 1]} : vector<2x128xf32> to vector<2x32xf32>
    %570 = arith.negf %569 : vector<2x32xf32>
    %571 = math.exp %570 : vector<2x32xf32>
    %cst_134 = arith.constant 1.000000e+00 : f32
    %572 = vector.broadcast %cst_134 : f32 to vector<2x32xf32>
    %573 = arith.addf %572, %571 : vector<2x32xf32>
    %574 = arith.divf %572, %573 : vector<2x32xf32>
    %575 = arith.mulf %566, %549 : vector<2x32xf32>
    %576 = arith.mulf %560, %568 : vector<2x32xf32>
    %577 = arith.addf %575, %576 : vector<2x32xf32>
    %578 = math.tanh %577 : vector<2x32xf32>
    %579 = arith.mulf %574, %578 : vector<2x32xf32>
    %580 = vector.extract_strided_slice %492 {offsets = [6, 0], sizes = [2, 128], strides = [1, 1]} : vector<16x128xf32> to vector<2x128xf32>
    %cst_135 = arith.constant dense<0.000000e+00> : vector<2x128xf32>
    %581 = tpu.matmul %579, %493, %cst_135 {dimension_numbers = #tpu.dot_dimension_numbers<[1], [0], [0], [1], [0, 0, 1, 1], [], []>} : vector<2x32xf32>, vector<32x128xf32>, vector<2x128xf32> -> vector<2x128xf32>
    %582 = arith.addf %580, %581 : vector<2x128xf32>
    %583 = vector.extract_strided_slice %582 {offsets = [0, 0], sizes = [2, 32], strides = [1, 1]} : vector<2x128xf32> to vector<2x32xf32>
    %584 = arith.negf %583 : vector<2x32xf32>
    %585 = math.exp %584 : vector<2x32xf32>
    %cst_136 = arith.constant 1.000000e+00 : f32
    %586 = vector.broadcast %cst_136 : f32 to vector<2x32xf32>
    %587 = arith.addf %586, %585 : vector<2x32xf32>
    %588 = arith.divf %586, %587 : vector<2x32xf32>
    %589 = vector.extract_strided_slice %582 {offsets = [0, 32], sizes = [2, 32], strides = [1, 1]} : vector<2x128xf32> to vector<2x32xf32>
    %590 = arith.negf %589 : vector<2x32xf32>
    %591 = math.exp %590 : vector<2x32xf32>
    %cst_137 = arith.constant 1.000000e+00 : f32
    %592 = vector.broadcast %cst_137 : f32 to vector<2x32xf32>
    %593 = arith.addf %592, %591 : vector<2x32xf32>
    %594 = arith.divf %592, %593 : vector<2x32xf32>
    %595 = vector.extract_strided_slice %582 {offsets = [0, 64], sizes = [2, 32], strides = [1, 1]} : vector<2x128xf32> to vector<2x32xf32>
    %596 = math.tanh %595 : vector<2x32xf32>
    %597 = vector.extract_strided_slice %582 {offsets = [0, 96], sizes = [2, 32], strides = [1, 1]} : vector<2x128xf32> to vector<2x32xf32>
    %598 = arith.negf %597 : vector<2x32xf32>
    %599 = math.exp %598 : vector<2x32xf32>
    %cst_138 = arith.constant 1.000000e+00 : f32
    %600 = vector.broadcast %cst_138 : f32 to vector<2x32xf32>
    %601 = arith.addf %600, %599 : vector<2x32xf32>
    %602 = arith.divf %600, %601 : vector<2x32xf32>
    %603 = arith.mulf %594, %577 : vector<2x32xf32>
    %604 = arith.mulf %588, %596 : vector<2x32xf32>
    %605 = arith.addf %603, %604 : vector<2x32xf32>
    %606 = math.tanh %605 : vector<2x32xf32>
    %607 = arith.mulf %602, %606 : vector<2x32xf32>
    %608 = vector.extract_strided_slice %492 {offsets = [8, 0], sizes = [2, 128], strides = [1, 1]} : vector<16x128xf32> to vector<2x128xf32>
    %cst_139 = arith.constant dense<0.000000e+00> : vector<2x128xf32>
    %609 = tpu.matmul %607, %493, %cst_139 {dimension_numbers = #tpu.dot_dimension_numbers<[1], [0], [0], [1], [0, 0, 1, 1], [], []>} : vector<2x32xf32>, vector<32x128xf32>, vector<2x128xf32> -> vector<2x128xf32>
    %610 = arith.addf %608, %609 : vector<2x128xf32>
    %611 = vector.extract_strided_slice %610 {offsets = [0, 0], sizes = [2, 32], strides = [1, 1]} : vector<2x128xf32> to vector<2x32xf32>
    %612 = arith.negf %611 : vector<2x32xf32>
    %613 = math.exp %612 : vector<2x32xf32>
    %cst_140 = arith.constant 1.000000e+00 : f32
    %614 = vector.broadcast %cst_140 : f32 to vector<2x32xf32>
    %615 = arith.addf %614, %613 : vector<2x32xf32>
    %616 = arith.divf %614, %615 : vector<2x32xf32>
    %617 = vector.extract_strided_slice %610 {offsets = [0, 32], sizes = [2, 32], strides = [1, 1]} : vector<2x128xf32> to vector<2x32xf32>
    %618 = arith.negf %617 : vector<2x32xf32>
    %619 = math.exp %618 : vector<2x32xf32>
    %cst_141 = arith.constant 1.000000e+00 : f32
    %620 = vector.broadcast %cst_141 : f32 to vector<2x32xf32>
    %621 = arith.addf %620, %619 : vector<2x32xf32>
    %622 = arith.divf %620, %621 : vector<2x32xf32>
    %623 = vector.extract_strided_slice %610 {offsets = [0, 64], sizes = [2, 32], strides = [1, 1]} : vector<2x128xf32> to vector<2x32xf32>
    %624 = math.tanh %623 : vector<2x32xf32>
    %625 = vector.extract_strided_slice %610 {offsets = [0, 96], sizes = [2, 32], strides = [1, 1]} : vector<2x128xf32> to vector<2x32xf32>
    %626 = arith.negf %625 : vector<2x32xf32>
    %627 = math.exp %626 : vector<2x32xf32>
    %cst_142 = arith.constant 1.000000e+00 : f32
    %628 = vector.broadcast %cst_142 : f32 to vector<2x32xf32>
    %629 = arith.addf %628, %627 : vector<2x32xf32>
    %630 = arith.divf %628, %629 : vector<2x32xf32>
    %631 = arith.mulf %622, %605 : vector<2x32xf32>
    %632 = arith.mulf %616, %624 : vector<2x32xf32>
    %633 = arith.addf %631, %632 : vector<2x32xf32>
    %634 = math.tanh %633 : vector<2x32xf32>
    %635 = arith.mulf %630, %634 : vector<2x32xf32>
    %636 = vector.extract_strided_slice %492 {offsets = [10, 0], sizes = [2, 128], strides = [1, 1]} : vector<16x128xf32> to vector<2x128xf32>
    %cst_143 = arith.constant dense<0.000000e+00> : vector<2x128xf32>
    %637 = tpu.matmul %635, %493, %cst_143 {dimension_numbers = #tpu.dot_dimension_numbers<[1], [0], [0], [1], [0, 0, 1, 1], [], []>} : vector<2x32xf32>, vector<32x128xf32>, vector<2x128xf32> -> vector<2x128xf32>
    %638 = arith.addf %636, %637 : vector<2x128xf32>
    %639 = vector.extract_strided_slice %638 {offsets = [0, 0], sizes = [2, 32], strides = [1, 1]} : vector<2x128xf32> to vector<2x32xf32>
    %640 = arith.negf %639 : vector<2x32xf32>
    %641 = math.exp %640 : vector<2x32xf32>
    %cst_144 = arith.constant 1.000000e+00 : f32
    %642 = vector.broadcast %cst_144 : f32 to vector<2x32xf32>
    %643 = arith.addf %642, %641 : vector<2x32xf32>
    %644 = arith.divf %642, %643 : vector<2x32xf32>
    %645 = vector.extract_strided_slice %638 {offsets = [0, 32], sizes = [2, 32], strides = [1, 1]} : vector<2x128xf32> to vector<2x32xf32>
    %646 = arith.negf %645 : vector<2x32xf32>
    %647 = math.exp %646 : vector<2x32xf32>
    %cst_145 = arith.constant 1.000000e+00 : f32
    %648 = vector.broadcast %cst_145 : f32 to vector<2x32xf32>
    %649 = arith.addf %648, %647 : vector<2x32xf32>
    %650 = arith.divf %648, %649 : vector<2x32xf32>
    %651 = vector.extract_strided_slice %638 {offsets = [0, 64], sizes = [2, 32], strides = [1, 1]} : vector<2x128xf32> to vector<2x32xf32>
    %652 = math.tanh %651 : vector<2x32xf32>
    %653 = vector.extract_strided_slice %638 {offsets = [0, 96], sizes = [2, 32], strides = [1, 1]} : vector<2x128xf32> to vector<2x32xf32>
    %654 = arith.negf %653 : vector<2x32xf32>
    %655 = math.exp %654 : vector<2x32xf32>
    %cst_146 = arith.constant 1.000000e+00 : f32
    %656 = vector.broadcast %cst_146 : f32 to vector<2x32xf32>
    %657 = arith.addf %656, %655 : vector<2x32xf32>
    %658 = arith.divf %656, %657 : vector<2x32xf32>
    %659 = arith.mulf %650, %633 : vector<2x32xf32>
    %660 = arith.mulf %644, %652 : vector<2x32xf32>
    %661 = arith.addf %659, %660 : vector<2x32xf32>
    %662 = math.tanh %661 : vector<2x32xf32>
    %663 = arith.mulf %658, %662 : vector<2x32xf32>
    %664 = vector.extract_strided_slice %492 {offsets = [12, 0], sizes = [2, 128], strides = [1, 1]} : vector<16x128xf32> to vector<2x128xf32>
    %cst_147 = arith.constant dense<0.000000e+00> : vector<2x128xf32>
    %665 = tpu.matmul %663, %493, %cst_147 {dimension_numbers = #tpu.dot_dimension_numbers<[1], [0], [0], [1], [0, 0, 1, 1], [], []>} : vector<2x32xf32>, vector<32x128xf32>, vector<2x128xf32> -> vector<2x128xf32>
    %666 = arith.addf %664, %665 : vector<2x128xf32>
    %667 = vector.extract_strided_slice %666 {offsets = [0, 0], sizes = [2, 32], strides = [1, 1]} : vector<2x128xf32> to vector<2x32xf32>
    %668 = arith.negf %667 : vector<2x32xf32>
    %669 = math.exp %668 : vector<2x32xf32>
    %cst_148 = arith.constant 1.000000e+00 : f32
    %670 = vector.broadcast %cst_148 : f32 to vector<2x32xf32>
    %671 = arith.addf %670, %669 : vector<2x32xf32>
    %672 = arith.divf %670, %671 : vector<2x32xf32>
    %673 = vector.extract_strided_slice %666 {offsets = [0, 32], sizes = [2, 32], strides = [1, 1]} : vector<2x128xf32> to vector<2x32xf32>
    %674 = arith.negf %673 : vector<2x32xf32>
    %675 = math.exp %674 : vector<2x32xf32>
    %cst_149 = arith.constant 1.000000e+00 : f32
    %676 = vector.broadcast %cst_149 : f32 to vector<2x32xf32>
    %677 = arith.addf %676, %675 : vector<2x32xf32>
    %678 = arith.divf %676, %677 : vector<2x32xf32>
    %679 = vector.extract_strided_slice %666 {offsets = [0, 64], sizes = [2, 32], strides = [1, 1]} : vector<2x128xf32> to vector<2x32xf32>
    %680 = math.tanh %679 : vector<2x32xf32>
    %681 = vector.extract_strided_slice %666 {offsets = [0, 96], sizes = [2, 32], strides = [1, 1]} : vector<2x128xf32> to vector<2x32xf32>
    %682 = arith.negf %681 : vector<2x32xf32>
    %683 = math.exp %682 : vector<2x32xf32>
    %cst_150 = arith.constant 1.000000e+00 : f32
    %684 = vector.broadcast %cst_150 : f32 to vector<2x32xf32>
    %685 = arith.addf %684, %683 : vector<2x32xf32>
    %686 = arith.divf %684, %685 : vector<2x32xf32>
    %687 = arith.mulf %678, %661 : vector<2x32xf32>
    %688 = arith.mulf %672, %680 : vector<2x32xf32>
    %689 = arith.addf %687, %688 : vector<2x32xf32>
    %690 = math.tanh %689 : vector<2x32xf32>
    %691 = arith.mulf %686, %690 : vector<2x32xf32>
    %692 = vector.extract_strided_slice %492 {offsets = [14, 0], sizes = [2, 128], strides = [1, 1]} : vector<16x128xf32> to vector<2x128xf32>
    %cst_151 = arith.constant dense<0.000000e+00> : vector<2x128xf32>
    %693 = tpu.matmul %691, %493, %cst_151 {dimension_numbers = #tpu.dot_dimension_numbers<[1], [0], [0], [1], [0, 0, 1, 1], [], []>} : vector<2x32xf32>, vector<32x128xf32>, vector<2x128xf32> -> vector<2x128xf32>
    %694 = arith.addf %692, %693 : vector<2x128xf32>
    %695 = vector.extract_strided_slice %694 {offsets = [0, 0], sizes = [2, 32], strides = [1, 1]} : vector<2x128xf32> to vector<2x32xf32>
    %696 = arith.negf %695 : vector<2x32xf32>
    %697 = math.exp %696 : vector<2x32xf32>
    %cst_152 = arith.constant 1.000000e+00 : f32
    %698 = vector.broadcast %cst_152 : f32 to vector<2x32xf32>
    %699 = arith.addf %698, %697 : vector<2x32xf32>
    %700 = arith.divf %698, %699 : vector<2x32xf32>
    %701 = vector.extract_strided_slice %694 {offsets = [0, 32], sizes = [2, 32], strides = [1, 1]} : vector<2x128xf32> to vector<2x32xf32>
    %702 = arith.negf %701 : vector<2x32xf32>
    %703 = math.exp %702 : vector<2x32xf32>
    %cst_153 = arith.constant 1.000000e+00 : f32
    %704 = vector.broadcast %cst_153 : f32 to vector<2x32xf32>
    %705 = arith.addf %704, %703 : vector<2x32xf32>
    %706 = arith.divf %704, %705 : vector<2x32xf32>
    %707 = vector.extract_strided_slice %694 {offsets = [0, 64], sizes = [2, 32], strides = [1, 1]} : vector<2x128xf32> to vector<2x32xf32>
    %708 = math.tanh %707 : vector<2x32xf32>
    %709 = vector.extract_strided_slice %694 {offsets = [0, 96], sizes = [2, 32], strides = [1, 1]} : vector<2x128xf32> to vector<2x32xf32>
    %710 = arith.negf %709 : vector<2x32xf32>
    %711 = math.exp %710 : vector<2x32xf32>
    %cst_154 = arith.constant 1.000000e+00 : f32
    %712 = vector.broadcast %cst_154 : f32 to vector<2x32xf32>
    %713 = arith.addf %712, %711 : vector<2x32xf32>
    %714 = arith.divf %712, %713 : vector<2x32xf32>
    %715 = arith.mulf %706, %689 : vector<2x32xf32>
    %716 = arith.mulf %700, %708 : vector<2x32xf32>
    %717 = arith.addf %715, %716 : vector<2x32xf32>
    %718 = math.tanh %717 : vector<2x32xf32>
    %719 = arith.mulf %714, %718 : vector<2x32xf32>
    %720 = vector.extract_strided_slice %481 {offsets = [14, 0], sizes = [2, 32], strides = [1, 1]} : vector<16x32xf32> to vector<2x32xf32>
    %721 = vector.extract_strided_slice %482 {offsets = [14, 0], sizes = [2, 32], strides = [1, 1]} : vector<16x32xf32> to vector<2x32xf32>
    %722 = vector.extract_strided_slice %484 {offsets = [0, 0], sizes = [32, 128], strides = [1, 1]} : vector<64x128xf32> to vector<32x128xf32>
    %cst_155 = arith.constant dense<0.000000e+00> : vector<2x128xf32>
    %723 = tpu.matmul %720, %722, %cst_155 {dimension_numbers = #tpu.dot_dimension_numbers<[1], [0], [0], [1], [0, 0, 1, 1], [], []>} : vector<2x32xf32>, vector<32x128xf32>, vector<2x128xf32> -> vector<2x128xf32>
    %724 = vector.extract_strided_slice %484 {offsets = [32, 0], sizes = [32, 128], strides = [1, 1]} : vector<64x128xf32> to vector<32x128xf32>
    %cst_156 = arith.constant dense<0.000000e+00> : vector<2x128xf32>
    %725 = tpu.matmul %721, %724, %cst_156 {dimension_numbers = #tpu.dot_dimension_numbers<[1], [0], [0], [1], [0, 0, 1, 1], [], []>} : vector<2x32xf32>, vector<32x128xf32>, vector<2x128xf32> -> vector<2x128xf32>
    %726 = arith.addf %723, %725 : vector<2x128xf32>
    %c0_157 = arith.constant 0 : index
    %c0_158 = arith.constant 0 : index
    %727 = vector.load %arg12[%c0_157, %c0_158] : memref<1x128xf32, #tpu.memory_space<vmem>>, vector<1x128xf32>
    %728 = vector.broadcast %727 : vector<1x128xf32> to vector<2x128xf32>
    %729 = arith.addf %726, %728 : vector<2x128xf32>
    %cst_159 = arith.constant 0.000000e+00 : f32
    %730 = vector.broadcast %cst_159 : f32 to vector<2x32xf32>
    %731 = vector.extract_strided_slice %729 {offsets = [0, 0], sizes = [2, 32], strides = [1, 1]} : vector<2x128xf32> to vector<2x32xf32>
    %732 = arith.negf %731 : vector<2x32xf32>
    %733 = math.exp %732 : vector<2x32xf32>
    %cst_160 = arith.constant 1.000000e+00 : f32
    %734 = vector.broadcast %cst_160 : f32 to vector<2x32xf32>
    %735 = arith.addf %734, %733 : vector<2x32xf32>
    %736 = arith.divf %734, %735 : vector<2x32xf32>
    %737 = vector.extract_strided_slice %729 {offsets = [0, 32], sizes = [2, 32], strides = [1, 1]} : vector<2x128xf32> to vector<2x32xf32>
    %738 = arith.negf %737 : vector<2x32xf32>
    %739 = math.exp %738 : vector<2x32xf32>
    %cst_161 = arith.constant 1.000000e+00 : f32
    %740 = vector.broadcast %cst_161 : f32 to vector<2x32xf32>
    %741 = arith.addf %740, %739 : vector<2x32xf32>
    %742 = arith.divf %740, %741 : vector<2x32xf32>
    %743 = vector.extract_strided_slice %729 {offsets = [0, 64], sizes = [2, 32], strides = [1, 1]} : vector<2x128xf32> to vector<2x32xf32>
    %744 = math.tanh %743 : vector<2x32xf32>
    %745 = vector.extract_strided_slice %729 {offsets = [0, 96], sizes = [2, 32], strides = [1, 1]} : vector<2x128xf32> to vector<2x32xf32>
    %746 = arith.negf %745 : vector<2x32xf32>
    %747 = math.exp %746 : vector<2x32xf32>
    %cst_162 = arith.constant 1.000000e+00 : f32
    %748 = vector.broadcast %cst_162 : f32 to vector<2x32xf32>
    %749 = arith.addf %748, %747 : vector<2x32xf32>
    %750 = arith.divf %748, %749 : vector<2x32xf32>
    %751 = arith.mulf %742, %730 : vector<2x32xf32>
    %752 = arith.mulf %736, %744 : vector<2x32xf32>
    %753 = arith.addf %751, %752 : vector<2x32xf32>
    %754 = math.tanh %753 : vector<2x32xf32>
    %755 = arith.mulf %750, %754 : vector<2x32xf32>
    %c0_163 = arith.constant 0 : index
    %c0_164 = arith.constant 0 : index
    %756 = vector.load %arg13[%c0_163, %c0_164] : memref<64x4xf32, #tpu.memory_space<vmem>>, vector<64x4xf32>
    %757 = vector.extract_strided_slice %756 {offsets = [0, 0], sizes = [32, 4], strides = [1, 1]} : vector<64x4xf32> to vector<32x4xf32>
    %cst_165 = arith.constant dense<0.000000e+00> : vector<2x4xf32>
    %758 = tpu.matmul %719, %757, %cst_165 {dimension_numbers = #tpu.dot_dimension_numbers<[1], [0], [0], [1], [0, 0, 1, 1], [], []>} : vector<2x32xf32>, vector<32x4xf32>, vector<2x4xf32> -> vector<2x4xf32>
    %759 = vector.extract_strided_slice %756 {offsets = [32, 0], sizes = [32, 4], strides = [1, 1]} : vector<64x4xf32> to vector<32x4xf32>
    %cst_166 = arith.constant dense<0.000000e+00> : vector<2x4xf32>
    %760 = tpu.matmul %755, %759, %cst_166 {dimension_numbers = #tpu.dot_dimension_numbers<[1], [0], [0], [1], [0, 0, 1, 1], [], []>} : vector<2x32xf32>, vector<32x4xf32>, vector<2x4xf32> -> vector<2x4xf32>
    %761 = arith.addf %758, %760 : vector<2x4xf32>
    %c0_167 = arith.constant 0 : index
    %c0_168 = arith.constant 0 : index
    %762 = vector.load %arg14[%c0_167, %c0_168] : memref<1x4xf32, #tpu.memory_space<vmem>>, vector<1x4xf32>
    %763 = vector.broadcast %762 : vector<1x4xf32> to vector<2x4xf32>
    %764 = arith.addf %761, %763 : vector<2x4xf32>
    %c0_169 = arith.constant 0 : index
    %c0_170 = arith.constant 0 : index
    %765 = vector.load %arg15[%c0_169, %c0_170] : memref<2x4xf32, #tpu.memory_space<vmem>>, vector<2x4xf32>
    tpu.vector_store %arg15[%c0_169, %c0_170], %764 {strides = array<i32>} : memref<2x4xf32, #tpu.memory_space<vmem>>, vector<2x4xf32>,
    return
  }
}

</mosaic_0001>

<bundles_post_ra>
// kernel: bilstm_forward.1
= control target key start
LH: loop header
LB: loop body
LE: loop exit
PB: predicated region body
PF: predicated region fallthrough
CT: control target
= control target key end

     0   :  { %20 = vsyncpa [#allocation5], 0  ;;  %s5128_s0 = inlined_call_operand.vmem [shape: f32[16,16], index: 0, kind: input, shape index: {}]   ;;  %s5129_s1 = inlined_call_operand.vmem [shape: f32[16,128], index: 1, kind: input, shape index: {}]   ;;  %s5130_s2 = inlined_call_operand.vmem [shape: f32[32,128], index: 2, kind: input, shape index: {}]   ;;  %s5131_s3 = inlined_call_operand.vmem [shape: f32[1,128], index: 3, kind: input, shape index: {}]   ;;  %s5132_s4 = inlined_call_operand.hbm [shape: f32[16,128], index: 4, kind: input, shape index: {}]   ;;  %s5133_s5 = inlined_call_operand.hbm [shape: f32[32,128], index: 5, kind: input, shape index: {}]   ;;  %s5134_s6 = inlined_call_operand.vmem [shape: f32[1,128], index: 6, kind: input, shape index: {}]   ;;  %s5135_s7 = inlined_call_operand.vmem [shape: f32[64,128], index: 7, kind: input, shape index: {}]   ;;  %s5136_s8 = inlined_call_operand.hbm [shape: f32[32,128], index: 8, kind: input, shape index: {}]   ;;  %s5137_s9 = inlined_call_operand.vmem [shape: f32[1,128], index: 9, kind: input, shape index: {}]   ;;  %s5138_s10 = inlined_call_operand.hbm [shape: f32[64,128], index: 10, kind: input, shape index: {}]   ;;  %s5139_s11 = inlined_call_operand.hbm [shape: f32[32,128], index: 11, kind: input, shape index: {}]   ;;  %s5140_s12 = inlined_call_operand.vmem [shape: f32[1,128], index: 12, kind: input, shape index: {}]   ;;  %s5141_s13 = inlined_call_operand.vmem [shape: f32[64,4], index: 13, kind: input, shape index: {}]   ;;  %s5142_s14 = inlined_call_operand.vmem [shape: f32[1,4], index: 14, kind: input, shape index: {}]   ;;  %s5143_s15 = inlined_call_operand.hbm [shape: f32[2,4], index: 15, kind: output, shape index: {}]  }
   0x1   :  { %21 = vsyncpa [#allocation8], 0 }
   0x2   :  { %22 = vsyncpa [#allocation11], 0 }
   0x3   :  { %23 = vsyncpa [#allocation6], 0  ;;  %s4356_s18 = smov [#allocation7]   ;;  %s4357_s20 = smov [#allocation10]  }
   0x4   :  { %s49_s19 = sshll.u32 %s4356_s18, 4  ;;  %s79_s21 = sshll.u32 %s4357_s20, 4  ;;  %s50_s19 = int_to_ptr.vmem [resolvable:$true] %s49_s19  ;;  %s80_s21 = int_to_ptr.vmem [resolvable:$true] %s79_s21 }
   0x5   :  { %s4236_s22 = scalar_lea.vmem %s50_s19, 512  ;;  %p4241_p1 = scmp.lt.s32.totalorder %s50_s19, %s50_s19 }
   0x6   :  { %p4237_p0 = scmp.ne.s32.totalorder %s50_s19, %s4236_s22  ;;  %p4242_p2 = scmp.lt.s32.totalorder %s4236_s22, %s4236_s22 }
   0x8   :  { %p4243_p3 = por %p4242_p2, %p4241_p1 }
   0xa   :  { %p4244_p4 = pnand %p4243_p3, %p4237_p0 }
   0xc   :  { %4247 = shalt.err (!%p4244_p4)
}
   0xd   :  { %s4358_s23 = smov 128   ;;  %s4359_s24 = smov 8  }
   0xe   :  { %55 = dma.hbm_to_vmem [thread:$0]  %s5133_s5, 512, %s50_s19, [#allocation8], %s4358_s23, %s4358_s23, %s4359_s24  }
   0xf   :  { %s4256_s27 = scalar_lea.vmem %s80_s21, 1024  ;;  %p4261_p6 = scmp.lt.s32.totalorder %s80_s21, %s80_s21 }
  0x10   :  { %p4257_p5 = scmp.ne.s32.totalorder %s80_s21, %s4256_s27  ;;  %p4262_p7 = scmp.lt.s32.totalorder %s4256_s27, %s4256_s27 }
  0x12   :  { %p4263_p8 = por %p4262_p7, %p4261_p6 }
  0x14   :  { %p4264_p9 = pnand %p4263_p8, %p4257_p5 }
  0x16   :  { %4267 = shalt.err (!%p4264_p9)
}
  0x17   :  { %85 = dma.hbm_to_vmem [thread:$0]  %s5138_s10, 1024, %s80_s21, [#allocation11], %s4358_s23, %s4358_s23, %s4359_s24  }
  0x18   :  { %s4360_s30 = smov [#allocation4]   ;;  %s4361_s17 = smov [#allocation9]  }
  0x19   :  { %s37_s16 = sshll.u32 %s4360_s30, 4  ;;  %s65_s18 = sshll.u32 %s4361_s17, 4  ;;  %s38_s16 = int_to_ptr.vmem [resolvable:$true] %s37_s16  ;;  %s66_s18 = int_to_ptr.vmem [resolvable:$true] %s65_s18 }
  0x1a   :  { %s4276_s5 = scalar_lea.vmem %s38_s16, 256  ;;  %p4281_p11 = scmp.lt.s32.totalorder %s38_s16, %s38_s16 }
  0x1b   :  { %p4277_p10 = scmp.ne.s32.totalorder %s38_s16, %s4276_s5  ;;  %p4282_p12 = scmp.lt.s32.totalorder %s4276_s5, %s4276_s5 }
  0x1d   :  { %p4283_p13 = por %p4282_p12, %p4281_p11 }
  0x1f   :  { %p4284_p0 = pnand %p4283_p13, %p4277_p10 }
  0x21   :  { %4287 = shalt.err (!%p4284_p0)
}
  0x22   :  { %43 = dma.hbm_to_vmem [thread:$0]  %s5132_s4, 256, %s38_s16, [#allocation5], %s4358_s23, %s4358_s23, %s4359_s24  }
  0x23   :  { %s4296_s10 = scalar_lea.vmem %s66_s18, 512  ;;  %p4301_p2 = scmp.lt.s32.totalorder %s66_s18, %s66_s18 }
  0x24   :  { %p4297_p1 = scmp.ne.s32.totalorder %s66_s18, %s4296_s10  ;;  %p4302_p3 = scmp.lt.s32.totalorder %s4296_s10, %s4296_s10 }
  0x26   :  { %p4303_p4 = por %p4302_p3, %p4301_p2 }
  0x28   :  { %p4304_p5 = pnand %p4303_p4, %p4297_p1 }
  0x2a   :  { %4307 = shalt.err (!%p4304_p5)
}
  0x2b   :  { %71 = dma.hbm_to_vmem [thread:$0]  %s5136_s8, 512, %s66_s18, [#allocation8], %s4358_s23, %s4358_s23, %s4359_s24  }
  0x2c   :  { %s4362_s25 = smov [#allocation12]  }
  0x2d   :  { %s91_s26 = sshll.u32 %s4362_s25, 4  ;;  %s92_s26 = int_to_ptr.vmem [resolvable:$true] %s91_s26 }
  0x2e   :  { %s4316_s27 = scalar_lea.vmem %s92_s26, 512  ;;  %p4321_p7 = scmp.lt.s32.totalorder %s92_s26, %s92_s26 }
  0x2f   :  { %p4317_p6 = scmp.ne.s32.totalorder %s92_s26, %s4316_s27  ;;  %p4322_p8 = scmp.lt.s32.totalorder %s4316_s27, %s4316_s27 }
  0x31   :  { %p4323_p9 = por %p4322_p8, %p4321_p7 }
  0x33   :  { %p4324_p10 = pnand %p4323_p9, %p4317_p6 }
  0x35   :  { %4327 = shalt.err (!%p4324_p10)
}
  0x36   :  { %97 = dma.hbm_to_vmem [thread:$0]  %s5139_s11, 512, %s92_s26, [#allocation11], %s4358_s23, %s4358_s23, %s4359_s24  }
  0x37   :  { %4348 = dma.done.wait [#allocation5], 256  }
  0x38   :  { %4349 = vsyncadd [#allocation5], 4294967040 }
  0x39   :  { %4350 = dma.done.wait [#allocation8], 1024  }
  0x3a   :  { %4351 = vsyncadd [#allocation8], 4294966272 }
  0x3b   :  { %4352 = dma.done.wait [#allocation11], 1536  }
  0x3c   :  { %4353 = vsyncadd [#allocation11], 4294965760  ;;  %vm130_vm0 = vcmask 130048   ;;  %v122_v0 = vld [vmem:[%s5129_s1 + $0x8] sm:$0xff]  ;;  %v121_v1 = vld [vmem:[%s5129_s1] sm:$0xff]  ;;  %v4363_v5 = vmov 0.0  }
  0x3d   :  { %v119_v2 = vld [vmem:[%s5128_s0] sm:$0xff]  ;;  %3672 = vmatprep.subr.mxu0 %v122_v0  ;;  %v4491_v3 = vld [vmem:[%s5128_s0 + $0x8] sm:$0xff]  ;;  %v4497_v4 = vld [vmem:[%s5130_s2 + $0x18] sm:$0xff]  ;;  %vm4364_vm1 = vmmov 0   ;;  %s4365_s25 = smov 64   ;;  %vm403_vm2 = vcmask 254976  }
  0x3e   :  { %3676 = vmatprep.mubr.msk.f32.mxu0 %vm130_vm0, %v119_v2  ;;  %3673 = vmatpush3.msra.mxu0 %v122_v0  ;;  %v4505_v6 = vld [vmem:[%s5130_s2 + $0x10] sm:$0xff]  ;;  %v4514_v7 = vld [vmem:[%s5130_s2 + $0x8] sm:$0xff]  ;;  %v4521_v8 = vld [vmem:[%s5130_s2] sm:$0xff]  ;;  %vm300_vm3 = vcmask 261120   ;;  %vm624_vm4 = vcmask 259076   ;;  %vm736_vm5 = vcmask 261126  }
  0x3f   :  { %3683 = vmatprep.mubr.msk.f32.mxu1 %vm130_vm0, %v119_v2  ;;  %3674 = vmatprep.subr.mxu0 %v121_v1  ;;  %v3449_v9 = vld [vmem:[%s5131_s3] ss:$0 sm:$0xff]  ;;  %s4366_s3 = smov 32   ;;  %v213_v27 = vld [vmem:[#allocation4 + $0x8] sm:$0xff]  ;;  %vm512_vm6 = vcmask 257026   ;;  %s4367_s23 = smov [#allocation13]  }
  0x40   :  { %3675 = vmatpush3.msra.mxu0 %v121_v1  ;;  %v212_v28 = vld [vmem:[#allocation4] sm:$0xff]  ;;  %3679 = vmatprep.subr.mxu1 %v213_v27  ;;  %s3438_s24 = sshll.u32 %s4367_s23, 4  ;;  %vm3430_vm7 = vcmask 25600   ;;  %s3439_s24 = int_to_ptr.vmem [resolvable:$true] %s3438_s24 }
  0x41   :  { %3677 = vmatmul.mubr.msk.f32.vlgmr.msra.gmra.mxu0 %vm130_vm0, %v4491_v3  ;;  %3686 = vmatprep.subr.mxu0 %v4363_v5  ;;  %p4333_p12 = scmp.lt.s32.totalorder %s3439_s24, %s3439_s24 }
  0x42   :  { %3687 = vmatpush3.msra.mxu0 %v4497_v4  ;;  %3694 = vmatprep.mubr.msk.f32.mxu0 %vm4364_vm1, %v4363_v5 }
  0x43   :  { %3688 = vmatprep.subr.mxu0 %v4363_v5  ;;  %3680 = vmatpush3.msra.mxu1 %v213_v27 }
  0x44   :  { %3689 = vmatpush3.msra.mxu0 %v4505_v6  ;;  %3681 = vmatprep.subr.mxu1 %v212_v28 }
  0x45   :  { %3690 = vmatprep.subr.mxu0 %v4363_v5  ;;  %3682 = vmatpush3.msra.mxu1 %v212_v28 }
  0x46   :  { %3691 = vmatpush3.msra.mxu0 %v4514_v7  ;;  %3684 = vmatmul.mubr.msk.f32.vlgmr.msra.gmra.mxu1 %vm130_vm0, %v4491_v3 }
  0x47   :  { %3692 = vmatprep.subr.mxu0 %v4363_v5  ;;  %3697 = vmatprep.subr.mxu1 %v4363_v5 }
  0x48   :  { %3693 = vmatpush3.msra.mxu0 %v4521_v8  ;;  %3698 = vmatpush3.msra.mxu1 %v4497_v4 }
  0x49   :  { %3695 = vmatmul.mubr.f32.vlgmr.msra.gmra.mxu0 %v4363_v5  ;;  %3708 = vmatprep.subr.mxu0 %v4363_v5 }
  0x4a   :  { %3709 = vmatpush3.msra.mxu0 %v4497_v4  ;;  %3716 = vmatprep.mubr.msk.f32.mxu0 %vm4364_vm1, %v4363_v5 }
  0x4b   :  { %3710 = vmatprep.subr.mxu0 %v4363_v5  ;;  %3705 = vmatprep.mubr.msk.f32.mxu1 %vm4364_vm1, %v4363_v5 }
  0x4c   :  { %3711 = vmatpush3.msra.mxu0 %v4505_v6  ;;  %3699 = vmatprep.subr.mxu1 %v4363_v5 }
  0x4d   :  { %3712 = vmatprep.subr.mxu0 %v4363_v5  ;;  %3700 = vmatpush3.msra.mxu1 %v4505_v6 }
  0x4e   :  { %3713 = vmatpush3.msra.mxu0 %v4514_v7  ;;  %3701 = vmatprep.subr.mxu1 %v4363_v5 }
  0x4f   :  { %3714 = vmatprep.subr.mxu0 %v4363_v5  ;;  %3702 = vmatpush3.msra.mxu1 %v4514_v7 }
  0x50   :  { %3715 = vmatpush3.msra.mxu0 %v4521_v8  ;;  %3703 = vmatprep.subr.mxu1 %v4363_v5 }
  0x51   :  { %3730 = vmatprep.subr.mxu0 %v4363_v5  ;;  %3704 = vmatpush3.msra.mxu1 %v4521_v8 }
  0x52   :  { %3719 = vmatprep.subr.mxu1 %v4363_v5 }
 0x101   :  { %v3678_v10 = vpop.f32.mrf.mxu0 }
 0x102   :  { %v4541_v11 = vadd.f32 %v3678_v10, %v3449_v9 }
 0x103   :  { %v203_v12 = vpop.f32.mrf.mxu0 }
 0x104   :  { %v4543_v13 = vadd.f32 %v3449_v9, %v203_v12 }
 0x106   :  { %v4575_v33 = vpop.f32.mrf.mxu1 }
 0x108   :  { %v4577_v34 = vpop.f32.mrf.mxu1 }
 0x109   :  { %v370_v14 = vpop.f32.mrf.mxu0 }
 0x10a   :  { %v374_v15 = vadd.f32 %v370_v14, %v4543_v13 }
 0x10b   :  { %v3696_v16 = vpop.f32.mrf.mxu0 }
 0x10c   :  { %4028 = vtanh.f32 %v374_v15  ;;  %v3455_v18 = vmul.f32 -1.442695, %v374_v15 }
 0x10e   :  { %4030 = vpow2.f32 %v3455_v18 }
 0x119   :  { %v4029_v17 = vpop.eup %4028 }
 0x11a   :  { %384 = vrot.lane.b32.xlu0 %v4029_v17, %s4365_s25 }
 0x11b   :  { %v4031_v19 = vpop.eup %4030 }
 0x11c   :  { %v378_v20 = vadd.f32 1.0, %v4031_v19 }
 0x11e   :  { %4032 = vrcp.f32 %v378_v20 }
 0x12b   :  { %v4033_v21 = vpop.eup %4032 }
 0x12c   :  { %v382_v24 = vmul.f32 0.0, %v4033_v21 }
 0x18c   :  { %v385_v22 = vpop.permute.xlu0 %384 }
 0x18d   :  { %v387_v23 = vmul.f32 %v4033_v21, %v385_v22 }
 0x18f   :  { %389 = vrot.lane.b32.xlu0 %v387_v23, %s4366_s3 }
 0x201   :  { %v390_v25 = vpop.permute.xlu0 %389 }
 0x202   :  { %v392_v26 = vadd.f32 %v390_v25, %v382_v24 }
 0x204   :  { %4034 = vtanh.f32 %v392_v26  ;;  %v489_v46 = vrot.slane %v392_v26, 6 }
 0x211   :  { %v4035_v29 = vpop.eup %4034 }
 0x212   :  { %395 = vrot.lane.b32.xlu1 %v4035_v29, %s4365_s25 }
 0x284   :  { %v396_v30 = vpop.permute.xlu1 %395 }
 0x285   :  { %v398_v31 = vmul.f32 %v4033_v21, %v396_v30 }
 0x287   :  { %400 = vrot.lane.b32.xlu1 %v398_v31, %s4366_s3 }
 0x2f9   :  { %v401_v32 = vpop.permute.xlu1 %400 }
 0x2fa   :  { %404 = vst.msk [vmem:[#allocation2] sm:$0x3] %vm403_vm2, %v401_v32  ;;  %3706 = vmatmul.mubr.msk.f32.vlgmr.msra.gmra.mxu1 %vm300_vm3, %v401_v32 }
 0x2fb   :  { %3720 = vmatpush3.msra.mxu1 %v4497_v4  ;;  %3727 = vmatprep.mubr.msk.f32.mxu1 %vm4364_vm1, %v4363_v5 }
 0x2fc   :  { %3721 = vmatprep.subr.mxu1 %v4363_v5 }
 0x2fd   :  { %3722 = vmatpush3.msra.mxu1 %v4505_v6 }
 0x2fe   :  { %3723 = vmatprep.subr.mxu1 %v4363_v5 }
 0x2ff   :  { %3724 = vmatpush3.msra.mxu1 %v4514_v7 }
 0x300   :  { %3725 = vmatprep.subr.mxu1 %v4363_v5 }
 0x301   :  { %3726 = vmatpush3.msra.mxu1 %v4521_v8 }
 0x302   :  { %3741 = vmatprep.subr.mxu1 %v4363_v5 }
 0x3ba   :  { %v473_v35 = vpop.f32.mrf.mxu1 }
 0x3bb   :  { %v478_v36 = vrot.slane %v473_v35, 6 }
 0x3bc   :  { %v3707_v37 = vpop.f32.mrf.mxu1 }
 0x3bd   :  { %v480_v38 = vadd.f32 %v478_v36, %v4543_v13 }
 0x3bf   :  { %4036 = vtanh.f32 %v480_v38  ;;  %v3457_v40 = vmul.f32 -1.442695, %v480_v38 }
 0x3c1   :  { %4038 = vpow2.f32 %v3457_v40 }
 0x3cc   :  { %v4037_v39 = vpop.eup %4036 }
 0x3cd   :  { %493 = vrot.lane.b32.xlu0 %v4037_v39, %s4365_s25 }
 0x3ce   :  { %v4039_v41 = vpop.eup %4038 }
 0x3cf   :  { %v484_v42 = vadd.f32 1.0, %v4039_v41 }
 0x3d1   :  { %4040 = vrcp.f32 %v484_v42 }
 0x3de   :  { %v4041_v43 = vpop.eup %4040 }
 0x3df   :  { %v491_v47 = vmul.f32 %v4041_v43, %v489_v46 }
 0x43f   :  { %v494_v44 = vpop.permute.xlu0 %493 }
 0x440   :  { %v496_v45 = vmul.f32 %v4041_v43, %v494_v44 }
 0x442   :  { %498 = vrot.lane.b32.xlu1 %v496_v45, %s4366_s3 }
 0x4b4   :  { %v499_v48 = vpop.permute.xlu1 %498 }
 0x4b5   :  { %v501_v49 = vadd.f32 %v499_v48, %v491_v47 }
 0x4b7   :  { %4042 = vtanh.f32 %v501_v49  ;;  %v601_v2 = vrot.slane %v501_v49, 6 }
 0x4c4   :  { %v4043_v50 = vpop.eup %4042 }
 0x4c5   :  { %504 = vrot.lane.b32.xlu0 %v4043_v50, %s4365_s25 }
 0x537   :  { %v505_v51 = vpop.permute.xlu0 %504 }
 0x538   :  { %v4583_v52 = vmul.f32 %v4041_v43, %v505_v51 }
 0x53a   :  { %v514_v53 = vrot.slane %v4583_v52, 2 }
 0x53c   :  { %515 = vrot.lane.b32.xlu1 %v514_v53, %s4366_s3 }
 0x5ae   :  { %v516_v54 = vpop.permute.xlu1 %515 }
 0x5af   :  { %3717 = vmatmul.mubr.msk.f32.vlgmr.msra.gmra.mxu0 %vm300_vm3, %v516_v54 }
 0x5b0   :  { %3731 = vmatpush3.msra.mxu0 %v4497_v4  ;;  %3738 = vmatprep.mubr.msk.f32.mxu0 %vm4364_vm1, %v4363_v5 }
 0x5b1   :  { %3732 = vmatprep.subr.mxu0 %v4363_v5 }
 0x5b2   :  { %3733 = vmatpush3.msra.mxu0 %v4505_v6 }
 0x5b3   :  { %3734 = vmatprep.subr.mxu0 %v4363_v5 }
 0x5b4   :  { %3735 = vmatpush3.msra.mxu0 %v4514_v7 }
 0x5b5   :  { %3736 = vmatprep.subr.mxu0 %v4363_v5 }
 0x5b6   :  { %3737 = vmatpush3.msra.mxu0 %v4521_v8 }
 0x5b7   :  { %3752 = vmatprep.subr.mxu0 %v4363_v5 }
 0x66f   :  { %v585_v55 = vpop.f32.mrf.mxu0 }
 0x670   :  { %v590_v56 = vrot.slane %v585_v55, 4 }
 0x671   :  { %v3718_v57 = vpop.f32.mrf.mxu0 }
 0x672   :  { %v592_v58 = vadd.f32 %v590_v56, %v4543_v13 }
 0x674   :  { %4044 = vtanh.f32 %v592_v58  ;;  %v3459_v60 = vmul.f32 -1.442695, %v592_v58 }
 0x676   :  { %4046 = vpow2.f32 %v3459_v60 }
 0x681   :  { %v4045_v59 = vpop.eup %4044 }
 0x682   :  { %605 = vrot.lane.b32.xlu0 %v4045_v59, %s4365_s25 }
 0x683   :  { %v4047_v61 = vpop.eup %4046 }
 0x684   :  { %v596_v62 = vadd.f32 1.0, %v4047_v61 }
 0x686   :  { %4048 = vrcp.f32 %v596_v62 }
 0x693   :  { %v4049_v63 = vpop.eup %4048 }
 0x694   :  { %v603_v3 = vmul.f32 %v4049_v63, %v601_v2 }
 0x6f4   :  { %v606_v0 = vpop.permute.xlu0 %605 }
 0x6f5   :  { %v608_v1 = vmul.f32 %v4049_v63, %v606_v0 }
 0x6f7   :  { %610 = vrot.lane.b32.xlu1 %v608_v1, %s4366_s3 }
 0x769   :  { %v611_v9 = vpop.permute.xlu1 %610 }
 0x76a   :  { %v613_v10 = vadd.f32 %v611_v9, %v603_v3 }
 0x76c   :  { %4050 = vtanh.f32 %v613_v10  ;;  %v713_v29 = vrot.slane %v613_v10, 6 }
 0x779   :  { %v4051_v12 = vpop.eup %4050 }
 0x77a   :  { %616 = vrot.lane.b32.xlu0 %v4051_v12, %s4365_s25 }
 0x7ec   :  { %v617_v14 = vpop.permute.xlu0 %616 }
 0x7ed   :  { %v4602_v15 = vmul.f32 %v4049_v63, %v617_v14 }
 0x7ef   :  { %v626_v16 = vrot.slane %v4602_v15, 4 }
 0x7f1   :  { %627 = vrot.lane.b32.xlu1 %v626_v16, %s4366_s3 }
 0x863   :  { %v628_v17 = vpop.permute.xlu1 %627 }
 0x864   :  { %3728 = vmatmul.mubr.msk.f32.vlgmr.msra.gmra.mxu1 %vm300_vm3, %v628_v17  ;;  %v4664_v17 = vld [vmem:[#allocation7 + $0x18] sm:$0xff] }
 0x865   :  { %3742 = vmatpush3.msra.mxu1 %v4497_v4  ;;  %3749 = vmatprep.mubr.msk.f32.mxu1 %vm4364_vm1, %v4363_v5 }
 0x866   :  { %3743 = vmatprep.subr.mxu1 %v4363_v5 }
 0x867   :  { %3744 = vmatpush3.msra.mxu1 %v4505_v6 }
 0x868   :  { %3745 = vmatprep.subr.mxu1 %v4363_v5 }
 0x869   :  { %3746 = vmatpush3.msra.mxu1 %v4514_v7 }
 0x86a   :  { %3747 = vmatprep.subr.mxu1 %v4363_v5 }
 0x86b   :  { %3748 = vmatpush3.msra.mxu1 %v4521_v8 }
 0x86c   :  { %3763 = vmatprep.subr.mxu1 %v4363_v5 }
 0x924   :  { %v697_v18 = vpop.f32.mrf.mxu1 }
 0x925   :  { %v702_v19 = vrot.slane %v697_v18, 2 }
 0x926   :  { %v3729_v20 = vpop.f32.mrf.mxu1 }
 0x927   :  { %v704_v21 = vadd.f32 %v702_v19, %v4543_v13  ;;  %v4667_v19 = vld [vmem:[#allocation7 + $0x10] sm:$0xff]  ;;  %v4673_v20 = vld [vmem:[#allocation7 + $0x8] sm:$0xff] }
 0x929   :  { %4052 = vtanh.f32 %v704_v21  ;;  %v3461_v23 = vmul.f32 -1.442695, %v704_v21  ;;  %v4677_v21 = vld [vmem:[#allocation7] sm:$0xff] }
 0x92b   :  { %4054 = vpow2.f32 %v3461_v23 }
 0x936   :  { %v4053_v22 = vpop.eup %4052 }
 0x937   :  { %717 = vrot.lane.b32.xlu0 %v4053_v22, %s4365_s25 }
 0x938   :  { %v4055_v24 = vpop.eup %4054 }
 0x939   :  { %v708_v25 = vadd.f32 1.0, %v4055_v24 }
 0x93b   :  { %4056 = vrcp.f32 %v708_v25 }
 0x948   :  { %v4057_v26 = vpop.eup %4056 }
 0x949   :  { %v715_v30 = vmul.f32 %v4057_v26, %v713_v29 }
 0x9a9   :  { %v718_v27 = vpop.permute.xlu0 %717 }
 0x9aa   :  { %v720_v28 = vmul.f32 %v4057_v26, %v718_v27 }
 0x9ac   :  { %722 = vrot.lane.b32.xlu1 %v720_v28, %s4366_s3 }
 0xa1e   :  { %v723_v31 = vpop.permute.xlu1 %722 }
 0xa1f   :  { %v725_v32 = vadd.f32 %v723_v31, %v715_v30 }
 0xa21   :  { %4058 = vtanh.f32 %v725_v32  ;;  %v822_v49 = vrot.slane %v725_v32, 6 }
 0xa2e   :  { %v4059_v13 = vpop.eup %4058 }
 0xa2f   :  { %728 = vrot.lane.b32.xlu0 %v4059_v13, %s4365_s25 }
 0xaa1   :  { %v729_v35 = vpop.permute.xlu0 %728 }
 0xaa2   :  { %v4621_v36 = vmul.f32 %v4057_v26, %v729_v35  ;;  %v4698_v26 = vld [vmem:[%s5134_s6] ss:$0 sm:$0xff] }
 0xaa3   :  { %v4702_v28 = vadd.f32 %v4575_v33, %v4698_v26 }
 0xaa4   :  { %v738_v37 = vrot.slane %v4621_v36, 6 }
 0xaa6   :  { %739 = vrot.lane.b32.xlu1 %v738_v37, %s4366_s3 }
 0xb18   :  { %v740_v38 = vpop.permute.xlu1 %739 }
 0xb19   :  { %3739 = vmatmul.mubr.msk.f32.vlgmr.msra.gmra.mxu0 %vm300_vm3, %v740_v38 }
 0xb1a   :  { %3753 = vmatpush3.msra.mxu0 %v4497_v4  ;;  %3760 = vmatprep.mubr.msk.f32.mxu0 %vm4364_vm1, %v4363_v5 }
 0xb1b   :  { %3754 = vmatprep.subr.mxu0 %v4363_v5 }
 0xb1c   :  { %3755 = vmatpush3.msra.mxu0 %v4505_v6 }
 0xb1d   :  { %3756 = vmatprep.subr.mxu0 %v4363_v5 }
 0xb1e   :  { %3757 = vmatpush3.msra.mxu0 %v4514_v7 }
 0xb1f   :  { %3758 = vmatprep.subr.mxu0 %v4363_v5 }
 0xb20   :  { %3759 = vmatpush3.msra.mxu0 %v4521_v8 }
 0xb21   :  { %3774 = vmatprep.subr.mxu0 %v4363_v5 }
 0xbd9   :  { %v809_v39 = vpop.f32.mrf.mxu0 }
 0xbda   :  { %v813_v40 = vadd.f32 %v809_v39, %v4541_v11 }
 0xbdb   :  { %v3740_v41 = vpop.f32.mrf.mxu0 }
 0xbdc   :  { %4060 = vtanh.f32 %v813_v40  ;;  %v3463_v43 = vmul.f32 -1.442695, %v813_v40 }
 0xbde   :  { %4062 = vpow2.f32 %v3463_v43 }
 0xbe9   :  { %v4061_v42 = vpop.eup %4060 }
 0xbea   :  { %826 = vrot.lane.b32.xlu0 %v4061_v42, %s4365_s25 }
 0xbeb   :  { %v4063_v44 = vpop.eup %4062 }
 0xbec   :  { %v817_v45 = vadd.f32 1.0, %v4063_v44 }
 0xbee   :  { %4064 = vrcp.f32 %v817_v45 }
 0xbfb   :  { %v4065_v46 = vpop.eup %4064 }
 0xbfc   :  { %v824_v50 = vmul.f32 %v4065_v46, %v822_v49 }
 0xc5c   :  { %v827_v47 = vpop.permute.xlu0 %826 }
 0xc5d   :  { %v829_v48 = vmul.f32 %v4065_v46, %v827_v47 }
 0xc5f   :  { %831 = vrot.lane.b32.xlu1 %v829_v48, %s4366_s3 }
 0xcd1   :  { %v832_v51 = vpop.permute.xlu1 %831 }
 0xcd2   :  { %v834_v53 = vadd.f32 %v832_v51, %v824_v50 }
 0xcd4   :  { %4066 = vtanh.f32 %v834_v53 }
 0xce1   :  { %v4067_v54 = vpop.eup %4066 }
 0xce2   :  { %837 = vrot.lane.b32.xlu0 %v4067_v54, %s4365_s25 }
 0xd54   :  { %v838_v55 = vpop.permute.xlu0 %837 }
 0xd55   :  { %v840_v56 = vmul.f32 %v4065_v46, %v838_v55 }
 0xd57   :  { %842 = vrot.lane.b32.xlu1 %v840_v56, %s4366_s3 }
 0xdc9   :  { %v843_v57 = vpop.permute.xlu1 %842 }
 0xdca   :  { %845 = vst.msk [vmem:[#allocation2 + $0x8] sm:$0x3] %vm403_vm2, %v843_v57  ;;  %3750 = vmatmul.mubr.msk.f32.vlgmr.msra.gmra.mxu1 %vm300_vm3, %v843_v57 }
 0xdcb   :  { %3764 = vmatpush3.msra.mxu1 %v4497_v4  ;;  %3771 = vmatprep.mubr.msk.f32.mxu1 %vm4364_vm1, %v4363_v5 }
 0xdcc   :  { %3765 = vmatprep.subr.mxu1 %v4363_v5 }
 0xdcd   :  { %3766 = vmatpush3.msra.mxu1 %v4505_v6 }
 0xdce   :  { %3767 = vmatprep.subr.mxu1 %v4363_v5 }
 0xdcf   :  { %3768 = vmatpush3.msra.mxu1 %v4514_v7 }
 0xdd0   :  { %3769 = vmatprep.subr.mxu1 %v4363_v5 }
 0xdd1   :  { %3770 = vmatpush3.msra.mxu1 %v4521_v8  ;;  %v930_v8 = vrot.slane %v834_v53, 6 }
 0xdd2   :  { %3785 = vmatprep.subr.mxu1 %v4363_v5 }
 0xe8a   :  { %v914_v58 = vpop.f32.mrf.mxu1 }
 0xe8b   :  { %v919_v59 = vrot.slane %v914_v58, 6 }
 0xe8c   :  { %v3751_v4 = vpop.f32.mrf.mxu1 }
 0xe8d   :  { %v921_v60 = vadd.f32 %v919_v59, %v4541_v11 }
 0xe8f   :  { %4068 = vtanh.f32 %v921_v60  ;;  %v3465_v6 = vmul.f32 -1.442695, %v921_v60 }
 0xe91   :  { %4070 = vpow2.f32 %v3465_v6 }
 0xe9c   :  { %v4069_v61 = vpop.eup %4068 }
 0xe9d   :  { %934 = vrot.lane.b32.xlu0 %v4069_v61, %s4365_s25 }
 0xe9e   :  { %v4071_v62 = vpop.eup %4070 }
 0xe9f   :  { %v925_v63 = vadd.f32 1.0, %v4071_v62 }
 0xea1   :  { %4072 = vrcp.f32 %v925_v63 }
 0xeae   :  { %v4073_v7 = vpop.eup %4072 }
 0xeaf   :  { %v932_v2 = vmul.f32 %v4073_v7, %v930_v8 }
 0xf0f   :  { %v935_v0 = vpop.permute.xlu0 %934 }
 0xf10   :  { %v937_v1 = vmul.f32 %v4073_v7, %v935_v0 }
 0xf12   :  { %939 = vrot.lane.b32.xlu1 %v937_v1, %s4366_s3 }
 0xf84   :  { %v940_v3 = vpop.permute.xlu1 %939 }
 0xf85   :  { %v4656_v9 = vadd.f32 %v940_v3, %v932_v2 }
 0xf87   :  { %4074 = vtanh.f32 %v4656_v9  ;;  %v1041_v47 = vrot.slane %v4656_v9, 6 }
 0xf94   :  { %v4075_v10 = vpop.eup %4074 }
 0xf95   :  { %945 = vrot.lane.b32.xlu0 %v4075_v10, %s4365_s25 }
0x1007   :  { %v946_v12 = vpop.permute.xlu0 %945 }
0x1008   :  { %v4660_v14 = vmul.f32 %v4073_v7, %v946_v12 }
0x100a   :  { %v954_v16 = vrot.slane %v4660_v14, 2 }
0x100c   :  { %955 = vrot.lane.b32.xlu1 %v954_v16, %s4366_s3 }
0x107e   :  { %v956_v18 = vpop.permute.xlu1 %955 }
0x107f   :  { %3761 = vmatmul.mubr.msk.f32.vlgmr.msra.gmra.mxu0 %vm300_vm3, %v956_v18 }
0x1080   :  { %3775 = vmatpush3.msra.mxu0 %v4664_v17  ;;  %3782 = vmatprep.mubr.msk.f32.mxu0 %vm4364_vm1, %v4363_v5 }
0x1081   :  { %3776 = vmatprep.subr.mxu0 %v4363_v5 }
0x1082   :  { %3777 = vmatpush3.msra.mxu0 %v4667_v19 }
0x1083   :  { %3778 = vmatprep.subr.mxu0 %v4363_v5 }
0x1084   :  { %3779 = vmatpush3.msra.mxu0 %v4673_v20 }
0x1085   :  { %3780 = vmatprep.subr.mxu0 %v4363_v5 }
0x1086   :  { %3781 = vmatpush3.msra.mxu0 %v4677_v21 }
0x1087   :  { %3783 = vmatmul.mubr.f32.vlgmr.msra.gmra.mxu0 %v4363_v5  ;;  %3796 = vmatprep.subr.mxu0 %v4363_v5 }
0x1088   :  { %3797 = vmatpush3.msra.mxu0 %v4664_v17  ;;  %3804 = vmatprep.mubr.msk.f32.mxu0 %vm4364_vm1, %v4363_v5 }
0x1089   :  { %3798 = vmatprep.subr.mxu0 %v4363_v5 }
0x108a   :  { %3799 = vmatpush3.msra.mxu0 %v4667_v19 }
0x108b   :  { %3800 = vmatprep.subr.mxu0 %v4363_v5 }
0x108c   :  { %3801 = vmatpush3.msra.mxu0 %v4673_v20 }
0x108d   :  { %3802 = vmatprep.subr.mxu0 %v4363_v5 }
0x108e   :  { %3803 = vmatpush3.msra.mxu0 %v4677_v21 }
0x108f   :  { %3818 = vmatprep.subr.mxu0 %v4363_v5 }
0x113f   :  { %v1025_v22 = vpop.f32.mrf.mxu0 }
0x1140   :  { %v1030_v23 = vrot.slane %v1025_v22, 4 }
0x1141   :  { %v3762_v24 = vpop.f32.mrf.mxu0 }
0x1142   :  { %v1032_v25 = vadd.f32 %v1030_v23, %v4541_v11 }
0x1144   :  { %4076 = vtanh.f32 %v1032_v25  ;;  %v3467_v35 = vmul.f32 -1.442695, %v1032_v25 }
0x1147   :  { %v1246_v27 = vpop.f32.mrf.mxu0 }
0x1148   :  { %v1251_v29 = vrot.slane %v1246_v27, 2 }
0x1149   :  { %v3784_v30 = vpop.f32.mrf.mxu0 }
0x114a   :  { %v1253_v31 = vadd.f32 %v1251_v29, %v4702_v28 }
0x114c   :  { %4078 = vtanh.f32 %v1253_v31  ;;  %v3470_v37 = vmul.f32 -1.442695, %v1253_v31 }
0x114d   :  { %4080 = vpow2.f32 %v3467_v35 }
0x114e   :  { %4082 = vpow2.f32 %v3470_v37 }
0x1151   :  { %v4077_v32 = vpop.eup %4076 }
0x1152   :  { %1045 = vrot.lane.b32.xlu0 %v4077_v32, %s4365_s25 }
0x1159   :  { %v4079_v13 = vpop.eup %4078 }
0x115a   :  { %1263 = vrot.lane.b32.xlu1 %v4079_v13, %s4365_s25  ;;  %v4081_v38 = vpop.eup %4080 }
0x115b   :  { %v1036_v39 = vadd.f32 1.0, %v4081_v38  ;;  %v4083_v33 = vpop.eup %4082 }
0x115c   :  { %v1257_v40 = vadd.f32 1.0, %v4083_v33 }
0x115d   :  { %4084 = vrcp.f32 %v1036_v39 }
0x115e   :  { %4086 = vrcp.f32 %v1257_v40 }
0x116a   :  { %v4085_v41 = vpop.eup %4084 }
0x116b   :  { %v4087_v44 = vpop.eup %4086  ;;  %v1043_v48 = vmul.f32 %v4085_v41, %v1041_v47 }
0x116c   :  { %v1261_v51 = vmul.f32 0.0, %v4087_v44 }
0x11c4   :  { %v1046_v42 = vpop.permute.xlu0 %1045 }
0x11c5   :  { %v1048_v43 = vmul.f32 %v4085_v41, %v1046_v42 }
0x11c7   :  { %1050 = vrot.lane.b32.xlu0 %v1048_v43, %s4366_s3 }
0x11cc   :  { %v1264_v45 = vpop.permute.xlu1 %1263 }
0x11cd   :  { %v1266_v46 = vmul.f32 %v4087_v44, %v1264_v45 }
0x11cf   :  { %1268 = vrot.lane.b32.xlu1 %v1266_v46, %s4366_s3 }
0x1239   :  { %v1051_v49 = vpop.permute.xlu0 %1050 }
0x123a   :  { %v4710_v50 = vadd.f32 %v1051_v49, %v1043_v48 }
0x123c   :  { %4088 = vtanh.f32 %v4710_v50 }
0x1241   :  { %v1269_v53 = vpop.permute.xlu1 %1268 }
0x1242   :  { %v1271_v54 = vadd.f32 %v1269_v53, %v1261_v51 }
0x1244   :  { %4090 = vtanh.f32 %v1271_v54  ;;  %v1370_v23 = vrot.slane %v1271_v54, 2 }
0x1249   :  { %v4089_v55 = vpop.eup %4088 }
0x124a   :  { %1056 = vrot.lane.b32.xlu0 %v4089_v55, %s4365_s25 }
0x1251   :  { %v4091_v56 = vpop.eup %4090 }
0x1252   :  { %1274 = vrot.lane.b32.xlu1 %v4091_v56, %s4365_s25 }
0x12bc   :  { %v1057_v57 = vpop.permute.xlu0 %1056 }
0x12bd   :  { %v4715_v58 = vmul.f32 %v4085_v41, %v1057_v57 }
0x12bf   :  { %v1065_v59 = vrot.slane %v4715_v58, 4 }
0x12c1   :  { %1066 = vrot.lane.b32.xlu0 %v1065_v59, %s4366_s3 }
0x12c4   :  { %v1275_v4 = vpop.permute.xlu1 %1274 }
0x12c5   :  { %v4719_v60 = vmul.f32 %v4087_v44, %v1275_v4 }
0x12c7   :  { %v1283_v61 = vrot.slane %v4719_v60, 6 }
0x12c9   :  { %1284 = vrot.lane.b32.xlu1 %v1283_v61, %s4366_s3 }
0x1333   :  { %v1067_v6 = vpop.permute.xlu0 %1066 }
0x1334   :  { %3772 = vmatmul.mubr.msk.f32.vlgmr.msra.gmra.mxu1 %vm300_vm3, %v1067_v6 }
0x1335   :  { %3786 = vmatpush3.msra.mxu1 %v4664_v17  ;;  %3793 = vmatprep.mubr.msk.f32.mxu1 %vm4364_vm1, %v4363_v5 }
0x1336   :  { %3787 = vmatprep.subr.mxu1 %v4363_v5 }
0x1337   :  { %3788 = vmatpush3.msra.mxu1 %v4667_v19 }
0x1338   :  { %3789 = vmatprep.subr.mxu1 %v4363_v5 }
0x1339   :  { %3790 = vmatpush3.msra.mxu1 %v4673_v20 }
0x133a   :  { %3791 = vmatprep.subr.mxu1 %v4363_v5 }
0x133b   :  { %3792 = vmatpush3.msra.mxu1 %v4677_v21  ;;  %v1285_v62 = vpop.permute.xlu1 %1284 }
0x133c   :  { %3794 = vmatmul.mubr.msk.f32.vlgmr.msra.gmra.mxu1 %vm300_vm3, %v1285_v62  ;;  %3807 = vmatprep.subr.mxu1 %v4363_v5 }
0x133d   :  { %3808 = vmatpush3.msra.mxu1 %v4664_v17  ;;  %3815 = vmatprep.mubr.msk.f32.mxu1 %vm4364_vm1, %v4363_v5 }
0x133e   :  { %3809 = vmatprep.subr.mxu1 %v4363_v5 }
0x133f   :  { %3810 = vmatpush3.msra.mxu1 %v4667_v19 }
0x1340   :  { %3811 = vmatprep.subr.mxu1 %v4363_v5 }
0x1341   :  { %3812 = vmatpush3.msra.mxu1 %v4673_v20 }
0x1342   :  { %3813 = vmatprep.subr.mxu1 %v4363_v5 }
0x1343   :  { %3814 = vmatpush3.msra.mxu1 %v4677_v21 }
0x1344   :  { %3829 = vmatprep.subr.mxu1 %v4363_v5 }
0x13f4   :  { %v4745_v63 = vpop.f32.mrf.mxu1 }
0x13f6   :  { %v3773_v7 = vpop.f32.mrf.mxu1 }
0x13fc   :  { %v1354_v0 = vpop.f32.mrf.mxu1 }
0x13fd   :  { %v1359_v1 = vrot.slane %v1354_v0, 4 }
0x13fe   :  { %v3795_v8 = vpop.f32.mrf.mxu1 }
0x13ff   :  { %v1361_v2 = vadd.f32 %v1359_v1, %v4702_v28 }
0x1401   :  { %4092 = vtanh.f32 %v1361_v2  ;;  %v3472_v9 = vmul.f32 -1.442695, %v1361_v2 }
0x1403   :  { %4094 = vpow2.f32 %v3472_v9 }
0x140e   :  { %v4093_v3 = vpop.eup %4092 }
0x140f   :  { %1374 = vrot.lane.b32.xlu0 %v4093_v3, %s4365_s25 }
0x1410   :  { %v4095_v10 = vpop.eup %4094 }
0x1411   :  { %v1365_v12 = vadd.f32 1.0, %v4095_v10 }
0x1413   :  { %4096 = vrcp.f32 %v1365_v12 }
0x1420   :  { %v4097_v16 = vpop.eup %4096 }
0x1421   :  { %v1372_v24 = vmul.f32 %v4097_v16, %v1370_v23  ;;  %v4803_v23 = vadd.f32 %v4698_v26, %v4577_v34 }
0x1481   :  { %v1375_v18 = vpop.permute.xlu0 %1374 }
0x1482   :  { %v1377_v22 = vmul.f32 %v4097_v16, %v1375_v18 }
0x1484   :  { %1379 = vrot.lane.b32.xlu1 %v1377_v22, %s4366_s3 }
0x14f6   :  { %v1380_v25 = vpop.permute.xlu1 %1379 }
0x14f7   :  { %v1382_v27 = vadd.f32 %v1380_v25, %v1372_v24 }
0x14f9   :  { %4098 = vtanh.f32 %v1382_v27  ;;  %v1481_v46 = vrot.slane %v1382_v27, 2 }
0x1506   :  { %v4099_v29 = vpop.eup %4098 }
0x1507   :  { %1385 = vrot.lane.b32.xlu0 %v4099_v29, %s4365_s25 }
0x1579   :  { %v1386_v30 = vpop.permute.xlu0 %1385 }
0x157a   :  { %v4751_v31 = vmul.f32 %v4097_v16, %v1386_v30 }
0x157c   :  { %v1394_v32 = vrot.slane %v4751_v31, 4 }
0x157e   :  { %1395 = vrot.lane.b32.xlu1 %v1394_v32, %s4366_s3 }
0x15f0   :  { %v1396_v13 = vpop.permute.xlu1 %1395 }
0x15f1   :  { %3805 = vmatmul.mubr.msk.f32.vlgmr.msra.gmra.mxu0 %vm300_vm3, %v1396_v13 }
0x15f2   :  { %3819 = vmatpush3.msra.mxu0 %v4664_v17  ;;  %3826 = vmatprep.mubr.msk.f32.mxu0 %vm4364_vm1, %v4363_v5 }
0x15f3   :  { %3820 = vmatprep.subr.mxu0 %v4363_v5 }
0x15f4   :  { %3821 = vmatpush3.msra.mxu0 %v4667_v19 }
0x15f5   :  { %3822 = vmatprep.subr.mxu0 %v4363_v5 }
0x15f6   :  { %3823 = vmatpush3.msra.mxu0 %v4673_v20 }
0x15f7   :  { %3824 = vmatprep.subr.mxu0 %v4363_v5 }
0x15f8   :  { %3825 = vmatpush3.msra.mxu0 %v4677_v21 }
0x15f9   :  { %3840 = vmatprep.subr.mxu0 %v4363_v5 }
0x16b1   :  { %v1465_v35 = vpop.f32.mrf.mxu0 }
0x16b2   :  { %v1470_v37 = vrot.slane %v1465_v35, 6 }
0x16b3   :  { %v3806_v38 = vpop.f32.mrf.mxu0 }
0x16b4   :  { %v1472_v39 = vadd.f32 %v1470_v37, %v4702_v28 }
0x16b6   :  { %4100 = vtanh.f32 %v1472_v39  ;;  %v3474_v40 = vmul.f32 -1.442695, %v1472_v39 }
0x16b8   :  { %4102 = vpow2.f32 %v3474_v40 }
0x16c3   :  { %v4101_v33 = vpop.eup %4100 }
0x16c4   :  { %1485 = vrot.lane.b32.xlu0 %v4101_v33, %s4365_s25 }
0x16c5   :  { %v4103_v41 = vpop.eup %4102 }
0x16c6   :  { %v1476_v42 = vadd.f32 1.0, %v4103_v41 }
0x16c8   :  { %4104 = vrcp.f32 %v1476_v42 }
0x16d5   :  { %v4105_v43 = vpop.eup %4104 }
0x16d6   :  { %v1483_v47 = vmul.f32 %v4105_v43, %v1481_v46 }
0x1736   :  { %v1486_v44 = vpop.permute.xlu0 %1485 }
0x1737   :  { %v1488_v45 = vmul.f32 %v4105_v43, %v1486_v44 }
0x1739   :  { %1490 = vrot.lane.b32.xlu1 %v1488_v45, %s4366_s3 }
0x17ab   :  { %v1491_v48 = vpop.permute.xlu1 %1490 }
0x17ac   :  { %v1493_v49 = vadd.f32 %v1491_v48, %v1483_v47 }
0x17ae   :  { %4106 = vtanh.f32 %v1493_v49  ;;  %v1589_v2 = vrot.slane %v1493_v49, 2 }
0x17bb   :  { %v4107_v51 = vpop.eup %4106 }
0x17bc   :  { %1496 = vrot.lane.b32.xlu0 %v4107_v51, %s4365_s25 }
0x182e   :  { %v1497_v53 = vpop.permute.xlu0 %1496 }
0x182f   :  { %v4770_v54 = vmul.f32 %v4105_v43, %v1497_v53 }
0x1831   :  { %v1505_v55 = vrot.slane %v4770_v54, 2 }
0x1833   :  { %1506 = vrot.lane.b32.xlu1 %v1505_v55, %s4366_s3 }
0x18a5   :  { %v1507_v56 = vpop.permute.xlu1 %1506 }
0x18a6   :  { %3816 = vmatmul.mubr.msk.f32.vlgmr.msra.gmra.mxu1 %vm300_vm3, %v1507_v56 }
0x18a7   :  { %3830 = vmatpush3.msra.mxu1 %v4664_v17  ;;  %3837 = vmatprep.mubr.msk.f32.mxu1 %vm4364_vm1, %v4363_v5 }
0x18a8   :  { %3831 = vmatprep.subr.mxu1 %v4363_v5 }
0x18a9   :  { %3832 = vmatpush3.msra.mxu1 %v4667_v19 }
0x18aa   :  { %3833 = vmatprep.subr.mxu1 %v4363_v5 }
0x18ab   :  { %3834 = vmatpush3.msra.mxu1 %v4673_v20 }
0x18ac   :  { %3835 = vmatprep.subr.mxu1 %v4363_v5 }
0x18ad   :  { %3836 = vmatpush3.msra.mxu1 %v4677_v21 }
0x18ae   :  { %3851 = vmatprep.subr.mxu1 %v4363_v5 }
0x1966   :  { %v1576_v57 = vpop.f32.mrf.mxu1 }
0x1967   :  { %v1580_v59 = vadd.f32 %v1576_v57, %v4702_v28 }
0x1968   :  { %v3817_v4 = vpop.f32.mrf.mxu1 }
0x1969   :  { %4108 = vtanh.f32 %v1580_v59  ;;  %v3476_v6 = vmul.f32 -1.442695, %v1580_v59 }
0x196b   :  { %4110 = vpow2.f32 %v3476_v6 }
0x1976   :  { %v4109_v61 = vpop.eup %4108 }
0x1977   :  { %1593 = vrot.lane.b32.xlu0 %v4109_v61, %s4365_s25 }
0x1978   :  { %v4111_v62 = vpop.eup %4110 }
0x1979   :  { %v1584_v7 = vadd.f32 1.0, %v4111_v62 }
0x197b   :  { %4112 = vrcp.f32 %v1584_v7 }
0x1988   :  { %v4113_v0 = vpop.eup %4112 }
0x1989   :  { %v1591_v3 = vmul.f32 %v4113_v0, %v1589_v2 }
0x19e9   :  { %v1594_v1 = vpop.permute.xlu0 %1593 }
0x19ea   :  { %v1596_v8 = vmul.f32 %v4113_v0, %v1594_v1 }
0x19ec   :  { %1598 = vrot.lane.b32.xlu1 %v1596_v8, %s4366_s3 }
0x1a5e   :  { %v1599_v9 = vpop.permute.xlu1 %1598 }
0x1a5f   :  { %v1601_v10 = vadd.f32 %v1599_v9, %v1591_v3 }
0x1a61   :  { %4114 = vtanh.f32 %v1601_v10  ;;  %v1697_v34 = vrot.slane %v1601_v10, 2 }
0x1a6e   :  { %v4115_v28 = vpop.eup %4114 }
0x1a6f   :  { %1604 = vrot.lane.b32.xlu0 %v4115_v28, %s4365_s25 }
0x1ae1   :  { %v1605_v12 = vpop.permute.xlu0 %1604 }
0x1ae2   :  { %v1607_v16 = vmul.f32 %v4113_v0, %v1605_v12 }
0x1ae4   :  { %1609 = vrot.lane.b32.xlu1 %v1607_v16, %s4366_s3 }
0x1b56   :  { %v1610_v18 = vpop.permute.xlu1 %1609 }
0x1b57   :  { %1612 = vst.msk [vmem:[#allocation3 + $0x8] sm:$0x3] %vm403_vm2, %v1610_v18  ;;  %3827 = vmatmul.mubr.msk.f32.vlgmr.msra.gmra.mxu0 %vm300_vm3, %v1610_v18 }
0x1b58   :  { %3841 = vmatpush3.msra.mxu0 %v4664_v17  ;;  %3848 = vmatprep.mubr.msk.f32.mxu0 %vm4364_vm1, %v4363_v5 }
0x1b59   :  { %3842 = vmatprep.subr.mxu0 %v4363_v5 }
0x1b5a   :  { %3843 = vmatpush3.msra.mxu0 %v4667_v19 }
0x1b5b   :  { %3844 = vmatprep.subr.mxu0 %v4363_v5 }
0x1b5c   :  { %3845 = vmatpush3.msra.mxu0 %v4673_v20 }
0x1b5d   :  { %3846 = vmatprep.subr.mxu0 %v4363_v5 }
0x1b5e   :  { %3847 = vmatpush3.msra.mxu0 %v4677_v21 }
0x1c17   :  { %v1681_v22 = vpop.f32.mrf.mxu0 }
0x1c18   :  { %v1686_v24 = vrot.slane %v1681_v22, 2 }
0x1c19   :  { %v3828_v25 = vpop.f32.mrf.mxu0 }
0x1c1a   :  { %v1688_v27 = vadd.f32 %v1686_v24, %v4803_v23 }
0x1c1c   :  { %4116 = vtanh.f32 %v1688_v27  ;;  %v3478_v30 = vmul.f32 -1.442695, %v1688_v27 }
0x1c1e   :  { %4118 = vpow2.f32 %v3478_v30  ;;  %v1141_v30 = vrot.slane %v4745_v63, 2 }
0x1c29   :  { %v4117_v29 = vpop.eup %4116 }
0x1c2a   :  { %1701 = vrot.lane.b32.xlu0 %v4117_v29, %s4365_s25 }
0x1c2b   :  { %v4119_v32 = vpop.eup %4118 }
0x1c2c   :  { %v1692_v13 = vadd.f32 1.0, %v4119_v32  ;;  %v1143_v32 = vadd.f32 %v1141_v30, %v4541_v11 }
0x1c2e   :  { %4120 = vrcp.f32 %v1692_v13 }
0x1c3b   :  { %v4121_v35 = vpop.eup %4120 }
0x1c3c   :  { %v1699_v26 = vmul.f32 %v4121_v35, %v1697_v34  ;;  %v3469_v34 = vmul.f32 -1.442695, %v1143_v32 }
0x1c9c   :  { %v1702_v37 = vpop.permute.xlu0 %1701 }
0x1c9d   :  { %v1704_v38 = vmul.f32 %v4121_v35, %v1702_v37 }
0x1c9f   :  { %1706 = vrot.lane.b32.xlu1 %v1704_v38, %s4366_s3 }
0x1d11   :  { %v1707_v39 = vpop.permute.xlu1 %1706 }
0x1d12   :  { %v1709_v33 = vadd.f32 %v1707_v39, %v1699_v26 }
0x1d14   :  { %4122 = vtanh.f32 %v1709_v33 }
0x1d21   :  { %v4123_v40 = vpop.eup %4122 }
0x1d22   :  { %1712 = vrot.lane.b32.xlu0 %v4123_v40, %s4365_s25 }
0x1d94   :  { %v1713_v41 = vpop.permute.xlu0 %1712 }
0x1d95   :  { %v4809_v42 = vmul.f32 %v4121_v35, %v1713_v41  ;;  %v1152_v41 = vrot.slane %v4710_v50, 6 }
0x1d97   :  { %v1721_v43 = vrot.slane %v4809_v42, 6 }
0x1d99   :  { %1722 = vrot.lane.b32.xlu1 %v1721_v43, %s4366_s3 }
0x1e0b   :  { %v1723_v44 = vpop.permute.xlu1 %1722 }
0x1e0c   :  { %3838 = vmatmul.mubr.msk.f32.vlgmr.msra.gmra.mxu1 %vm300_vm3, %v1723_v44 }
0x1e0d   :  { %3852 = vmatpush3.msra.mxu1 %v4664_v17  ;;  %3859 = vmatprep.mubr.msk.f32.mxu1 %vm4364_vm1, %v4363_v5 }
0x1e0e   :  { %3853 = vmatprep.subr.mxu1 %v4363_v5 }
0x1e0f   :  { %3854 = vmatpush3.msra.mxu1 %v4667_v19 }
0x1e10   :  { %3855 = vmatprep.subr.mxu1 %v4363_v5 }
0x1e11   :  { %3856 = vmatpush3.msra.mxu1 %v4673_v20 }
0x1e12   :  { %3857 = vmatprep.subr.mxu1 %v4363_v5 }
0x1e13   :  { %3858 = vmatpush3.msra.mxu1 %v4677_v21  ;;  %v1808_v21 = vrot.slane %v1709_v33, 2 }
0x1ecc   :  { %v1792_v45 = vpop.f32.mrf.mxu1 }
0x1ecd   :  { %v1797_v46 = vrot.slane %v1792_v45, 4 }
0x1ece   :  { %v3839_v47 = vpop.f32.mrf.mxu1 }
0x1ecf   :  { %v1799_v17 = vadd.f32 %v1797_v46, %v4803_v23 }
0x1ed1   :  { %4124 = vtanh.f32 %v1799_v17  ;;  %v3480_v49 = vmul.f32 -1.442695, %v1799_v17 }
0x1ed3   :  { %4126 = vpow2.f32 %v3480_v49 }
0x1ede   :  { %v4125_v48 = vpop.eup %4124 }
0x1edf   :  { %1812 = vrot.lane.b32.xlu0 %v4125_v48, %s4365_s25 }
0x1ee0   :  { %v4127_v19 = vpop.eup %4126 }
0x1ee1   :  { %v1803_v51 = vadd.f32 1.0, %v4127_v19 }
0x1ee3   :  { %4128 = vrcp.f32 %v1803_v51 }
0x1ef0   :  { %v4129_v53 = vpop.eup %4128 }
0x1ef1   :  { %v1810_v56 = vmul.f32 %v4129_v53, %v1808_v21 }
0x1f51   :  { %v1813_v20 = vpop.permute.xlu0 %1812 }
0x1f52   :  { %v1815_v55 = vmul.f32 %v4129_v53, %v1813_v20 }
0x1f54   :  { %1817 = vrot.lane.b32.xlu1 %v1815_v55, %s4366_s3 }
0x1fc6   :  { %v1818_v57 = vpop.permute.xlu1 %1817 }
0x1fc7   :  { %v1820_v59 = vadd.f32 %v1818_v57, %v1810_v56 }
0x1fc9   :  { %4130 = vtanh.f32 %v1820_v59  ;;  %v1919_v22 = vrot.slane %v1820_v59, 2 }
0x1fd6   :  { %v4131_v4 = vpop.eup %4130 }
0x1fd7   :  { %1823 = vrot.lane.b32.xlu0 %v4131_v4, %s4365_s25 }
0x2049   :  { %v1824_v61 = vpop.permute.xlu0 %1823 }
0x204a   :  { %v1826_v6 = vmul.f32 %v4129_v53, %v1824_v61 }
0x204c   :  { %v1832_v62 = vrot.slane %v1826_v6, 4 }
0x204e   :  { %1833 = vrot.lane.b32.xlu1 %v1832_v62, %s4366_s3  ;;  %v2057_v62 = vld [vmem:[%s5135_s7 + $0x10] sm:$0xff] }
0x20c0   :  { %v1834_v7 = vpop.permute.xlu1 %1833 }
0x20c1   :  { %3849 = vmatmul.mubr.msk.f32.vlgmr.msra.gmra.mxu0 %vm300_vm3, %v1834_v7  ;;  %v2056_v7 = vld [vmem:[%s5135_s7 + $0x8] sm:$0xff] }
0x2181   :  { %v1903_v0 = vpop.f32.mrf.mxu0 }
0x2182   :  { %v1908_v1 = vrot.slane %v1903_v0, 6 }
0x2183   :  { %v3850_v8 = vpop.f32.mrf.mxu0 }
0x2184   :  { %v1910_v2 = vadd.f32 %v1908_v1, %v4803_v23  ;;  %v2055_v1 = vld [vmem:[%s5135_s7] sm:$0xff] }
0x2186   :  { %4132 = vtanh.f32 %v1910_v2  ;;  %v3482_v9 = vmul.f32 -1.442695, %v1910_v2 }
0x2188   :  { %4134 = vpow2.f32 %v3482_v9 }
0x2193   :  { %v4133_v3 = vpop.eup %4132 }
0x2194   :  { %1923 = vrot.lane.b32.xlu0 %v4133_v3, %s4365_s25 }
0x2195   :  { %v4135_v10 = vpop.eup %4134 }
0x2196   :  { %v1914_v28 = vadd.f32 1.0, %v4135_v10 }
0x2198   :  { %4136 = vrcp.f32 %v1914_v28 }
0x21a5   :  { %v4137_v12 = vpop.eup %4136 }
0x21a6   :  { %v1921_v24 = vmul.f32 %v4137_v12, %v1919_v22 }
0x2206   :  { %v1924_v16 = vpop.permute.xlu0 %1923 }
0x2207   :  { %v1926_v18 = vmul.f32 %v4137_v12, %v1924_v16 }
0x2209   :  { %1928 = vrot.lane.b32.xlu1 %v1926_v18, %s4366_s3 }
0x227b   :  { %v1929_v25 = vpop.permute.xlu1 %1928 }
0x227c   :  { %v4832_v27 = vadd.f32 %v1929_v25, %v1921_v24  ;;  %v4911_v25 = vld [vmem:[#allocation9 + $0x18] sm:$0xff] }
0x227e   :  { %4138 = vtanh.f32 %v4832_v27  ;;  %v2027_v56 = vrot.slane %v4832_v27, 2 }
0x227f   :  { %4140 = vtanh.f32 %v1143_v32  ;;  %v4926_v32 = vld [vmem:[#allocation9 + $0x8] sm:$0xff] }
0x2280   :  { %4142 = vpow2.f32 %v3469_v34 }
0x228b   :  { %v4139_v29 = vpop.eup %4138 }
0x228c   :  { %1934 = vrot.lane.b32.xlu0 %v4139_v29, %s4365_s25  ;;  %v4141_v38 = vpop.eup %4140  ;;  %v4918_v29 = vld [vmem:[#allocation9 + $0x10] sm:$0xff] }
0x228d   :  { %v4143_v26 = vpop.eup %4142 }
0x228e   :  { %v1147_v39 = vadd.f32 1.0, %v4143_v26 }
0x2290   :  { %4144 = vrcp.f32 %v1147_v39 }
0x229d   :  { %v4145_v63 = vpop.eup %4144 }
0x229e   :  { %v1154_v43 = vmul.f32 %v4145_v63, %v1152_v41 }
0x22fe   :  { %v1935_v13 = vpop.permute.xlu0 %1934 }
0x22ff   :  { %v1937_v35 = vmul.f32 %v4137_v12, %v1935_v13  ;;  %v4932_v13 = vld [vmem:[#allocation9] sm:$0xff] }
0x2301   :  { %v1943_v37 = vrot.slane %v1937_v35, 2 }
0x2303   :  { %1944 = vrot.lane.b32.xlu1 %v1943_v37, %s4366_s3 }
0x2307   :  { %1156 = vrot.lane.b32.xlu1 %v4141_v38, %s4365_s25  ;;  %v3489_v38 = vld [vmem:[%s5137_s9] ss:$0 sm:$0xff] }
0x2375   :  { %v1945_v33 = vpop.permute.xlu1 %1944 }
0x2376   :  { %3860 = vmatmul.mubr.msk.f32.vlgmr.msra.gmra.mxu1 %vm300_vm3, %v1945_v33 }
0x2379   :  { %v1157_v40 = vpop.permute.xlu1 %1156 }
0x237a   :  { %v1159_v11 = vmul.f32 %v4145_v63, %v1157_v40 }
0x237c   :  { %1161 = vrot.lane.b32.xlu1 %v1159_v11, %s4366_s3 }
0x23ee   :  { %v1162_v44 = vpop.permute.xlu1 %1161 }
0x23ef   :  { %v1164_v45 = vadd.f32 %v1162_v44, %v1154_v43 }
0x23f1   :  { %4146 = vtanh.f32 %v1164_v45 }
0x23fe   :  { %v4147_v46 = vpop.eup %4146 }
0x23ff   :  { %1167 = vrot.lane.b32.xlu1 %v4147_v46, %s4365_s25 }
0x2403   :  { %1828 = vrot.lane.b32.xlu1 %v1826_v6, %s4366_s3 }
0x2407   :  { %621 = vrot.lane.b32.xlu1 %v4602_v15, %s4366_s3 }
0x240b   :  { %1279 = vrot.lane.b32.xlu1 %v4719_v60, %s4366_s3 }
0x240f   :  { %1501 = vrot.lane.b32.xlu1 %v4770_v54, %s4366_s3 }
0x2436   :  { %v2014_v47 = vpop.f32.mrf.mxu1 }
0x2437   :  { %v2018_v50 = vadd.f32 %v2014_v47, %v4803_v23 }
0x2438   :  { %v3861_v17 = vpop.f32.mrf.mxu1 }
0x2439   :  { %4148 = vtanh.f32 %v2018_v50  ;;  %v3484_v23 = vmul.f32 -1.442695, %v2018_v50 }
0x243b   :  { %4150 = vpow2.f32 %v3484_v23 }
0x2446   :  { %v4149_v48 = vpop.eup %4148 }
0x2447   :  { %2031 = vrot.lane.b32.xlu0 %v4149_v48, %s4365_s25 }
0x2448   :  { %v4151_v51 = vpop.eup %4150 }
0x2449   :  { %v2022_v53 = vadd.f32 1.0, %v4151_v51 }
0x244b   :  { %4152 = vrcp.f32 %v2022_v53 }
0x2458   :  { %v4153_v20 = vpop.eup %4152 }
0x2459   :  { %v2029_v57 = vmul.f32 %v4153_v20, %v2027_v56 }
0x2471   :  { %v1168_v49 = vpop.permute.xlu1 %1167 }
0x2472   :  { %v1170_v6 = vmul.f32 %v4145_v63, %v1168_v49 }
0x2475   :  { %v1829_v19 = vpop.permute.xlu1 %1828 }
0x2476   :  { %1831 = vst.msk [vmem:[#allocation3] sm:$0x30] %vm624_vm4, %v1829_v19 }
0x2479   :  { %v622_v15 = vpop.permute.xlu1 %621 }
0x247a   :  { %625 = vst.msk [vmem:[#allocation2] sm:$0x30] %vm624_vm4, %v622_v15 }
0x247d   :  { %v1280_v60 = vpop.permute.xlu1 %1279 }
0x247e   :  { %1282 = vst.msk [vmem:[#allocation3 + $0x8] sm:$0xc0] %vm736_vm5, %v1280_v60 }
0x2481   :  { %v1502_v54 = vpop.permute.xlu1 %1501 }
0x2482   :  { %1504 = vst.msk [vmem:[#allocation3 + $0x8] sm:$0xc] %vm512_vm6, %v1502_v54 }
0x24b9   :  { %v2032_v55 = vpop.permute.xlu0 %2031 }
0x24ba   :  { %v2034_v21 = vmul.f32 %v4153_v20, %v2032_v55 }
0x24bc   :  { %2036 = vrot.lane.b32.xlu0 %v2034_v21, %s4366_s3 }
0x252e   :  { %v2037_v59 = vpop.permute.xlu0 %2036 }
0x252f   :  { %v2039_v4 = vadd.f32 %v2037_v59, %v2029_v57 }
0x2531   :  { %4154 = vtanh.f32 %v2039_v4 }
0x253e   :  { %v4155_v61 = vpop.eup %4154 }
0x253f   :  { %2042 = vrot.lane.b32.xlu0 %v4155_v61, %s4365_s25 }
0x2543   :  { %1717 = vrot.lane.b32.xlu0 %v4809_v42, %s4366_s3  ;;  %v2062_v42 = vld [vmem:[%s5135_s7 + $0x38] sm:$0xff] }
0x2544   :  { %3862 = vmatprep.subr.mxu0 %v2062_v42 }
0x2545   :  { %3863 = vmatpush3.msra.mxu0 %v2062_v42 }
0x2547   :  { %1939 = vrot.lane.b32.xlu0 %v1937_v35, %s4366_s3 }
0x254b   :  { %509 = vrot.lane.b32.xlu0 %v4583_v52, %s4366_s3  ;;  %v2061_v52 = vld [vmem:[%s5135_s7 + $0x30] sm:$0xff] }
0x254c   :  { %3864 = vmatprep.subr.mxu0 %v2061_v52 }
0x254d   :  { %3865 = vmatpush3.msra.mxu0 %v2061_v52 }
0x254f   :  { %733 = vrot.lane.b32.xlu0 %v4621_v36, %s4366_s3  ;;  %v2060_v36 = vld [vmem:[%s5135_s7 + $0x28] sm:$0xff] }
0x2550   :  { %3866 = vmatprep.subr.mxu0 %v2060_v36 }
0x2551   :  { %3867 = vmatpush3.msra.mxu0 %v2060_v36 }
0x2553   :  { %1390 = vrot.lane.b32.xlu0 %v4751_v31, %s4366_s3  ;;  %v2059_v31 = vld [vmem:[%s5135_s7 + $0x20] sm:$0xff] }
0x2554   :  { %3868 = vmatprep.subr.mxu0 %v2059_v31 }
0x2555   :  { %3869 = vmatpush3.msra.mxu0 %v2059_v31 }
0x2556   :  { %3884 = vmatprep.subr.mxu0 %v4363_v5 }
0x2557   :  { %950 = vrot.lane.b32.xlu0 %v4660_v14, %s4366_s3  ;;  %v2058_v14 = vld [vmem:[%s5135_s7 + $0x18] sm:$0xff] }
0x2558   :  { %3873 = vmatprep.subr.mxu1 %v2058_v14 }
0x2559   :  { %3874 = vmatpush3.msra.mxu1 %v2058_v14 }
0x255a   :  { %3875 = vmatprep.subr.mxu1 %v2057_v62 }
0x255b   :  { %1172 = vrot.lane.b32.xlu0 %v1170_v6, %s4366_s3  ;;  %3876 = vmatpush3.msra.mxu1 %v2057_v62 }
0x255c   :  { %3877 = vmatprep.subr.mxu1 %v2056_v7 }
0x255d   :  { %3878 = vmatpush3.msra.mxu1 %v2056_v7 }
0x255e   :  { %3879 = vmatprep.subr.mxu1 %v2055_v1 }
0x255f   :  { %3880 = vmatpush3.msra.mxu1 %v2055_v1 }
0x2560   :  { %3895 = vmatprep.subr.mxu1 %v4363_v5 }
0x25b1   :  { %v2043_v0 = vpop.permute.xlu0 %2042 }
0x25b2   :  { %v2045_v8 = vmul.f32 %v4153_v20, %v2043_v0 }
0x25b4   :  { %2047 = vrot.lane.b32.xlu1 %v2045_v8, %s4366_s3 }
0x25b5   :  { %v1718_v2 = vpop.permute.xlu0 %1717 }
0x25b6   :  { %1720 = vst.msk [vmem:[#allocation3] sm:$0xc0] %vm736_vm5, %v1718_v2 }
0x25b8   :  { %1061 = vrot.lane.b32.xlu1 %v4715_v58, %s4366_s3 }
0x25b9   :  { %v1940_v3 = vpop.permute.xlu0 %1939 }
0x25ba   :  { %1942 = vst.msk [vmem:[#allocation3] sm:$0xc] %vm512_vm6, %v1940_v3 }
0x25bd   :  { %v510_v9 = vpop.permute.xlu0 %509 }
0x25be   :  { %513 = vst.msk [vmem:[#allocation2] sm:$0xc] %vm512_vm6, %v510_v9 }
0x25c1   :  { %v734_v10 = vpop.permute.xlu0 %733 }
0x25c2   :  { %737 = vst.msk [vmem:[#allocation2] sm:$0xc0] %vm736_vm5, %v734_v10 }
0x25c5   :  { %v1391_v28 = vpop.permute.xlu0 %1390 }
0x25c6   :  { %1393 = vst.msk [vmem:[#allocation3 + $0x8] sm:$0x30] %vm624_vm4, %v1391_v28 }
0x25c9   :  { %v951_v12 = vpop.permute.xlu0 %950  ;;  %v2051_v16 = vld [vmem:[#allocation2] sm:$0xff] }
0x25ca   :  { %953 = vst.msk [vmem:[#allocation2 + $0x8] sm:$0xc] %vm512_vm6, %v951_v12  ;;  %3881 = vmatprep.mubr.msk.f32.mxu1 %vm300_vm3, %v2051_v16 }
0x25cd   :  { %v1173_v18 = vpop.permute.xlu0 %1172  ;;  %v4914_v27 = vld [vmem:[#allocation3 + $0x8] sm:$0xff] }
0x25ce   :  { %1175 = vst.msk [vmem:[#allocation2 + $0x8] sm:$0xc0] %vm736_vm5, %v1173_v18 }
0x2626   :  { %v2048_v58 = vpop.permute.xlu1 %2047 }
0x2627   :  { %2050 = vst.msk [vmem:[#allocation3] sm:$0x3] %vm403_vm2, %v2048_v58 }
0x262a   :  { %v1062_v22 = vpop.permute.xlu1 %1061 }
0x262b   :  { %1064 = vst.msk [vmem:[#allocation2 + $0x8] sm:$0x30] %vm624_vm4, %v1062_v22 }
0x262e   :  { %v2053_v24 = vld [vmem:[#allocation3] sm:$0xff] }
0x262f   :  { %3870 = vmatprep.mubr.msk.f32.mxu0 %vm300_vm3, %v2053_v24 }
0x2630   :  { %3871 = vmatmul.mubr.msk.f32.vlgmr.msra.gmra.mxu0 %vm300_vm3, %v4914_v27 }
0x2631   :  { %3885 = vmatpush3.msra.mxu0 %v4911_v25  ;;  %3892 = vmatprep.mubr.msk.f32.mxu0 %vm4364_vm1, %v4363_v5 }
0x2632   :  { %3886 = vmatprep.subr.mxu0 %v4363_v5  ;;  %v4924_v30 = vld [vmem:[#allocation2 + $0x8] sm:$0xff] }
0x2633   :  { %3887 = vmatpush3.msra.mxu0 %v4918_v29  ;;  %3882 = vmatmul.mubr.msk.f32.vlgmr.msra.gmra.mxu1 %vm300_vm3, %v4924_v30 }
0x2634   :  { %3888 = vmatprep.subr.mxu0 %v4363_v5  ;;  %3896 = vmatpush3.msra.mxu1 %v4911_v25 }
0x2635   :  { %3889 = vmatpush3.msra.mxu0 %v4926_v32  ;;  %3897 = vmatprep.subr.mxu1 %v4363_v5 }
0x2636   :  { %3890 = vmatprep.subr.mxu0 %v4363_v5  ;;  %3898 = vmatpush3.msra.mxu1 %v4918_v29 }
0x2637   :  { %3891 = vmatpush3.msra.mxu0 %v4932_v13  ;;  %3899 = vmatprep.subr.mxu1 %v4363_v5 }
0x2638   :  { %3893 = vmatmul.mubr.f32.vlgmr.msra.gmra.mxu0 %v4363_v5  ;;  %3900 = vmatpush3.msra.mxu1 %v4926_v32 }
0x2639   :  { %3901 = vmatprep.subr.mxu1 %v4363_v5  ;;  %3903 = vmatprep.mubr.msk.f32.mxu1 %vm4364_vm1, %v4363_v5 }
0x263a   :  { %3902 = vmatpush3.msra.mxu1 %v4932_v13  ;;  %3906 = vmatprep.subr.mxu0 %v4363_v5 }
0x263b   :  { %3907 = vmatpush3.msra.mxu0 %v4911_v25  ;;  %3914 = vmatprep.mubr.msk.f32.mxu0 %vm4364_vm1, %v4363_v5 }
0x263c   :  { %3908 = vmatprep.subr.mxu0 %v4363_v5  ;;  %3917 = vmatprep.subr.mxu1 %v4363_v5 }
0x263d   :  { %3909 = vmatpush3.msra.mxu0 %v4918_v29 }
0x263e   :  { %3910 = vmatprep.subr.mxu0 %v4363_v5 }
0x263f   :  { %3911 = vmatpush3.msra.mxu0 %v4926_v32 }
0x2640   :  { %3912 = vmatprep.subr.mxu0 %v4363_v5 }
0x2641   :  { %3913 = vmatpush3.msra.mxu0 %v4932_v13 }
0x2642   :  { %3928 = vmatprep.subr.mxu0 %v4363_v5 }
0x26f0   :  { %v3872_v35 = vpop.f32.mrf.mxu0 }
0x26f2   :  { %v2143_v26 = vpop.f32.mrf.mxu0 }
0x26f3   :  { %v3883_v37 = vpop.f32.mrf.mxu1 }
0x26f4   :  { %v2230_v34 = vadd.f32 %v3883_v37, %v3872_v35 }
0x26f5   :  { %v2224_v39 = vpop.f32.mrf.mxu1 }
0x26f6   :  { %v4962_v33 = vadd.f32 %v3489_v38, %v2230_v34  ;;  %v2225_v63 = vadd.f32 %v2224_v39, %v2143_v26 }
0x26f8   :  { %v4964_v40 = vadd.f32 %v3489_v38, %v2225_v63  ;;  %v2312_v11 = vpop.f32.mrf.mxu0 }
0x26fa   :  { %v2316_v41 = vadd.f32 %v2312_v11, %v4964_v40  ;;  %v3894_v43 = vpop.f32.mrf.mxu0 }
0x26fc   :  { %4156 = vtanh.f32 %v2316_v41  ;;  %v3490_v45 = vmul.f32 -1.442695, %v2316_v41 }
0x26fe   :  { %4158 = vpow2.f32 %v3490_v45 }
0x2709   :  { %v4157_v44 = vpop.eup %4156 }
0x270a   :  { %2326 = vrot.lane.b32.xlu1 %v4157_v44, %s4365_s25 }
0x270b   :  { %v4159_v46 = vpop.eup %4158 }
0x270c   :  { %v2320_v47 = vadd.f32 1.0, %v4159_v46 }
0x270e   :  { %4160 = vrcp.f32 %v2320_v47 }
0x271b   :  { %v4161_v50 = vpop.eup %4160 }
0x271c   :  { %v2324_v49 = vmul.f32 0.0, %v4161_v50 }
0x277c   :  { %v2327_v17 = vpop.permute.xlu1 %2326 }
0x277d   :  { %v2329_v48 = vmul.f32 %v4161_v50, %v2327_v17 }
0x277f   :  { %2331 = vrot.lane.b32.xlu0 %v2329_v48, %s4366_s3 }
0x27f1   :  { %v2332_v19 = vpop.permute.xlu0 %2331 }
0x27f2   :  { %v2334_v15 = vadd.f32 %v2332_v19, %v2324_v49 }
0x27f4   :  { %4162 = vtanh.f32 %v2334_v15  ;;  %v2428_v52 = vrot.slane %v2334_v15, 6 }
0x2801   :  { %v4163_v60 = vpop.eup %4162 }
0x2802   :  { %2337 = vrot.lane.b32.xlu1 %v4163_v60, %s4365_s25 }
0x2874   :  { %v2338_v54 = vpop.permute.xlu1 %2337 }
0x2875   :  { %v2340_v23 = vmul.f32 %v4161_v50, %v2338_v54 }
0x2877   :  { %2342 = vrot.lane.b32.xlu0 %v2340_v23, %s4366_s3 }
0x28e9   :  { %v2343_v51 = vpop.permute.xlu0 %2342 }
0x28ea   :  { %3904 = vmatmul.mubr.msk.f32.vlgmr.msra.gmra.mxu1 %vm300_vm3, %v2343_v51 }
0x28eb   :  { %3918 = vmatpush3.msra.mxu1 %v4911_v25  ;;  %3925 = vmatprep.mubr.msk.f32.mxu1 %vm4364_vm1, %v4363_v5 }
0x28ec   :  { %3919 = vmatprep.subr.mxu1 %v4363_v5 }
0x28ed   :  { %3920 = vmatpush3.msra.mxu1 %v4918_v29 }
0x28ee   :  { %3921 = vmatprep.subr.mxu1 %v4363_v5 }
0x28ef   :  { %3922 = vmatpush3.msra.mxu1 %v4926_v32 }
0x28f0   :  { %3923 = vmatprep.subr.mxu1 %v4363_v5 }
0x28f1   :  { %3924 = vmatpush3.msra.mxu1 %v4932_v13 }
0x28f2   :  { %3939 = vmatprep.subr.mxu1 %v4363_v5 }
0x29aa   :  { %v2412_v53 = vpop.f32.mrf.mxu1 }
0x29ab   :  { %v2417_v20 = vrot.slane %v2412_v53, 6 }
0x29ac   :  { %v3905_v55 = vpop.f32.mrf.mxu1 }
0x29ad   :  { %v2419_v21 = vadd.f32 %v2417_v20, %v4964_v40 }
0x29af   :  { %4164 = vtanh.f32 %v2419_v21  ;;  %v3492_v57 = vmul.f32 -1.442695, %v2419_v21 }
0x29b1   :  { %4166 = vpow2.f32 %v3492_v57 }
0x29bc   :  { %v4165_v56 = vpop.eup %4164 }
0x29bd   :  { %2432 = vrot.lane.b32.xlu1 %v4165_v56, %s4365_s25 }
0x29be   :  { %v4167_v59 = vpop.eup %4166 }
0x29bf   :  { %v2423_v4 = vadd.f32 1.0, %v4167_v59 }
0x29c1   :  { %4168 = vrcp.f32 %v2423_v4 }
0x29ce   :  { %v4169_v61 = vpop.eup %4168 }
0x29cf   :  { %v2430_v36 = vmul.f32 %v4169_v61, %v2428_v52 }
0x2a2f   :  { %v2433_v6 = vpop.permute.xlu1 %2432 }
0x2a30   :  { %v2435_v42 = vmul.f32 %v4169_v61, %v2433_v6 }
0x2a32   :  { %2437 = vrot.lane.b32.xlu0 %v2435_v42, %s4366_s3 }
0x2aa4   :  { %v2438_v14 = vpop.permute.xlu0 %2437 }
0x2aa5   :  { %v2440_v31 = vadd.f32 %v2438_v14, %v2430_v36 }
0x2aa7   :  { %4170 = vtanh.f32 %v2440_v31  ;;  %v2535_v35 = vrot.slane %v2440_v31, 6 }
0x2ab4   :  { %v4171_v62 = vpop.eup %4170 }
0x2ab5   :  { %2443 = vrot.lane.b32.xlu1 %v4171_v62, %s4365_s25 }
0x2b27   :  { %v2444_v7 = vpop.permute.xlu1 %2443 }
0x2b28   :  { %v2446_v0 = vmul.f32 %v4169_v61, %v2444_v7 }
0x2b2a   :  { %v2448_v1 = vrot.slane %v2446_v0, 2 }
0x2b2c   :  { %2449 = vrot.lane.b32.xlu0 %v2448_v1, %s4366_s3 }
0x2b9e   :  { %v2450_v8 = vpop.permute.xlu0 %2449 }
0x2b9f   :  { %3915 = vmatmul.mubr.msk.f32.vlgmr.msra.gmra.mxu0 %vm300_vm3, %v2450_v8 }
0x2ba0   :  { %3929 = vmatpush3.msra.mxu0 %v4911_v25  ;;  %3936 = vmatprep.mubr.msk.f32.mxu0 %vm4364_vm1, %v4363_v5 }
0x2ba1   :  { %3930 = vmatprep.subr.mxu0 %v4363_v5 }
0x2ba2   :  { %3931 = vmatpush3.msra.mxu0 %v4918_v29 }
0x2ba3   :  { %3932 = vmatprep.subr.mxu0 %v4363_v5 }
0x2ba4   :  { %3933 = vmatpush3.msra.mxu0 %v4926_v32 }
0x2ba5   :  { %3934 = vmatprep.subr.mxu0 %v4363_v5 }
0x2ba6   :  { %3935 = vmatpush3.msra.mxu0 %v4932_v13 }
0x2ba7   :  { %3950 = vmatprep.subr.mxu0 %v4363_v5 }
0x2c5f   :  { %v2519_v2 = vpop.f32.mrf.mxu0 }
0x2c60   :  { %v2524_v3 = vrot.slane %v2519_v2, 4 }
0x2c61   :  { %v3916_v9 = vpop.f32.mrf.mxu0 }
0x2c62   :  { %v2526_v10 = vadd.f32 %v2524_v3, %v4964_v40 }
0x2c64   :  { %4172 = vtanh.f32 %v2526_v10  ;;  %v3494_v12 = vmul.f32 -1.442695, %v2526_v10 }
0x2c66   :  { %4174 = vpow2.f32 %v3494_v12 }
0x2c71   :  { %v4173_v28 = vpop.eup %4172 }
0x2c72   :  { %2539 = vrot.lane.b32.xlu1 %v4173_v28, %s4365_s25 }
0x2c73   :  { %v4175_v16 = vpop.eup %4174 }
0x2c74   :  { %v2530_v18 = vadd.f32 1.0, %v4175_v16 }
0x2c76   :  { %4176 = vrcp.f32 %v2530_v18 }
0x2c83   :  { %v4177_v58 = vpop.eup %4176 }
0x2c84   :  { %v2537_v37 = vmul.f32 %v4177_v58, %v2535_v35 }
0x2ce4   :  { %v2540_v22 = vpop.permute.xlu1 %2539 }
0x2ce5   :  { %v2542_v24 = vmul.f32 %v4177_v58, %v2540_v22 }
0x2ce7   :  { %2544 = vrot.lane.b32.xlu0 %v2542_v24, %s4366_s3 }
0x2d59   :  { %v2545_v38 = vpop.permute.xlu0 %2544 }
0x2d5a   :  { %v2547_v34 = vadd.f32 %v2545_v38, %v2537_v37 }
0x2d5c   :  { %4178 = vtanh.f32 %v2547_v34  ;;  %v2642_v60 = vrot.slane %v2547_v34, 6 }
0x2d69   :  { %v4179_v26 = vpop.eup %4178 }
0x2d6a   :  { %2550 = vrot.lane.b32.xlu1 %v4179_v26, %s4365_s25 }
0x2ddc   :  { %v2551_v39 = vpop.permute.xlu1 %2550 }
0x2ddd   :  { %v2553_v63 = vmul.f32 %v4177_v58, %v2551_v39 }
0x2ddf   :  { %v2555_v11 = vrot.slane %v2553_v63, 4  ;;  %v2070_v63 = vld [vmem:[#allocation10 + $0x38] sm:$0xff] }
0x2de1   :  { %2556 = vrot.lane.b32.xlu0 %v2555_v11, %s4366_s3 }
0x2e53   :  { %v2557_v41 = vpop.permute.xlu0 %2556 }
0x2e54   :  { %3926 = vmatmul.mubr.msk.f32.vlgmr.msra.gmra.mxu1 %vm300_vm3, %v2557_v41  ;;  %v2069_v41 = vld [vmem:[#allocation10 + $0x30] sm:$0xff] }
0x2e55   :  { %3940 = vmatpush3.msra.mxu1 %v4911_v25  ;;  %3947 = vmatprep.mubr.msk.f32.mxu1 %vm4364_vm1, %v4363_v5 }
0x2e56   :  { %3941 = vmatprep.subr.mxu1 %v4363_v5 }
0x2e57   :  { %3942 = vmatpush3.msra.mxu1 %v4918_v29 }
0x2e58   :  { %3943 = vmatprep.subr.mxu1 %v4363_v5 }
0x2e59   :  { %3944 = vmatpush3.msra.mxu1 %v4926_v32 }
0x2e5a   :  { %3945 = vmatprep.subr.mxu1 %v4363_v5 }
0x2e5b   :  { %3946 = vmatpush3.msra.mxu1 %v4932_v13 }
0x2e5c   :  { %3961 = vmatprep.subr.mxu1 %v4363_v5 }
0x2f14   :  { %v2626_v43 = vpop.f32.mrf.mxu1 }
0x2f15   :  { %v2631_v44 = vrot.slane %v2626_v43, 2  ;;  %v2068_v43 = vld [vmem:[#allocation10 + $0x28] sm:$0xff] }
0x2f16   :  { %v3927_v45 = vpop.f32.mrf.mxu1 }
0x2f17   :  { %v2633_v46 = vadd.f32 %v2631_v44, %v4964_v40  ;;  %v2067_v44 = vld [vmem:[#allocation10 + $0x20] sm:$0xff]  ;;  %v3085_v45 = vrot.slane %v4914_v27, 6 }
0x2f19   :  { %4180 = vtanh.f32 %v2633_v46  ;;  %v3496_v50 = vmul.f32 -1.442695, %v2633_v46 }
0x2f1b   :  { %4182 = vpow2.f32 %v3496_v50 }
0x2f26   :  { %v4181_v47 = vpop.eup %4180 }
0x2f27   :  { %2646 = vrot.lane.b32.xlu1 %v4181_v47, %s4365_s25 }
0x2f28   :  { %v4183_v17 = vpop.eup %4182 }
0x2f29   :  { %v2637_v48 = vadd.f32 1.0, %v4183_v17 }
0x2f2b   :  { %4184 = vrcp.f32 %v2637_v48 }
0x2f38   :  { %v4185_v49 = vpop.eup %4184 }
0x2f39   :  { %v2644_v54 = vmul.f32 %v4185_v49, %v2642_v60 }
0x2f99   :  { %v2647_v19 = vpop.permute.xlu1 %2646 }
0x2f9a   :  { %v2649_v15 = vmul.f32 %v4185_v49, %v2647_v19 }
0x2f9c   :  { %2651 = vrot.lane.b32.xlu0 %v2649_v15, %s4366_s3 }
0x300e   :  { %v2652_v23 = vpop.permute.xlu0 %2651 }
0x300f   :  { %v2654_v51 = vadd.f32 %v2652_v23, %v2644_v54 }
0x3011   :  { %4186 = vtanh.f32 %v2654_v51  ;;  %v2746_v31 = vrot.slane %v2654_v51, 6 }
0x301e   :  { %v4187_v40 = vpop.eup %4186 }
0x301f   :  { %2657 = vrot.lane.b32.xlu1 %v4187_v40, %s4365_s25 }
0x3091   :  { %v2658_v53 = vpop.permute.xlu1 %2657 }
0x3092   :  { %v2660_v20 = vmul.f32 %v4185_v49, %v2658_v53 }
0x3094   :  { %v2662_v55 = vrot.slane %v2660_v20, 6 }
0x3096   :  { %2663 = vrot.lane.b32.xlu0 %v2662_v55, %s4366_s3 }
0x3108   :  { %v2664_v21 = vpop.permute.xlu0 %2663 }
0x3109   :  { %3937 = vmatmul.mubr.msk.f32.vlgmr.msra.gmra.mxu0 %vm300_vm3, %v2664_v21 }
0x310a   :  { %3951 = vmatpush3.msra.mxu0 %v4911_v25  ;;  %3958 = vmatprep.mubr.msk.f32.mxu0 %vm4364_vm1, %v4363_v5 }
0x310b   :  { %3952 = vmatprep.subr.mxu0 %v4363_v5 }
0x310c   :  { %3953 = vmatpush3.msra.mxu0 %v4918_v29 }
0x310d   :  { %3954 = vmatprep.subr.mxu0 %v4363_v5 }
0x310e   :  { %3955 = vmatpush3.msra.mxu0 %v4926_v32 }
0x310f   :  { %3956 = vmatprep.subr.mxu0 %v4363_v5 }
0x3110   :  { %3957 = vmatpush3.msra.mxu0 %v4932_v13 }
0x3111   :  { %3972 = vmatprep.subr.mxu0 %v4363_v5 }
0x31c9   :  { %v2733_v56 = vpop.f32.mrf.mxu0 }
0x31ca   :  { %v2737_v57 = vadd.f32 %v2733_v56, %v4962_v33 }
0x31cb   :  { %v3938_v59 = vpop.f32.mrf.mxu0 }
0x31cc   :  { %4188 = vtanh.f32 %v2737_v57  ;;  %v3498_v61 = vmul.f32 -1.442695, %v2737_v57 }
0x31ce   :  { %4190 = vpow2.f32 %v3498_v61 }
0x31d9   :  { %v4189_v4 = vpop.eup %4188 }
0x31da   :  { %2750 = vrot.lane.b32.xlu1 %v4189_v4, %s4365_s25  ;;  %v2066_v4 = vld [vmem:[#allocation10 + $0x18] sm:$0xff] }
0x31db   :  { %v4191_v6 = vpop.eup %4190 }
0x31dc   :  { %v2741_v42 = vadd.f32 1.0, %v4191_v6  ;;  %v2065_v6 = vld [vmem:[#allocation10 + $0x10] sm:$0xff] }
0x31de   :  { %4192 = vrcp.f32 %v2741_v42  ;;  %v2064_v42 = vld [vmem:[#allocation10 + $0x8] sm:$0xff] }
0x31eb   :  { %v4193_v52 = vpop.eup %4192 }
0x31ec   :  { %v2748_v62 = vmul.f32 %v4193_v52, %v2746_v31 }
0x324c   :  { %v2751_v36 = vpop.permute.xlu1 %2750 }
0x324d   :  { %v2753_v14 = vmul.f32 %v4193_v52, %v2751_v36  ;;  %v3158_v36 = vrot.slane %v4924_v30, 6  ;;  %v3507_v30 = vld [vmem:[%s5140_s12] ss:$0 sm:$0xff] }
0x324f   :  { %2755 = vrot.lane.b32.xlu0 %v2753_v14, %s4366_s3 }
0x32c1   :  { %v2756_v7 = vpop.permute.xlu0 %2755 }
0x32c2   :  { %v2758_v0 = vadd.f32 %v2756_v7, %v2748_v62 }
0x32c4   :  { %4194 = vtanh.f32 %v2758_v0 }
0x32d1   :  { %v4195_v1 = vpop.eup %4194 }
0x32d2   :  { %2761 = vrot.lane.b32.xlu1 %v4195_v1, %s4365_s25 }
0x3344   :  { %v2762_v8 = vpop.permute.xlu1 %2761 }
0x3345   :  { %v2764_v2 = vmul.f32 %v4193_v52, %v2762_v8  ;;  %v2063_v52 = vld [vmem:[#allocation10] sm:$0xff] }
0x3347   :  { %2766 = vrot.lane.b32.xlu0 %v2764_v2, %s4366_s3 }
0x33b9   :  { %v2767_v3 = vpop.permute.xlu0 %2766 }
0x33ba   :  { %3948 = vmatmul.mubr.msk.f32.vlgmr.msra.gmra.mxu1 %vm300_vm3, %v2767_v3 }
0x33bb   :  { %3962 = vmatpush3.msra.mxu1 %v4911_v25  ;;  %3969 = vmatprep.mubr.msk.f32.mxu1 %vm4364_vm1, %v4363_v5 }
0x33bc   :  { %3963 = vmatprep.subr.mxu1 %v4363_v5 }
0x33bd   :  { %3964 = vmatpush3.msra.mxu1 %v4918_v29 }
0x33be   :  { %3965 = vmatprep.subr.mxu1 %v4363_v5 }
0x33bf   :  { %3966 = vmatpush3.msra.mxu1 %v4926_v32 }
0x33c0   :  { %3967 = vmatprep.subr.mxu1 %v4363_v5 }
0x33c1   :  { %3968 = vmatpush3.msra.mxu1 %v4932_v13  ;;  %v2852_v13 = vrot.slane %v2758_v0, 6 }
0x33c2   :  { %3983 = vmatprep.subr.mxu1 %v4363_v5 }
0x347a   :  { %v2836_v9 = vpop.f32.mrf.mxu1 }
0x347b   :  { %v2841_v10 = vrot.slane %v2836_v9, 6 }
0x347c   :  { %v3949_v25 = vpop.f32.mrf.mxu1 }
0x347d   :  { %v2843_v28 = vadd.f32 %v2841_v10, %v4962_v33 }
0x347f   :  { %4196 = vtanh.f32 %v2843_v28  ;;  %v3500_v29 = vmul.f32 -1.442695, %v2843_v28 }
0x3481   :  { %4198 = vpow2.f32 %v3500_v29 }
0x348c   :  { %v4197_v12 = vpop.eup %4196 }
0x348d   :  { %2856 = vrot.lane.b32.xlu1 %v4197_v12, %s4365_s25 }
0x348e   :  { %v4199_v16 = vpop.eup %4198 }
0x348f   :  { %v2847_v18 = vadd.f32 1.0, %v4199_v16 }
0x3491   :  { %4200 = vrcp.f32 %v2847_v18 }
0x349e   :  { %v4201_v32 = vpop.eup %4200 }
0x349f   :  { %v2854_v24 = vmul.f32 %v4201_v32, %v2852_v13 }
0x34ff   :  { %v2857_v58 = vpop.permute.xlu1 %2856 }
0x3500   :  { %v2859_v22 = vmul.f32 %v4201_v32, %v2857_v58 }
0x3502   :  { %2861 = vrot.lane.b32.xlu0 %v2859_v22, %s4366_s3 }
0x3574   :  { %v2862_v35 = vpop.permute.xlu0 %2861 }
0x3575   :  { %v2864_v37 = vadd.f32 %v2862_v35, %v2854_v24 }
0x3577   :  { %4202 = vtanh.f32 %v2864_v37  ;;  %v2959_v40 = vrot.slane %v2864_v37, 6 }
0x3584   :  { %v4203_v38 = vpop.eup %4202 }
0x3585   :  { %2867 = vrot.lane.b32.xlu1 %v4203_v38, %s4365_s25 }
0x35f7   :  { %v2868_v34 = vpop.permute.xlu1 %2867 }
0x35f8   :  { %v2870_v26 = vmul.f32 %v4201_v32, %v2868_v34 }
0x35fa   :  { %v2872_v39 = vrot.slane %v2870_v26, 2 }
0x35fc   :  { %2873 = vrot.lane.b32.xlu0 %v2872_v39, %s4366_s3 }
0x366e   :  { %v2874_v11 = vpop.permute.xlu0 %2873 }
0x366f   :  { %3959 = vmatmul.mubr.msk.f32.vlgmr.msra.gmra.mxu0 %vm300_vm3, %v2874_v11  ;;  %v3265_v11 = vld [vmem:[%s5141_s13 + $0x10] sm:$0xff] }
0x3670   :  { %3973 = vmatpush3.msra.mxu0 %v2070_v63  ;;  %3980 = vmatprep.mubr.msk.f32.mxu0 %vm4364_vm1, %v4363_v5  ;;  %v3266_v63 = vld [vmem:[%s5141_s13 + $0x18] sm:$0xff] }
0x3671   :  { %3974 = vmatprep.subr.mxu0 %v4363_v5 }
0x3672   :  { %3975 = vmatpush3.msra.mxu0 %v2069_v41  ;;  %v3270_v41 = vld [vmem:[%s5141_s13 + $0x38] sm:$0xff] }
0x3673   :  { %3976 = vmatprep.subr.mxu0 %v4363_v5 }
0x3674   :  { %3977 = vmatpush3.msra.mxu0 %v2068_v43 }
0x3675   :  { %3978 = vmatprep.subr.mxu0 %v4363_v5 }
0x3676   :  { %3979 = vmatpush3.msra.mxu0 %v2067_v44  ;;  %v3264_v44 = vld [vmem:[%s5141_s13 + $0x8] sm:$0xff] }
0x3677   :  { %3981 = vmatmul.mubr.msk.f32.vlgmr.msra.gmra.mxu0 %vm300_vm3, %v3085_v45  ;;  %3994 = vmatprep.subr.mxu0 %v4363_v5  ;;  %v3263_v45 = vld [vmem:[%s5141_s13] sm:$0xff] }
0x3678   :  { %4002 = vmatprep.mubr.msk.f32.mxu0 %vm4364_vm1, %v4363_v5  ;;  %3995 = vmatpush3.msra.mxu0 %v3270_v41 }
0x3679   :  { %3996 = vmatprep.subr.mxu0 %v4363_v5 }
0x372f   :  { %v2943_v46 = vpop.f32.mrf.mxu0 }
0x3730   :  { %v2948_v47 = vrot.slane %v2943_v46, 4 }
0x3731   :  { %v3960_v50 = vpop.f32.mrf.mxu0 }
0x3732   :  { %v2950_v17 = vadd.f32 %v2948_v47, %v4962_v33  ;;  %v3269_v47 = vld [vmem:[%s5141_s13 + $0x30] sm:$0xff]  ;;  %v3268_v50 = vld [vmem:[%s5141_s13 + $0x28] sm:$0xff] }
0x3733   :  { %3997 = vmatpush3.msra.mxu0 %v3269_v47 }
0x3734   :  { %4204 = vtanh.f32 %v2950_v17  ;;  %v3502_v27 = vmul.f32 -1.442695, %v2950_v17  ;;  %3998 = vmatprep.subr.mxu0 %v4363_v5  ;;  %v3267_v17 = vld [vmem:[%s5141_s13 + $0x20] sm:$0xff] }
0x3735   :  { %3999 = vmatpush3.msra.mxu0 %v3268_v50 }
0x3736   :  { %4206 = vpow2.f32 %v3502_v27  ;;  %4000 = vmatprep.subr.mxu0 %v4363_v5 }
0x3737   :  { %v3154_v48 = vpop.f32.mrf.mxu0  ;;  %4001 = vmatpush3.msra.mxu0 %v3267_v17 }
0x3739   :  { %v3982_v49 = vpop.f32.mrf.mxu0 }
0x3741   :  { %v4205_v19 = vpop.eup %4204 }
0x3742   :  { %2963 = vrot.lane.b32.xlu1 %v4205_v19, %s4365_s25 }
0x3743   :  { %v4207_v15 = vpop.eup %4206 }
0x3744   :  { %v2954_v60 = vadd.f32 1.0, %v4207_v15 }
0x3746   :  { %4208 = vrcp.f32 %v2954_v60 }
0x3753   :  { %v4209_v54 = vpop.eup %4208 }
0x3754   :  { %v2961_v53 = vmul.f32 %v4209_v54, %v2959_v40 }
0x37b4   :  { %v2964_v23 = vpop.permute.xlu1 %2963 }
0x37b5   :  { %v2966_v51 = vmul.f32 %v4209_v54, %v2964_v23 }
0x37b7   :  { %2968 = vrot.lane.b32.xlu0 %v2966_v51, %s4366_s3 }
0x3829   :  { %v2969_v20 = vpop.permute.xlu0 %2968 }
0x382a   :  { %v2971_v55 = vadd.f32 %v2969_v20, %v2961_v53 }
0x382c   :  { %4210 = vtanh.f32 %v2971_v55  ;;  %v3066_v24 = vrot.slane %v2971_v55, 6 }
0x3839   :  { %v4211_v21 = vpop.eup %4210 }
0x383a   :  { %2974 = vrot.lane.b32.xlu1 %v4211_v21, %s4365_s25 }
0x38ac   :  { %v2975_v56 = vpop.permute.xlu1 %2974 }
0x38ad   :  { %v2977_v57 = vmul.f32 %v4209_v54, %v2975_v56 }
0x38af   :  { %v2979_v59 = vrot.slane %v2977_v57, 4 }
0x38b1   :  { %2980 = vrot.lane.b32.xlu0 %v2979_v59, %s4366_s3 }
0x3923   :  { %v2981_v61 = vpop.permute.xlu0 %2980 }
0x3924   :  { %3970 = vmatmul.mubr.msk.f32.vlgmr.msra.gmra.mxu1 %vm300_vm3, %v2981_v61 }
0x3925   :  { %3984 = vmatpush3.msra.mxu1 %v2066_v4  ;;  %3991 = vmatprep.mubr.msk.f32.mxu1 %vm4364_vm1, %v4363_v5 }
0x3926   :  { %3985 = vmatprep.subr.mxu1 %v4363_v5 }
0x3927   :  { %3986 = vmatpush3.msra.mxu1 %v2065_v6 }
0x3928   :  { %3987 = vmatprep.subr.mxu1 %v4363_v5 }
0x3929   :  { %3988 = vmatpush3.msra.mxu1 %v2064_v42 }
0x392a   :  { %3989 = vmatprep.subr.mxu1 %v4363_v5 }
0x392b   :  { %3990 = vmatpush3.msra.mxu1 %v2063_v52 }
0x392c   :  { %3992 = vmatmul.mubr.msk.f32.vlgmr.msra.gmra.mxu1 %vm300_vm3, %v3158_v36  ;;  %4005 = vmatprep.subr.mxu1 %v4363_v5 }
0x392d   :  { %4013 = vmatprep.mubr.msk.f32.mxu1 %vm4364_vm1, %v4363_v5  ;;  %4006 = vmatpush3.msra.mxu1 %v3266_v63 }
0x392e   :  { %4007 = vmatprep.subr.mxu1 %v4363_v5 }
0x392f   :  { %4008 = vmatpush3.msra.mxu1 %v3265_v11 }
0x3930   :  { %4009 = vmatprep.subr.mxu1 %v4363_v5 }
0x3931   :  { %4010 = vmatpush3.msra.mxu1 %v3264_v44 }
0x3932   :  { %4011 = vmatprep.subr.mxu1 %v4363_v5  ;;  %v3511_v5 = vld [vmem:[%s5142_s14] ss:$0 sm:$0xff] }
0x3933   :  { %4012 = vmatpush3.msra.mxu1 %v3263_v45 }
0x39e4   :  { %v3050_v14 = vpop.f32.mrf.mxu1 }
0x39e5   :  { %v3055_v31 = vrot.slane %v3050_v14, 2 }
0x39e6   :  { %v3971_v62 = vpop.f32.mrf.mxu1 }
0x39e7   :  { %v3057_v7 = vadd.f32 %v3055_v31, %v4962_v33 }
0x39e9   :  { %4212 = vtanh.f32 %v3057_v7  ;;  %v3504_v10 = vmul.f32 -1.442695, %v3057_v7 }
0x39ec   :  { %v3227_v0 = vpop.f32.mrf.mxu1 }
0x39ed   :  { %v3228_v1 = vadd.f32 %v3227_v0, %v3154_v48 }
0x39ee   :  { %v3993_v8 = vpop.f32.mrf.mxu1 }
0x39ef   :  { %v3238_v2 = vadd.f32 %v3507_v30, %v3228_v1 }
0x39f1   :  { %4214 = vtanh.f32 %v3238_v2  ;;  %v3508_v25 = vmul.f32 -1.442695, %v3238_v2 }
0x39f2   :  { %4216 = vpow2.f32 %v3504_v10 }
0x39f3   :  { %4218 = vpow2.f32 %v3508_v25 }
0x39f6   :  { %v4213_v3 = vpop.eup %4212 }
0x39f7   :  { %3070 = vrot.lane.b32.xlu1 %v4213_v3, %s4365_s25 }
0x39fe   :  { %v4215_v9 = vpop.eup %4214 }
0x39ff   :  { %3248 = vrot.lane.b32.xlu0 %v4215_v9, %s4365_s25  ;;  %v4217_v33 = vpop.eup %4216 }
0x3a00   :  { %v3061_v28 = vadd.f32 1.0, %v4217_v33  ;;  %v4219_v12 = vpop.eup %4218 }
0x3a01   :  { %v3242_v29 = vadd.f32 1.0, %v4219_v12 }
0x3a02   :  { %4220 = vrcp.f32 %v3061_v28 }
0x3a03   :  { %4222 = vrcp.f32 %v3242_v29 }
0x3a0f   :  { %v4221_v16 = vpop.eup %4220 }
0x3a10   :  { %v4223_v58 = vpop.eup %4222  ;;  %v3068_v35 = vmul.f32 %v4221_v16, %v3066_v24 }
0x3a11   :  { %v3246_v34 = vmul.f32 0.0, %v4223_v58 }
0x3a69   :  { %v3071_v18 = vpop.permute.xlu1 %3070 }
0x3a6a   :  { %v3073_v32 = vmul.f32 %v4221_v16, %v3071_v18 }
0x3a6c   :  { %3075 = vrot.lane.b32.xlu1 %v3073_v32, %s4366_s3 }
0x3a71   :  { %v3249_v22 = vpop.permute.xlu0 %3248 }
0x3a72   :  { %v3251_v13 = vmul.f32 %v4223_v58, %v3249_v22 }
0x3a74   :  { %3253 = vrot.lane.b32.xlu0 %v3251_v13, %s4366_s3 }
0x3ade   :  { %v3076_v37 = vpop.permute.xlu1 %3075 }
0x3adf   :  { %v3078_v38 = vadd.f32 %v3076_v37, %v3068_v35 }
0x3ae1   :  { %4224 = vtanh.f32 %v3078_v38 }
0x3ae6   :  { %v3254_v26 = vpop.permute.xlu0 %3253 }
0x3ae7   :  { %v3256_v39 = vadd.f32 %v3254_v26, %v3246_v34 }
0x3ae9   :  { %4226 = vtanh.f32 %v3256_v39 }
0x3aee   :  { %v4225_v43 = vpop.eup %4224 }
0x3aef   :  { %3081 = vrot.lane.b32.xlu1 %v4225_v43, %s4365_s25 }
0x3af6   :  { %v4227_v46 = vpop.eup %4226 }
0x3af7   :  { %3259 = vrot.lane.b32.xlu0 %v4227_v46, %s4365_s25 }
0x3b61   :  { %v3082_v48 = vpop.permute.xlu1 %3081 }
0x3b62   :  { %v3084_v49 = vmul.f32 %v4221_v16, %v3082_v48 }
0x3b64   :  { %v3347_v19 = vrot.slane %v3084_v49, 6 }
0x3b66   :  { %3348 = vrot.lane.b32.xlu0 %v3347_v19, %s4366_s3 }
0x3b69   :  { %v3260_v27 = vpop.permute.xlu0 %3259 }
0x3b6a   :  { %v3262_v15 = vmul.f32 %v4223_v58, %v3260_v27 }
0x3b6c   :  { %3272 = vrot.lane.b32.xlu1 %v3262_v15, %s4366_s3  ;;  %s4328_s3 = scalar_lea.vmem %s3439_s24, 32 }
0x3b6d   :  { %p4329_p11 = scmp.ne.s32.totalorder %s3439_s24, %s4328_s3  ;;  %p4334_p13 = scmp.lt.s32.totalorder %s4328_s3, %s4328_s3 }
0x3b6f   :  { %p4335_p0 = por %p4334_p13, %p4333_p12 }
0x3b71   :  { %p4336_p1 = pnand %p4335_p0, %p4329_p11 }
0x3bd8   :  { %v3349_v60 = vpop.permute.xlu0 %3348 }
0x3bd9   :  { %4014 = vmatmul.mubr.msk.f32.vlgmr.msra.gmra.mxu1 %vm300_vm3, %v3349_v60 }
0x3bde   :  { %v3273_v54 = vpop.permute.xlu1 %3272 }
0x3bdf   :  { %4003 = vmatmul.mubr.msk.f32.vlgmr.msra.gmra.mxu0 %vm300_vm3, %v3273_v54 }
0x3c99   :  { %v3418_v23 = vpop.f32.mrf.mxu1 }
0x3c9b   :  { %v4015_v51 = vpop.f32.mrf.mxu1 }
0x3c9f   :  { %v3342_v40 = vpop.f32.mrf.mxu0 }
0x3ca0   :  { %v3419_v53 = vadd.f32 %v3418_v23, %v3342_v40 }
0x3ca1   :  { %v4004_v20 = vpop.f32.mrf.mxu0 }
0x3ca2   :  { %v3429_v55 = vadd.f32 %v3511_v5, %v3419_v53 }
0x3ca4   :  { %3431 = vst.msk [vmem:[#allocation13] sm:$0x3] %vm3430_vm7, %v3429_v55 }
0x3ca5   :  { %4339 = shalt.err (!%p4336_p1)
}
0x3ca6   :  { %3441 = dma.vmem_to_hbm [thread:$0]  %s3439_s24, 32, %s5143_s15, [#allocation6]  }
0x3ca7   :  { %4354 = dma.done.wait [#allocation6], 32  }
0x3ca8   :  { %4355 = vsyncadd [#allocation6], 4294967264 }
0x3ca9   :  { %3445 = vsyncpa [#allocation5], 1 }
0x3caa   :  { %3446 = vsyncpa [#allocation8], 1 }
0x3cab   :  { %3447 = vsyncpa [#allocation11], 1 }
0x3cac   :  { %3448 = vsyncpa [#allocation6], 1 }

</bundles_post_ra>
